<compile_context>
chip_gen: v7x
topology: tpu7x:2x2x1
jax: 0.10.0
libtpu: 0.0.40
codegen_flags: <defaults>
</compile_context>

<pallas_src>
import functools

import jax
import jax.numpy as jnp
import numpy as np
from jax.experimental import pallas as pl
from jax.experimental.pallas import tpu as pltpu

LEAKY_SLOPE = 0.01
BN_EPS = 1e-5
EXPANSION = 4
LANES = 128
SUBLANES_BF16 = 16


def _ceil_to(x, m):
    return ((x + m - 1) // m) * m


def _lrelu(y):
    return jnp.where(y >= 0, y, LEAKY_SLOPE * y)


def _bn_train(y, gamma, beta, m):
    # Training-mode BatchNorm over the pixel axis (biased variance, eps=1e-5).
    # Two-pass form (center first, then square) for numerical robustness.
    # Invariant: zero-padded channel lanes stay exactly 0 through BN because the
    # padded gamma/beta entries are 0 (0 * rsqrt(eps) * 0 + 0 == 0).
    inv_m = 1.0 / float(m)
    mean = jnp.sum(y, axis=0, keepdims=True) * inv_m
    yc = y - mean
    var = jnp.sum(yc * yc, axis=0, keepdims=True) * inv_m
    return yc * jax.lax.rsqrt(var + BN_EPS) * gamma + beta
    # TODO(synk): running_mean/running_var buffer updates (training-time side
    # effect) do not change the forward output and are not reproduced here.


# ------------------------------- fused kernel --------------------------------

def _bottleneck_kernel(x_ref, w1_ref, g1_ref, b1_ref,
                       w2_ref, g2_ref, b2_ref,
                       w3_ref, g3_ref, b3_ref, *rest,
                       N, H, W, Ho, Wo, stride, has_sc_conv, fuse_kw):
    if has_sc_conv:
        ws_ref, gs_ref, bs_ref, o_ref, y1p_ref = rest
    else:
        o_ref, y1p_ref = rest

    cpi = x_ref.shape[-1]      # padded Cin  (lane-dense, multiple of 128)
    cpm = w1_ref.shape[-1]     # padded Cmid
    m1 = N * H * W
    m2 = N * Ho * Wo
    bf16 = jnp.bfloat16

    # ---- stage 1: 1x1 conv -> BN -> LeakyReLU (one MXU matmul over channels) ----
    x_flat = x_ref[...].reshape(m1, cpi)
    y1 = jnp.dot(x_flat.astype(bf16), w1_ref[...],
                 preferred_element_type=jnp.float32)
    # single f32 -> bf16 cast; the halo scratch and all 9 tap reads are bf16
    y1b = _lrelu(_bn_train(y1, g1_ref[...], b1_ref[...], m1)).astype(bf16)

    # ---- stash y1 into the zero-rimmed bf16 halo scratch ----
    Wp = y1p_ref.shape[2]
    if stride == 1:
        # layout: (N, H+2, Wp, cpm); zero only the rim, write interior once.
        zrow = jnp.zeros((N, 1, Wp, cpm), bf16)
        y1p_ref[:, 0:1, :, :] = zrow
        y1p_ref[:, H + 1:H + 2, :, :] = zrow
        zcol = jnp.zeros((N, H + 2, 1, cpm), bf16)
        y1p_ref[:, :, 0:1, :] = zcol
        y1p_ref[:, :, W + 1:W + 2, :] = zcol
        y1p_ref[:, 1:H + 1, 1:W + 1, :] = y1b.reshape(N, H, W, cpm)
    else:
        # stride 2: phase-split layout (4*N, Ho+1, Wp, cpm); block p holds the
        # (phase_h, phase_w) = (p//2, p%2) parity class of the zero-padded grid,
        # so every tap / write below is a contiguous static slice.
        Hp2 = Ho + 1
        zrow = jnp.zeros((2 * N, 1, Wp, cpm), bf16)
        y1p_ref[0:2 * N, 0:1, :, :] = zrow                  # padded row 0
        y1p_ref[2 * N:4 * N, Ho:Ho + 1, :, :] = zrow        # padded row H+1
        zcol = jnp.zeros((N, Hp2, 1, cpm), bf16)
        y1p_ref[0:N, :, 0:1, :] = zcol                      # padded col 0   (p=0)
        y1p_ref[2 * N:3 * N, :, 0:1, :] = zcol              # padded col 0   (p=2)
        y1p_ref[N:2 * N, :, Wo:Wo + 1, :] = zcol            # padded col W+1 (p=1)
        y1p_ref[3 * N:4 * N, :, Wo:Wo + 1, :] = zcol        # padded col W+1 (p=3)
        # x (and hence y1) arrives already phase-split from the wrapper:
        # block ih*2+iw holds pixels (2a+ih, 2b+iw).
        y1blk = y1b.reshape(4 * N, Ho, Wo, cpm)
        for ih in range(2):
            for iw in range(2):
                blk = ih * 2 + iw
                p = ((ih + 1) % 2) * 2 + ((iw + 1) % 2)     # parity in padded coords
                rs, cs = (ih + 1) // 2, (iw + 1) // 2
                y1p_ref[p * N:(p + 1) * N, rs:rs + Ho, cs:cs + Wo, :] = \
                    y1blk[blk * N:(blk + 1) * N]

    def tap(kh, kw):
        # bf16 (m2, cpm) window of y1 for 3x3 tap (kh, kw) -- contiguous slice.
        if stride == 1:
            win = y1p_ref[:, kh:kh + Ho, kw:kw + Wo, :]
        else:
            p = (kh % 2) * 2 + (kw % 2)
            win = y1p_ref[p * N:(p + 1) * N,
                          kh // 2:kh // 2 + Ho, kw // 2:kw // 2 + Wo, :]
        return win.reshape(m2, cpm)

    # ---- stage 2: 3x3 stride-s conv as accumulated MXU matmuls -> BN -> LReLU ----
    acc = None
    for kh in range(3):
        if fuse_kw:
            # fuse the 3 kw taps along the contraction axis (K = 3*cpm) to fill
            # the 256-wide MXU on v6e/v7x and cut accumulator adds.
            win3 = jnp.concatenate([tap(kh, kw) for kw in range(3)], axis=-1)
            d = jnp.dot(win3, w2_ref[kh], preferred_element_type=jnp.float32)
            acc = d if acc is None else acc + d
        else:
            wk = w2_ref[kh]                                  # (3*cpm, cpm)
            for kw in range(3):
                d = jnp.dot(tap(kh, kw), wk[kw * cpm:(kw + 1) * cpm, :],
                            preferred_element_type=jnp.float32)
                acc = d if acc is None else acc + d
    y2 = _lrelu(_bn_train(acc, g2_ref[...], b2_ref[...], m2))

    # ---- stage 3: 1x1 conv -> BN ----
    r = _bn_train(jnp.dot(y2.astype(bf16), w3_ref[...],
                          preferred_element_type=jnp.float32),
                  g3_ref[...], b3_ref[...], m2)

    # ---- shortcut ----
    if has_sc_conv:
        if stride == 1:
            xs = x_flat
        else:
            # phase block (0,0) of the phase-split input == x[2*ho, 2*wo]
            xs = x_flat[:m2]
        sc = _bn_train(jnp.dot(xs.astype(bf16), ws_ref[...],
                               preferred_element_type=jnp.float32),
                       gs_ref[...], bs_ref[...], m2)
    else:
        sc = x_flat        # identity: stride == 1 and padded Cin == padded Cout

    o_ref[...] = _lrelu(r + sc)


# ---------------------------- params & preparation ---------------------------

def init_params(key, in_channels, out_channels):
    cout = out_channels * EXPANSION
    k1, k2, k3, k4 = jax.random.split(key, 4)

    def w(k, shape, fan_in):
        return jax.random.normal(k, shape, jnp.float32) / np.sqrt(fan_in)

    return {
        # PyTorch conv weight layout: (Cout, Cin, kh, kw), bias=False
        'w1': w(k1, (out_channels, in_channels, 1, 1), in_channels),
        'w2': w(k2, (out_channels, out_channels, 3, 3), out_channels * 9),
        'w3': w(k3, (cout, out_channels, 1, 1), out_channels),
        'ws': w(k4, (cout, in_channels, 1, 1), in_channels),
        # BatchNorm affine defaults: weight=1, bias=0
        'g1': jnp.ones((out_channels,), jnp.float32),
        'b1': jnp.zeros((out_channels,), jnp.float32),
        'g2': jnp.ones((out_channels,), jnp.float32),
        'b2': jnp.zeros((out_channels,), jnp.float32),
        'g3': jnp.ones((cout,), jnp.float32),
        'b3': jnp.zeros((cout,), jnp.float32),
        'gs': jnp.ones((cout,), jnp.float32),
        'bs': jnp.zeros((cout,), jnp.float32),
    }


def _pad_to(a, shape):
    return jnp.pad(a, [(0, s - d) for d, s in zip(a.shape, shape)])


def prepare_params(params, in_channels, out_channels):
    """Done once: transpose conv weights to (Cin, Cout), zero-pad channel axes to
    128 lanes, cast matmul weights to bf16.  w2 is stored as (3, 3*cpm, cpm):
    kh-major with the 3 kw taps stacked along the contraction axis, which serves
    both the fused (K=3*cpm) and unfused (static K=cpm slices) stage-2 paths."""
    cmid = out_channels
    cout = out_channels * EXPANSION
    cpi = _ceil_to(in_channels, LANES)
    cpm = _ceil_to(cmid, LANES)
    cpo = _ceil_to(cout, LANES)

    w1 = jnp.transpose(params['w1'][:, :, 0, 0])                     # (Cin, Cmid)
    w2 = jnp.transpose(params['w2'], (2, 3, 1, 0))                   # (kh, kw, Cin, Cout)
    w2 = _pad_to(w2, (3, 3, cpm, cpm)).reshape(3, 3 * cpm, cpm)
    w3 = jnp.transpose(params['w3'][:, :, 0, 0])                     # (Cmid, Cout)
    ws = jnp.transpose(params['ws'][:, :, 0, 0])                     # (Cin, Cout)

    def vec(v, cp):
        return _pad_to(v.reshape(1, -1), (1, cp)).astype(jnp.float32)

    return {
        'w1': _pad_to(w1, (cpi, cpm)).astype(jnp.bfloat16),
        'w2': w2.astype(jnp.bfloat16),
        'w3': _pad_to(w3, (cpm, cpo)).astype(jnp.bfloat16),
        'ws': _pad_to(ws, (cpi, cpo)).astype(jnp.bfloat16),
        'g1': vec(params['g1'], cpm), 'b1': vec(params['b1'], cpm),
        'g2': vec(params['g2'], cpm), 'b2': vec(params['b2'], cpm),
        'g3': vec(params['g3'], cpo), 'b3': vec(params['b3'], cpo),
        'gs': vec(params['gs'], cpo), 'bs': vec(params['bs'], cpo),
    }


# --------------------------- per-generation heuristics ------------------------

def _device_kind():
    try:
        return jax.devices()[0].device_kind.lower()
    except Exception:
        return ""


def _default_fuse_kw():
    # 128-wide MXU generations (v2-v5): keep 9 x K=128 matmuls.
    # 256-wide MXU (v6e/v7x): fuse the 3 kw taps into K=384 matmuls.
    return not any(t in _device_kind() for t in ("v2", "v3", "v4", "v5"))


def _vmem_limit_bytes(resident_bytes):
    # Budget per generation: v7x has 64 MiB physical VMEM per core, v5e/v6e 128 MiB.
    cap = (48 if "v7" in _device_kind() else 100) * 1024 * 1024
    want = 2 * int(resident_bytes) + (8 << 20)
    return int(max(16 << 20, min(want, cap)))


# ------------------------------- module forward ------------------------------

def bottleneck_forward(x_nchw, prep, *, in_channels, out_channels, stride=1,
                       fuse_kw_taps=None):
    assert stride in (1, 2), "ResNet BottleNeck uses stride 1 or 2"
    if fuse_kw_taps is None:
        fuse_kw_taps = _default_fuse_kw()

    cout = out_channels * EXPANSION
    cpi = _ceil_to(in_channels, LANES)
    cpm = _ceil_to(out_channels, LANES)
    cpo = _ceil_to(cout, LANES)
    has_sc_conv = (stride != 1) or (in_channels != cout)

    N, _, H, W = x_nchw.shape
    assert stride == 1 or (H % stride == 0 and W % stride == 0), (
        "spatial dims must be divisible by stride")
    Ho, Wo = H // stride, W // stride

    # One boundary layout transform (PyTorch NCHW interface):
    #   stride 1: NCHW -> NHWC
    #   stride 2: NCHW -> space-to-depth phase split (4*N, H/2, W/2, C) so every
    #             in-kernel tap read / scratch write / shortcut read is contiguous.
    # TODO(synk): keep the whole network NHWC bf16 end-to-end to drop this pass
    # and emit bf16 output.
    xf = x_nchw.astype(jnp.float32)
    if stride == 1:
        x = jnp.transpose(xf, (0, 2, 3, 1))
    else:
        x = xf.reshape(N, in_channels, Ho, 2, Wo, 2)
        x = jnp.transpose(x, (3, 5, 0, 2, 4, 1)).reshape(4 * N, Ho, Wo, in_channels)
    x_pad = _pad_to(x, x.shape[:-1] + (cpi,))        # lane-dense channel axis

    if stride == 1:
        scratch_shape = (N, H + 2, _ceil_to(W + 2, SUBLANES_BF16), cpm)
    else:
        scratch_shape = (4 * N, Ho + 1, _ceil_to(Wo + 1, SUBLANES_BF16), cpm)

    ins = [x_pad, prep['w1'], prep['g1'], prep['b1'],
           prep['w2'], prep['g2'], prep['b2'],
           prep['w3'], prep['g3'], prep['b3']]
    if has_sc_conv:
        ins += [prep['ws'], prep['gs'], prep['bs']]

    m2 = N * Ho * Wo
    resident_bytes = (sum(int(np.prod(a.shape)) * a.dtype.itemsize for a in ins)
                      + m2 * cpo * 4 + int(np.prod(scratch_shape)) * 2)

    kern = functools.partial(
        _bottleneck_kernel, N=N, H=H, W=W, Ho=Ho, Wo=Wo, stride=stride,
        has_sc_conv=has_sc_conv, fuse_kw=fuse_kw_taps)

    vmem_spec = pl.BlockSpec(memory_space=pltpu.MemorySpace.VMEM)
    out_flat = pl.pallas_call(
        kern,
        out_shape=jax.ShapeDtypeStruct((m2, cpo), jnp.float32),
        in_specs=[vmem_spec] * len(ins),
        out_specs=vmem_spec,
        scratch_shapes=[pltpu.VMEM(scratch_shape, jnp.bfloat16)],
        compiler_params=pltpu.CompilerParams(
            vmem_limit_bytes=_vmem_limit_bytes(resident_bytes)),
    )(*ins)

    out = out_flat.reshape(N, Ho, Wo, cpo)[:, :, :, :cout]
    return jnp.transpose(out, (0, 3, 1, 2))          # NHWC -> NCHW


# ------------------------------ pure-JAX reference ---------------------------

def bottleneck_ref(x_nchw, params, in_channels, out_channels, stride=1):
    cout = out_channels * EXPANSION
    x = jnp.transpose(x_nchw, (0, 2, 3, 1)).astype(jnp.float32)

    def conv(y, w, s, p):
        # Same precision policy as the kernel: bf16 operands, f32 accumulation.
        return jax.lax.conv_general_dilated(
            y.astype(jnp.bfloat16),
            jnp.transpose(w, (2, 3, 1, 0)).astype(jnp.bfloat16),
            (s, s), [(p, p), (p, p)],
            dimension_numbers=('NHWC', 'HWIO', 'NHWC'),
            preferred_element_type=jnp.float32)

    def bn(y, g, b):
        m = jnp.mean(y, axis=(0, 1, 2), keepdims=True)
        v = jnp.mean(jnp.square(y - m), axis=(0, 1, 2), keepdims=True)
        return (y - m) * jax.lax.rsqrt(v + BN_EPS) * g + b

    y = _lrelu(bn(conv(x, params['w1'], 1, 0), params['g1'], params['b1']))
    y = _lrelu(bn(conv(y, params['w2'], stride, 1), params['g2'], params['b2']))
    r = bn(conv(y, params['w3'], 1, 0), params['g3'], params['b3'])
    if stride != 1 or in_channels != cout:
        s = bn(conv(x, params['ws'], stride, 0), params['gs'], params['bs'])
    else:
        s = x
    return jnp.transpose(_lrelu(r + s), (0, 3, 1, 2))


# ----------------------------------- main -------------------------------------

if __name__ == "__main__":
    key = jax.random.PRNGKey(0)
    kx, kp, kx2, kp2 = jax.random.split(key, 4)

    # case 1: stride-2 block with conv shortcut (Cin=4 -> Cout=16),
    #         exercises the phase-split scratch and the fused-kw (K=384) path.
    in_c, out_c, stride = 4, 4, 2
    x = jax.random.normal(kx, (2, in_c, 16, 16), jnp.float32)
    params = init_params(kp, in_c, out_c)
    prep = prepare_params(params, in_c, out_c)
    fwd = jax.jit(functools.partial(
        bottleneck_forward, in_channels=in_c, out_channels=out_c, stride=stride,
        fuse_kw_taps=True))
    out = fwd(x, prep)
    jax.block_until_ready(out)
    assert out.shape == (2, out_c * EXPANSION, 8, 8), out.shape
    ref = bottleneck_ref(x, params, in_c, out_c, stride)
    np.testing.assert_allclose(np.asarray(out), np.asarray(ref),
                               rtol=1e-2, atol=1e-2)

    # case 2: stride-1 block with identity shortcut (Cin == Cout*4 == 16),
    #         exercises the halo scratch and the 9 x K=128 unfused path.
    in_c2, out_c2, stride2 = 16, 4, 1
    x2 = jax.random.normal(kx2, (2, in_c2, 16, 16), jnp.float32)
    params2 = init_params(kp2, in_c2, out_c2)
    prep2 = prepare_params(params2, in_c2, out_c2)
    fwd2 = jax.jit(functools.partial(
        bottleneck_forward, in_channels=in_c2, out_channels=out_c2, stride=stride2,
        fuse_kw_taps=False))
    out2 = fwd2(x2, prep2)
    jax.block_until_ready(out2)
    assert out2.shape == (2, out_c2 * EXPANSION, 16, 16), out2.shape
    ref2 = bottleneck_ref(x2, params2, in_c2, out_c2, stride2)
    np.testing.assert_allclose(np.asarray(out2), np.asarray(ref2),
                               rtol=1e-2, atol=1e-2)

    print("KERNEL_OK")
</pallas_src>

<mosaic_0001>
module attributes {stable_mosaic.version = 11 : i64} {
  func.func @_bottleneck_kernel(%arg0: memref<8x8x8x128xf32, #tpu.memory_space<vmem>>, %arg1: memref<128x128xbf16, #tpu.memory_space<vmem>>, %arg2: memref<1x128xf32, #tpu.memory_space<vmem>>, %arg3: memref<1x128xf32, #tpu.memory_space<vmem>>, %arg4: memref<3x384x128xbf16, #tpu.memory_space<vmem>>, %arg5: memref<1x128xf32, #tpu.memory_space<vmem>>, %arg6: memref<1x128xf32, #tpu.memory_space<vmem>>, %arg7: memref<128x128xbf16, #tpu.memory_space<vmem>>, %arg8: memref<1x128xf32, #tpu.memory_space<vmem>>, %arg9: memref<1x128xf32, #tpu.memory_space<vmem>>, %arg10: memref<128x128xbf16, #tpu.memory_space<vmem>>, %arg11: memref<1x128xf32, #tpu.memory_space<vmem>>, %arg12: memref<1x128xf32, #tpu.memory_space<vmem>>, %arg13: memref<128x128xf32, #tpu.memory_space<vmem>>, %arg14: memref<8x9x16x128xbf16, #tpu.memory_space<vmem>>) attributes {dimension_semantics = [], scalar_prefetch = 0 : i64, scratch_operands = 1 : i64, tpu.core_type = #tpu.core_type<tc>} {
    %c0 = arith.constant 0 : index
    %c0_0 = arith.constant 0 : index
    %c0_1 = arith.constant 0 : index
    %c0_2 = arith.constant 0 : index
    %0 = vector.load %arg0[%c0, %c0_0, %c0_1, %c0_2] : memref<8x8x8x128xf32, #tpu.memory_space<vmem>>, vector<8x8x8x128xf32>
    %1 = vector.shape_cast %0 : vector<8x8x8x128xf32> to vector<512x128xf32>
    %2 = arith.truncf %1 : vector<512x128xf32> to vector<512x128xbf16>
    %c0_3 = arith.constant 0 : index
    %c0_4 = arith.constant 0 : index
    %3 = vector.load %arg1[%c0_3, %c0_4] : memref<128x128xbf16, #tpu.memory_space<vmem>>, vector<128x128xbf16>
    %cst = arith.constant dense<0.000000e+00> : vector<512x128xf32>
    %4 = tpu.matmul %2, %3, %cst {dimension_numbers = #tpu.dot_dimension_numbers<[1], [0], [0], [1], [0, 0, 1, 1], [], []>} : vector<512x128xbf16>, vector<128x128xbf16>, vector<512x128xf32> -> vector<512x128xf32>
    %c0_5 = arith.constant 0 : index
    %c0_6 = arith.constant 0 : index
    %5 = vector.load %arg2[%c0_5, %c0_6] : memref<1x128xf32, #tpu.memory_space<vmem>>, vector<1x128xf32>
    %c0_7 = arith.constant 0 : index
    %c0_8 = arith.constant 0 : index
    %6 = vector.load %arg3[%c0_7, %c0_8] : memref<1x128xf32, #tpu.memory_space<vmem>>, vector<1x128xf32>
    %cst_9 = arith.constant dense<0.000000e+00> : vector<128xf32>
    %7 = vector.multi_reduction <add>, %4, %cst_9 [0] : vector<512x128xf32> to vector<128xf32>
    %8 = vector.shape_cast %7 : vector<128xf32> to vector<1x128xf32>
    %cst_10 = arith.constant 0.001953125 : f32
    %9 = vector.broadcast %cst_10 : f32 to vector<1x128xf32>
    %10 = arith.mulf %8, %9 : vector<1x128xf32>
    %11 = vector.broadcast %10 : vector<1x128xf32> to vector<512x128xf32>
    %12 = arith.subf %4, %11 : vector<512x128xf32>
    %13 = arith.mulf %12, %12 : vector<512x128xf32>
    %cst_11 = arith.constant dense<0.000000e+00> : vector<128xf32>
    %14 = vector.multi_reduction <add>, %13, %cst_11 [0] : vector<512x128xf32> to vector<128xf32>
    %15 = vector.shape_cast %14 : vector<128xf32> to vector<1x128xf32>
    %cst_12 = arith.constant 0.001953125 : f32
    %16 = vector.broadcast %cst_12 : f32 to vector<1x128xf32>
    %17 = arith.mulf %15, %16 : vector<1x128xf32>
    %cst_13 = arith.constant 9.99999974E-6 : f32
    %18 = vector.broadcast %cst_13 : f32 to vector<1x128xf32>
    %19 = arith.addf %17, %18 : vector<1x128xf32>
    %20 = math.rsqrt %19 : vector<1x128xf32>
    %21 = vector.broadcast %20 : vector<1x128xf32> to vector<512x128xf32>
    %22 = arith.mulf %12, %21 : vector<512x128xf32>
    %23 = vector.broadcast %5 : vector<1x128xf32> to vector<512x128xf32>
    %24 = arith.mulf %22, %23 : vector<512x128xf32>
    %25 = vector.broadcast %6 : vector<1x128xf32> to vector<512x128xf32>
    %26 = arith.addf %24, %25 : vector<512x128xf32>
    %cst_14 = arith.constant 0.000000e+00 : f32
    %27 = vector.broadcast %cst_14 : f32 to vector<512x128xf32>
    %28 = arith.cmpf oge, %26, %27 : vector<512x128xf32>
    %cst_15 = arith.constant 0.00999999977 : f32
    %29 = vector.broadcast %cst_15 : f32 to vector<512x128xf32>
    %30 = arith.mulf %29, %26 : vector<512x128xf32>
    %31 = arith.select %28, %26, %30 : vector<512x128xi1>, vector<512x128xf32>
    %32 = arith.truncf %31 : vector<512x128xf32> to vector<512x128xbf16>
    %cst_16 = arith.constant 0.000000e+00 : bf16
    %33 = vector.broadcast %cst_16 : bf16 to vector<4x1x16x128xbf16>
    %c0_17 = arith.constant 0 : index
    %c0_18 = arith.constant 0 : index
    %c0_19 = arith.constant 0 : index
    %c0_20 = arith.constant 0 : index
    %34 = vector.load %arg14[%c0_17, %c0_18, %c0_19, %c0_20] : memref<8x9x16x128xbf16, #tpu.memory_space<vmem>>, vector<4x1x16x128xbf16>
    tpu.vector_store %arg14[%c0_17, %c0_18, %c0_19, %c0_20], %33 {strides = array<i32>} : memref<8x9x16x128xbf16, #tpu.memory_space<vmem>>, vector<4x1x16x128xbf16>,
    %c4 = arith.constant 4 : index
    %c8 = arith.constant 8 : index
    %c0_21 = arith.constant 0 : index
    %c0_22 = arith.constant 0 : index
    %35 = vector.load %arg14[%c4, %c8, %c0_21, %c0_22] : memref<8x9x16x128xbf16, #tpu.memory_space<vmem>>, vector<4x1x16x128xbf16>
    tpu.vector_store %arg14[%c4, %c8, %c0_21, %c0_22], %33 {strides = array<i32>} : memref<8x9x16x128xbf16, #tpu.memory_space<vmem>>, vector<4x1x16x128xbf16>,
    %cst_23 = arith.constant 0.000000e+00 : bf16
    %36 = vector.broadcast %cst_23 : bf16 to vector<2x9x1x128xbf16>
    %c0_24 = arith.constant 0 : index
    %c0_25 = arith.constant 0 : index
    %c0_26 = arith.constant 0 : index
    %c0_27 = arith.constant 0 : index
    %37 = vector.load %arg14[%c0_24, %c0_25, %c0_26, %c0_27] : memref<8x9x16x128xbf16, #tpu.memory_space<vmem>>, vector<2x9x1x128xbf16>
    tpu.vector_store %arg14[%c0_24, %c0_25, %c0_26, %c0_27], %36 {strides = array<i32>} : memref<8x9x16x128xbf16, #tpu.memory_space<vmem>>, vector<2x9x1x128xbf16>,
    %c4_28 = arith.constant 4 : index
    %c0_29 = arith.constant 0 : index
    %c0_30 = arith.constant 0 : index
    %c0_31 = arith.constant 0 : index
    %38 = vector.load %arg14[%c4_28, %c0_29, %c0_30, %c0_31] : memref<8x9x16x128xbf16, #tpu.memory_space<vmem>>, vector<2x9x1x128xbf16>
    tpu.vector_store %arg14[%c4_28, %c0_29, %c0_30, %c0_31], %36 {strides = array<i32>} : memref<8x9x16x128xbf16, #tpu.memory_space<vmem>>, vector<2x9x1x128xbf16>,
    %c2 = arith.constant 2 : index
    %c0_32 = arith.constant 0 : index
    %c8_33 = arith.constant 8 : index
    %c0_34 = arith.constant 0 : index
    %39 = vector.load %arg14[%c2, %c0_32, %c8_33, %c0_34] : memref<8x9x16x128xbf16, #tpu.memory_space<vmem>>, vector<2x9x1x128xbf16>
    tpu.vector_store %arg14[%c2, %c0_32, %c8_33, %c0_34], %36 {strides = array<i32>} : memref<8x9x16x128xbf16, #tpu.memory_space<vmem>>, vector<2x9x1x128xbf16>,
    %c6 = arith.constant 6 : index
    %c0_35 = arith.constant 0 : index
    %c8_36 = arith.constant 8 : index
    %c0_37 = arith.constant 0 : index
    %40 = vector.load %arg14[%c6, %c0_35, %c8_36, %c0_37] : memref<8x9x16x128xbf16, #tpu.memory_space<vmem>>, vector<2x9x1x128xbf16>
    tpu.vector_store %arg14[%c6, %c0_35, %c8_36, %c0_37], %36 {strides = array<i32>} : memref<8x9x16x128xbf16, #tpu.memory_space<vmem>>, vector<2x9x1x128xbf16>,
    %41 = vector.shape_cast %32 : vector<512x128xbf16> to vector<8x8x8x128xbf16>
    %42 = vector.extract_strided_slice %41 {offsets = [0, 0, 0, 0], sizes = [2, 8, 8, 128], strides = [1, 1, 1, 1]} : vector<8x8x8x128xbf16> to vector<2x8x8x128xbf16>
    %c6_38 = arith.constant 6 : index
    %c0_39 = arith.constant 0 : index
    %c0_40 = arith.constant 0 : index
    %c0_41 = arith.constant 0 : index
    %43 = vector.load %arg14[%c6_38, %c0_39, %c0_40, %c0_41] : memref<8x9x16x128xbf16, #tpu.memory_space<vmem>>, vector<2x8x8x128xbf16>
    tpu.vector_store %arg14[%c6_38, %c0_39, %c0_40, %c0_41], %42 {strides = array<i32>} : memref<8x9x16x128xbf16, #tpu.memory_space<vmem>>, vector<2x8x8x128xbf16>,
    %44 = vector.extract_strided_slice %41 {offsets = [2, 0, 0, 0], sizes = [2, 8, 8, 128], strides = [1, 1, 1, 1]} : vector<8x8x8x128xbf16> to vector<2x8x8x128xbf16>
    %c4_42 = arith.constant 4 : index
    %c0_43 = arith.constant 0 : index
    %c1 = arith.constant 1 : index
    %c0_44 = arith.constant 0 : index
    %45 = vector.load %arg14[%c4_42, %c0_43, %c1, %c0_44] : memref<8x9x16x128xbf16, #tpu.memory_space<vmem>>, vector<2x8x8x128xbf16>
    tpu.vector_store %arg14[%c4_42, %c0_43, %c1, %c0_44], %44 {strides = array<i32>} : memref<8x9x16x128xbf16, #tpu.memory_space<vmem>>, vector<2x8x8x128xbf16>,
    %46 = vector.extract_strided_slice %41 {offsets = [4, 0, 0, 0], sizes = [2, 8, 8, 128], strides = [1, 1, 1, 1]} : vector<8x8x8x128xbf16> to vector<2x8x8x128xbf16>
    %c2_45 = arith.constant 2 : index
    %c1_46 = arith.constant 1 : index
    %c0_47 = arith.constant 0 : index
    %c0_48 = arith.constant 0 : index
    %47 = vector.load %arg14[%c2_45, %c1_46, %c0_47, %c0_48] : memref<8x9x16x128xbf16, #tpu.memory_space<vmem>>, vector<2x8x8x128xbf16>
    tpu.vector_store %arg14[%c2_45, %c1_46, %c0_47, %c0_48], %46 {strides = array<i32>} : memref<8x9x16x128xbf16, #tpu.memory_space<vmem>>, vector<2x8x8x128xbf16>,
    %48 = vector.extract_strided_slice %41 {offsets = [6, 0, 0, 0], sizes = [2, 8, 8, 128], strides = [1, 1, 1, 1]} : vector<8x8x8x128xbf16> to vector<2x8x8x128xbf16>
    %c0_49 = arith.constant 0 : index
    %c1_50 = arith.constant 1 : index
    %c1_51 = arith.constant 1 : index
    %c0_52 = arith.constant 0 : index
    %49 = vector.load %arg14[%c0_49, %c1_50, %c1_51, %c0_52] : memref<8x9x16x128xbf16, #tpu.memory_space<vmem>>, vector<2x8x8x128xbf16>
    tpu.vector_store %arg14[%c0_49, %c1_50, %c1_51, %c0_52], %48 {strides = array<i32>} : memref<8x9x16x128xbf16, #tpu.memory_space<vmem>>, vector<2x8x8x128xbf16>,
    %c0_53 = arith.constant 0 : index
    %c0_54 = arith.constant 0 : index
    %c0_55 = arith.constant 0 : index
    %c0_56 = arith.constant 0 : index
    %50 = vector.load %arg14[%c0_53, %c0_54, %c0_55, %c0_56] : memref<8x9x16x128xbf16, #tpu.memory_space<vmem>>, vector<2x8x8x128xbf16>
    %51 = vector.shape_cast %50 : vector<2x8x8x128xbf16> to vector<128x128xbf16>
    %c2_57 = arith.constant 2 : index
    %c0_58 = arith.constant 0 : index
    %c0_59 = arith.constant 0 : index
    %c0_60 = arith.constant 0 : index
    %52 = vector.load %arg14[%c2_57, %c0_58, %c0_59, %c0_60] : memref<8x9x16x128xbf16, #tpu.memory_space<vmem>>, vector<2x8x8x128xbf16>
    %53 = vector.shape_cast %52 : vector<2x8x8x128xbf16> to vector<128x128xbf16>
    %c0_61 = arith.constant 0 : index
    %c0_62 = arith.constant 0 : index
    %c1_63 = arith.constant 1 : index
    %c0_64 = arith.constant 0 : index
    %54 = vector.load %arg14[%c0_61, %c0_62, %c1_63, %c0_64] : memref<8x9x16x128xbf16, #tpu.memory_space<vmem>>, vector<2x8x8x128xbf16>
    %55 = vector.shape_cast %54 : vector<2x8x8x128xbf16> to vector<128x128xbf16>
    %56 = tpu.concatenate %51, %53, %55 in 1 : vector<128x128xbf16>, vector<128x128xbf16>, vector<128x128xbf16> -> vector<128x384xbf16>
    %c0_65 = arith.constant 0 : index
    %c0_66 = arith.constant 0 : index
    %c0_67 = arith.constant 0 : index
    %57 = vector.load %arg4[%c0_65, %c0_66, %c0_67] : memref<3x384x128xbf16, #tpu.memory_space<vmem>>, vector<1x384x128xbf16>
    %58 = vector.shape_cast %57 : vector<1x384x128xbf16> to vector<384x128xbf16>
    %cst_68 = arith.constant dense<0.000000e+00> : vector<128x128xf32>
    %59 = tpu.matmul %56, %58, %cst_68 {dimension_numbers = #tpu.dot_dimension_numbers<[1], [0], [0], [1], [0, 0, 1, 1], [], []>} : vector<128x384xbf16>, vector<384x128xbf16>, vector<128x128xf32> -> vector<128x128xf32>
    %c4_69 = arith.constant 4 : index
    %c0_70 = arith.constant 0 : index
    %c0_71 = arith.constant 0 : index
    %c0_72 = arith.constant 0 : index
    %60 = vector.load %arg14[%c4_69, %c0_70, %c0_71, %c0_72] : memref<8x9x16x128xbf16, #tpu.memory_space<vmem>>, vector<2x8x8x128xbf16>
    %61 = vector.shape_cast %60 : vector<2x8x8x128xbf16> to vector<128x128xbf16>
    %c6_73 = arith.constant 6 : index
    %c0_74 = arith.constant 0 : index
    %c0_75 = arith.constant 0 : index
    %c0_76 = arith.constant 0 : index
    %62 = vector.load %arg14[%c6_73, %c0_74, %c0_75, %c0_76] : memref<8x9x16x128xbf16, #tpu.memory_space<vmem>>, vector<2x8x8x128xbf16>
    %63 = vector.shape_cast %62 : vector<2x8x8x128xbf16> to vector<128x128xbf16>
    %c4_77 = arith.constant 4 : index
    %c0_78 = arith.constant 0 : index
    %c1_79 = arith.constant 1 : index
    %c0_80 = arith.constant 0 : index
    %64 = vector.load %arg14[%c4_77, %c0_78, %c1_79, %c0_80] : memref<8x9x16x128xbf16, #tpu.memory_space<vmem>>, vector<2x8x8x128xbf16>
    %65 = vector.shape_cast %64 : vector<2x8x8x128xbf16> to vector<128x128xbf16>
    %66 = tpu.concatenate %61, %63, %65 in 1 : vector<128x128xbf16>, vector<128x128xbf16>, vector<128x128xbf16> -> vector<128x384xbf16>
    %c1_81 = arith.constant 1 : index
    %c0_82 = arith.constant 0 : index
    %c0_83 = arith.constant 0 : index
    %67 = vector.load %arg4[%c1_81, %c0_82, %c0_83] : memref<3x384x128xbf16, #tpu.memory_space<vmem>>, vector<1x384x128xbf16>
    %68 = vector.shape_cast %67 : vector<1x384x128xbf16> to vector<384x128xbf16>
    %cst_84 = arith.constant dense<0.000000e+00> : vector<128x128xf32>
    %69 = tpu.matmul %66, %68, %cst_84 {dimension_numbers = #tpu.dot_dimension_numbers<[1], [0], [0], [1], [0, 0, 1, 1], [], []>} : vector<128x384xbf16>, vector<384x128xbf16>, vector<128x128xf32> -> vector<128x128xf32>
    %70 = arith.addf %59, %69 : vector<128x128xf32>
    %c0_85 = arith.constant 0 : index
    %c1_86 = arith.constant 1 : index
    %c0_87 = arith.constant 0 : index
    %c0_88 = arith.constant 0 : index
    %71 = vector.load %arg14[%c0_85, %c1_86, %c0_87, %c0_88] : memref<8x9x16x128xbf16, #tpu.memory_space<vmem>>, vector<2x8x8x128xbf16>
    %72 = vector.shape_cast %71 : vector<2x8x8x128xbf16> to vector<128x128xbf16>
    %c2_89 = arith.constant 2 : index
    %c1_90 = arith.constant 1 : index
    %c0_91 = arith.constant 0 : index
    %c0_92 = arith.constant 0 : index
    %73 = vector.load %arg14[%c2_89, %c1_90, %c0_91, %c0_92] : memref<8x9x16x128xbf16, #tpu.memory_space<vmem>>, vector<2x8x8x128xbf16>
    %74 = vector.shape_cast %73 : vector<2x8x8x128xbf16> to vector<128x128xbf16>
    %c0_93 = arith.constant 0 : index
    %c1_94 = arith.constant 1 : index
    %c1_95 = arith.constant 1 : index
    %c0_96 = arith.constant 0 : index
    %75 = vector.load %arg14[%c0_93, %c1_94, %c1_95, %c0_96] : memref<8x9x16x128xbf16, #tpu.memory_space<vmem>>, vector<2x8x8x128xbf16>
    %76 = vector.shape_cast %75 : vector<2x8x8x128xbf16> to vector<128x128xbf16>
    %77 = tpu.concatenate %72, %74, %76 in 1 : vector<128x128xbf16>, vector<128x128xbf16>, vector<128x128xbf16> -> vector<128x384xbf16>
    %c2_97 = arith.constant 2 : index
    %c0_98 = arith.constant 0 : index
    %c0_99 = arith.constant 0 : index
    %78 = vector.load %arg4[%c2_97, %c0_98, %c0_99] : memref<3x384x128xbf16, #tpu.memory_space<vmem>>, vector<1x384x128xbf16>
    %79 = vector.shape_cast %78 : vector<1x384x128xbf16> to vector<384x128xbf16>
    %cst_100 = arith.constant dense<0.000000e+00> : vector<128x128xf32>
    %80 = tpu.matmul %77, %79, %cst_100 {dimension_numbers = #tpu.dot_dimension_numbers<[1], [0], [0], [1], [0, 0, 1, 1], [], []>} : vector<128x384xbf16>, vector<384x128xbf16>, vector<128x128xf32> -> vector<128x128xf32>
    %81 = arith.addf %70, %80 : vector<128x128xf32>
    %c0_101 = arith.constant 0 : index
    %c0_102 = arith.constant 0 : index
    %82 = vector.load %arg5[%c0_101, %c0_102] : memref<1x128xf32, #tpu.memory_space<vmem>>, vector<1x128xf32>
    %c0_103 = arith.constant 0 : index
    %c0_104 = arith.constant 0 : index
    %83 = vector.load %arg6[%c0_103, %c0_104] : memref<1x128xf32, #tpu.memory_space<vmem>>, vector<1x128xf32>
    %cst_105 = arith.constant dense<0.000000e+00> : vector<128xf32>
    %84 = vector.multi_reduction <add>, %81, %cst_105 [0] : vector<128x128xf32> to vector<128xf32>
    %85 = vector.shape_cast %84 : vector<128xf32> to vector<1x128xf32>
    %cst_106 = arith.constant 7.812500e-03 : f32
    %86 = vector.broadcast %cst_106 : f32 to vector<1x128xf32>
    %87 = arith.mulf %85, %86 : vector<1x128xf32>
    %88 = vector.broadcast %87 : vector<1x128xf32> to vector<128x128xf32>
    %89 = arith.subf %81, %88 : vector<128x128xf32>
    %90 = arith.mulf %89, %89 : vector<128x128xf32>
    %cst_107 = arith.constant dense<0.000000e+00> : vector<128xf32>
    %91 = vector.multi_reduction <add>, %90, %cst_107 [0] : vector<128x128xf32> to vector<128xf32>
    %92 = vector.shape_cast %91 : vector<128xf32> to vector<1x128xf32>
    %cst_108 = arith.constant 7.812500e-03 : f32
    %93 = vector.broadcast %cst_108 : f32 to vector<1x128xf32>
    %94 = arith.mulf %92, %93 : vector<1x128xf32>
    %cst_109 = arith.constant 9.99999974E-6 : f32
    %95 = vector.broadcast %cst_109 : f32 to vector<1x128xf32>
    %96 = arith.addf %94, %95 : vector<1x128xf32>
    %97 = math.rsqrt %96 : vector<1x128xf32>
    %98 = vector.broadcast %97 : vector<1x128xf32> to vector<128x128xf32>
    %99 = arith.mulf %89, %98 : vector<128x128xf32>
    %100 = vector.broadcast %82 : vector<1x128xf32> to vector<128x128xf32>
    %101 = arith.mulf %99, %100 : vector<128x128xf32>
    %102 = vector.broadcast %83 : vector<1x128xf32> to vector<128x128xf32>
    %103 = arith.addf %101, %102 : vector<128x128xf32>
    %cst_110 = arith.constant 0.000000e+00 : f32
    %104 = vector.broadcast %cst_110 : f32 to vector<128x128xf32>
    %105 = arith.cmpf oge, %103, %104 : vector<128x128xf32>
    %cst_111 = arith.constant 0.00999999977 : f32
    %106 = vector.broadcast %cst_111 : f32 to vector<128x128xf32>
    %107 = arith.mulf %106, %103 : vector<128x128xf32>
    %108 = arith.select %105, %103, %107 : vector<128x128xi1>, vector<128x128xf32>
    %109 = arith.truncf %108 : vector<128x128xf32> to vector<128x128xbf16>
    %c0_112 = arith.constant 0 : index
    %c0_113 = arith.constant 0 : index
    %110 = vector.load %arg7[%c0_112, %c0_113] : memref<128x128xbf16, #tpu.memory_space<vmem>>, vector<128x128xbf16>
    %cst_114 = arith.constant dense<0.000000e+00> : vector<128x128xf32>
    %111 = tpu.matmul %109, %110, %cst_114 {dimension_numbers = #tpu.dot_dimension_numbers<[1], [0], [0], [1], [0, 0, 1, 1], [], []>} : vector<128x128xbf16>, vector<128x128xbf16>, vector<128x128xf32> -> vector<128x128xf32>
    %c0_115 = arith.constant 0 : index
    %c0_116 = arith.constant 0 : index
    %112 = vector.load %arg8[%c0_115, %c0_116] : memref<1x128xf32, #tpu.memory_space<vmem>>, vector<1x128xf32>
    %c0_117 = arith.constant 0 : index
    %c0_118 = arith.constant 0 : index
    %113 = vector.load %arg9[%c0_117, %c0_118] : memref<1x128xf32, #tpu.memory_space<vmem>>, vector<1x128xf32>
    %cst_119 = arith.constant dense<0.000000e+00> : vector<128xf32>
    %114 = vector.multi_reduction <add>, %111, %cst_119 [0] : vector<128x128xf32> to vector<128xf32>
    %115 = vector.shape_cast %114 : vector<128xf32> to vector<1x128xf32>
    %cst_120 = arith.constant 7.812500e-03 : f32
    %116 = vector.broadcast %cst_120 : f32 to vector<1x128xf32>
    %117 = arith.mulf %115, %116 : vector<1x128xf32>
    %118 = vector.broadcast %117 : vector<1x128xf32> to vector<128x128xf32>
    %119 = arith.subf %111, %118 : vector<128x128xf32>
    %120 = arith.mulf %119, %119 : vector<128x128xf32>
    %cst_121 = arith.constant dense<0.000000e+00> : vector<128xf32>
    %121 = vector.multi_reduction <add>, %120, %cst_121 [0] : vector<128x128xf32> to vector<128xf32>
    %122 = vector.shape_cast %121 : vector<128xf32> to vector<1x128xf32>
    %cst_122 = arith.constant 7.812500e-03 : f32
    %123 = vector.broadcast %cst_122 : f32 to vector<1x128xf32>
    %124 = arith.mulf %122, %123 : vector<1x128xf32>
    %cst_123 = arith.constant 9.99999974E-6 : f32
    %125 = vector.broadcast %cst_123 : f32 to vector<1x128xf32>
    %126 = arith.addf %124, %125 : vector<1x128xf32>
    %127 = math.rsqrt %126 : vector<1x128xf32>
    %128 = vector.broadcast %127 : vector<1x128xf32> to vector<128x128xf32>
    %129 = arith.mulf %119, %128 : vector<128x128xf32>
    %130 = vector.broadcast %112 : vector<1x128xf32> to vector<128x128xf32>
    %131 = arith.mulf %129, %130 : vector<128x128xf32>
    %132 = vector.broadcast %113 : vector<1x128xf32> to vector<128x128xf32>
    %133 = arith.addf %131, %132 : vector<128x128xf32>
    %134 = vector.extract_strided_slice %1 {offsets = [0, 0], sizes = [128, 128], strides = [1, 1]} : vector<512x128xf32> to vector<128x128xf32>
    %135 = arith.truncf %134 : vector<128x128xf32> to vector<128x128xbf16>
    %c0_124 = arith.constant 0 : index
    %c0_125 = arith.constant 0 : index
    %136 = vector.load %arg10[%c0_124, %c0_125] : memref<128x128xbf16, #tpu.memory_space<vmem>>, vector<128x128xbf16>
    %cst_126 = arith.constant dense<0.000000e+00> : vector<128x128xf32>
    %137 = tpu.matmul %135, %136, %cst_126 {dimension_numbers = #tpu.dot_dimension_numbers<[1], [0], [0], [1], [0, 0, 1, 1], [], []>} : vector<128x128xbf16>, vector<128x128xbf16>, vector<128x128xf32> -> vector<128x128xf32>
    %c0_127 = arith.constant 0 : index
    %c0_128 = arith.constant 0 : index
    %138 = vector.load %arg11[%c0_127, %c0_128] : memref<1x128xf32, #tpu.memory_space<vmem>>, vector<1x128xf32>
    %c0_129 = arith.constant 0 : index
    %c0_130 = arith.constant 0 : index
    %139 = vector.load %arg12[%c0_129, %c0_130] : memref<1x128xf32, #tpu.memory_space<vmem>>, vector<1x128xf32>
    %cst_131 = arith.constant dense<0.000000e+00> : vector<128xf32>
    %140 = vector.multi_reduction <add>, %137, %cst_131 [0] : vector<128x128xf32> to vector<128xf32>
    %141 = vector.shape_cast %140 : vector<128xf32> to vector<1x128xf32>
    %cst_132 = arith.constant 7.812500e-03 : f32
    %142 = vector.broadcast %cst_132 : f32 to vector<1x128xf32>
    %143 = arith.mulf %141, %142 : vector<1x128xf32>
    %144 = vector.broadcast %143 : vector<1x128xf32> to vector<128x128xf32>
    %145 = arith.subf %137, %144 : vector<128x128xf32>
    %146 = arith.mulf %145, %145 : vector<128x128xf32>
    %cst_133 = arith.constant dense<0.000000e+00> : vector<128xf32>
    %147 = vector.multi_reduction <add>, %146, %cst_133 [0] : vector<128x128xf32> to vector<128xf32>
    %148 = vector.shape_cast %147 : vector<128xf32> to vector<1x128xf32>
    %cst_134 = arith.constant 7.812500e-03 : f32
    %149 = vector.broadcast %cst_134 : f32 to vector<1x128xf32>
    %150 = arith.mulf %148, %149 : vector<1x128xf32>
    %cst_135 = arith.constant 9.99999974E-6 : f32
    %151 = vector.broadcast %cst_135 : f32 to vector<1x128xf32>
    %152 = arith.addf %150, %151 : vector<1x128xf32>
    %153 = math.rsqrt %152 : vector<1x128xf32>
    %154 = vector.broadcast %153 : vector<1x128xf32> to vector<128x128xf32>
    %155 = arith.mulf %145, %154 : vector<128x128xf32>
    %156 = vector.broadcast %138 : vector<1x128xf32> to vector<128x128xf32>
    %157 = arith.mulf %155, %156 : vector<128x128xf32>
    %158 = vector.broadcast %139 : vector<1x128xf32> to vector<128x128xf32>
    %159 = arith.addf %157, %158 : vector<128x128xf32>
    %160 = arith.addf %133, %159 : vector<128x128xf32>
    %cst_136 = arith.constant 0.000000e+00 : f32
    %161 = vector.broadcast %cst_136 : f32 to vector<128x128xf32>
    %162 = arith.cmpf oge, %160, %161 : vector<128x128xf32>
    %cst_137 = arith.constant 0.00999999977 : f32
    %163 = vector.broadcast %cst_137 : f32 to vector<128x128xf32>
    %164 = arith.mulf %163, %160 : vector<128x128xf32>
    %165 = arith.select %162, %160, %164 : vector<128x128xi1>, vector<128x128xf32>
    %c0_138 = arith.constant 0 : index
    %c0_139 = arith.constant 0 : index
    %166 = vector.load %arg13[%c0_138, %c0_139] : memref<128x128xf32, #tpu.memory_space<vmem>>, vector<128x128xf32>
    tpu.vector_store %arg13[%c0_138, %c0_139], %165 {strides = array<i32>} : memref<128x128xf32, #tpu.memory_space<vmem>>, vector<128x128xf32>,
    return
  }
}

</mosaic_0001>

<bundles_post_ra>
// kernel: bottleneck_forward.1
= control target key start
LH: loop header
LB: loop body
LE: loop exit
PB: predicated region body
PF: predicated region fallthrough
CT: control target
= control target key end

     0   :  { %vm1203_vm0 = vcmask 1040384   ;;  %vm1204_vm1 = vsmask.f32 256  ;;  %vm1748_vm3 = vcmask 1044480   ;;  %vm1749_vm4 = vsmask.f32 4354  ;;  %s11151_s1 = inlined_call_operand.vmem [shape: bf16[128,128], index: 1, kind: input, shape index: {}]   ;;  %s11152_s0 = inlined_call_operand.vmem [shape: f32[8,8,8,128], index: 0, kind: input, shape index: {}]   ;;  %s11153_s4 = inlined_call_operand.vmem [shape: bf16[3,384,128], index: 4, kind: input, shape index: {}]   ;;  %s11154_s2 = inlined_call_operand.vmem [shape: f32[1,128], index: 2, kind: input, shape index: {}]   ;;  %s11155_s3 = inlined_call_operand.vmem [shape: f32[1,128], index: 3, kind: input, shape index: {}]   ;;  %s11156_s7 = inlined_call_operand.vmem [shape: bf16[128,128], index: 7, kind: input, shape index: {}]   ;;  %s11157_s10 = inlined_call_operand.vmem [shape: bf16[128,128], index: 10, kind: input, shape index: {}]   ;;  %s11158_s5 = inlined_call_operand.vmem [shape: f32[1,128], index: 5, kind: input, shape index: {}]   ;;  %s11159_s6 = inlined_call_operand.vmem [shape: f32[1,128], index: 6, kind: input, shape index: {}]   ;;  %s11160_s8 = inlined_call_operand.vmem [shape: f32[1,128], index: 8, kind: input, shape index: {}]   ;;  %s11161_s9 = inlined_call_operand.vmem [shape: f32[1,128], index: 9, kind: input, shape index: {}]   ;;  %s11162_s11 = inlined_call_operand.vmem [shape: f32[1,128], index: 11, kind: input, shape index: {}]   ;;  %s11163_s12 = inlined_call_operand.vmem [shape: f32[1,128], index: 12, kind: input, shape index: {}]   ;;  %s11164_s13 = inlined_call_operand.vmem [shape: f32[128,128], index: 13, kind: output, shape index: {}]  }
   0x1   :  { %v6655_v0 = vld [vmem:[%s11151_s1] sm:$0xff]   ;;  %v6656_v1 = vld [vmem:[%s11151_s1 + $0x8] sm:$0xff]   ;;  %v6657_v2 = vld [vmem:[%s11151_s1 + $0x10] sm:$0xff]  }
   0x2   :  { %6318 = vmatprep.subr.bf16.mxu0 %v6655_v0  ;;  %v6658_v3 = vld [vmem:[%s11151_s1 + $0x18] sm:$0xff]   ;;  %v45_v4 = vld [vmem:[%s11152_s0] sm:$0xff]  ;;  %v46_v5 = vld [vmem:[%s11152_s0 + $0x8] sm:$0xff] }
   0x3   :  { %6319 = vmatpush3.bf16.msra.mxu0 %v6655_v0  ;;  %v6993_v6 = vpack.c.bf16 %v46_v5, %v45_v4  ;;  %v6659_v7 = vld [vmem:[%s11151_s1 + $0x20] sm:$0xff]   ;;  %v6660_v8 = vld [vmem:[%s11151_s1 + $0x28] sm:$0xff]   ;;  %v6661_v9 = vld [vmem:[%s11151_s1 + $0x30] sm:$0xff]  }
   0x4   :  { %6320 = vmatprep.subr.bf16.mxu0 %v6656_v1  ;;  %v6662_v10 = vld [vmem:[%s11151_s1 + $0x38] sm:$0xff]   ;;  %v47_v11 = vld [vmem:[%s11152_s0 + $0x10] sm:$0xff]  ;;  %v49_v13 = vld [vmem:[%s11152_s0 + $0x20] sm:$0xff] }
   0x5   :  { %11249 = vst [vmem:[#allocation3_spill] sm:$0xff] %v6993_v6  ;;  %6334 = vmatprep.mubr.bf16.mxu0 %v6993_v6  ;;  %v48_v12 = vld [vmem:[%s11152_s0 + $0x18] sm:$0xff]  ;;  %v50_v14 = vld [vmem:[%s11152_s0 + $0x28] sm:$0xff]  ;;  %v51_v17 = vld [vmem:[%s11152_s0 + $0x30] sm:$0xff] }
   0x6   :  { %v7020_v15 = vpack.c.bf16 %v48_v12, %v47_v11  ;;  %v7022_v16 = vpack.c.bf16 %v50_v14, %v49_v13  ;;  %v52_v18 = vld [vmem:[%s11152_s0 + $0x38] sm:$0xff]  ;;  %v53_v19 = vld [vmem:[%s11152_s0 + $0x40] sm:$0xff]  ;;  %v54_v20 = vld [vmem:[%s11152_s0 + $0x48] sm:$0xff] }
   0x7   :  { %6321 = vmatpush3.bf16.msra.mxu0 %v6656_v1  ;;  %v7038_v21 = vpack.c.bf16 %v52_v18, %v51_v17  ;;  %v7040_v22 = vpack.c.bf16 %v54_v20, %v53_v19  ;;  %v55_v23 = vld [vmem:[%s11152_s0 + $0x50] sm:$0xff]  ;;  %v56_v24 = vld [vmem:[%s11152_s0 + $0x58] sm:$0xff]  ;;  %v57_v25 = vld [vmem:[%s11152_s0 + $0x60] sm:$0xff] }
   0x8   :  { %6322 = vmatprep.subr.bf16.mxu0 %v6657_v2  ;;  %11250 = vst [vmem:[#allocation4_spill] sm:$0xff] %v7020_v15  ;;  %11251 = vst [vmem:[#allocation5_spill] sm:$0xff] %v7022_v16  ;;  %v58_v26 = vld [vmem:[%s11152_s0 + $0x68] sm:$0xff]  ;;  %v7056_v27 = vpack.c.bf16 %v56_v24, %v55_v23  ;;  %v59_v29 = vld [vmem:[%s11152_s0 + $0x70] sm:$0xff] }
   0x9   :  { %11252 = vst [vmem:[#allocation6_spill] sm:$0xff] %v7038_v21  ;;  %11253 = vst [vmem:[#allocation7_spill] sm:$0xff] %v7040_v22  ;;  %v7058_v28 = vpack.c.bf16 %v58_v26, %v57_v25  ;;  %v60_v30 = vld [vmem:[%s11152_s0 + $0x78] sm:$0xff]  ;;  %v61_v31 = vld [vmem:[%s11152_s0 + $0x80] sm:$0xff] }
   0xa   :  { %11254 = vst [vmem:[#allocation8_spill] sm:$0xff] %v7056_v27  ;;  %v62_v32 = vld [vmem:[%s11152_s0 + $0x88] sm:$0xff]  ;;  %v7074_v33 = vpack.c.bf16 %v60_v30, %v59_v29  ;;  %v63_v35 = vld [vmem:[%s11152_s0 + $0x90] sm:$0xff]  ;;  %v64_v36 = vld [vmem:[%s11152_s0 + $0x98] sm:$0xff] }
   0xb   :  { %6323 = vmatpush3.bf16.msra.mxu0 %v6657_v2  ;;  %11255 = vst [vmem:[#allocation9_spill] sm:$0xff] %v7058_v28  ;;  %v117_v34 = vpack.c.bf16 %v62_v32, %v61_v31  ;;  %v65_v37 = vld [vmem:[%s11152_s0 + $0xa0] sm:$0xff]  ;;  %v66_v38 = vld [vmem:[%s11152_s0 + $0xa8] sm:$0xff]  ;;  %v118_v39 = vpack.c.bf16 %v64_v36, %v63_v35  ;;  %v67_v41 = vld [vmem:[%s11152_s0 + $0xb0] sm:$0xff] }
   0xc   :  { %6324 = vmatprep.subr.bf16.mxu0 %v6658_v3  ;;  %11256 = vst [vmem:[#allocation10_spill] sm:$0xff] %v7074_v33  ;;  %v119_v40 = vpack.c.bf16 %v66_v38, %v65_v37  ;;  %v68_v42 = vld [vmem:[%s11152_s0 + $0xb8] sm:$0xff]  ;;  %v69_v43 = vld [vmem:[%s11152_s0 + $0xc0] sm:$0xff]  ;;  %v70_v44 = vld [vmem:[%s11152_s0 + $0xc8] sm:$0xff] }
   0xd   :  { %v120_v45 = vpack.c.bf16 %v68_v42, %v67_v41  ;;  %v121_v46 = vpack.c.bf16 %v70_v44, %v69_v43  ;;  %v71_v47 = vld [vmem:[%s11152_s0 + $0xd0] sm:$0xff]  ;;  %v72_v48 = vld [vmem:[%s11152_s0 + $0xd8] sm:$0xff]  ;;  %v73_v49 = vld [vmem:[%s11152_s0 + $0xe0] sm:$0xff] }
   0xe   :  { %v74_v50 = vld [vmem:[%s11152_s0 + $0xe8] sm:$0xff]  ;;  %v122_v51 = vpack.c.bf16 %v72_v48, %v71_v47  ;;  %v75_v53 = vld [vmem:[%s11152_s0 + $0xf0] sm:$0xff]  ;;  %v76_v54 = vld [vmem:[%s11152_s0 + $0xf8] sm:$0xff] }
   0xf   :  { %6325 = vmatpush3.bf16.msra.mxu0 %v6658_v3  ;;  %v123_v52 = vpack.c.bf16 %v74_v50, %v73_v49  ;;  %v77_v55 = vld [vmem:[%s11152_s0 + $0x100] sm:$0xff]  ;;  %v78_v56 = vld [vmem:[%s11152_s0 + $0x108] sm:$0xff]  ;;  %v124_v57 = vpack.c.bf16 %v76_v54, %v75_v53  ;;  %v79_v59 = vld [vmem:[%s11152_s0 + $0x110] sm:$0xff]  ;;  %v11257_v49 = vmov 0 }
  0x10   :  { %6326 = vmatprep.subr.bf16.mxu0 %v6659_v7  ;;  %v125_v58 = vpack.c.bf16 %v78_v56, %v77_v55  ;;  %v80_v60 = vld [vmem:[%s11152_s0 + $0x118] sm:$0xff]  ;;  %v81_v61 = vld [vmem:[%s11152_s0 + $0x120] sm:$0xff]  ;;  %v82_v62 = vld [vmem:[%s11152_s0 + $0x128] sm:$0xff] }
  0x11   :  { %v126_v63 = vpack.c.bf16 %v80_v60, %v79_v59  ;;  %v127_v0 = vpack.c.bf16 %v82_v62, %v81_v61  ;;  %v83_v1 = vld [vmem:[%s11152_s0 + $0x130] sm:$0xff]  ;;  %v84_v2 = vld [vmem:[%s11152_s0 + $0x138] sm:$0xff]  ;;  %v85_v3 = vld [vmem:[%s11152_s0 + $0x140] sm:$0xff] }
  0x12   :  { %v86_v4 = vld [vmem:[%s11152_s0 + $0x148] sm:$0xff]  ;;  %v128_v5 = vpack.c.bf16 %v84_v2, %v83_v1  ;;  %v91_v14 = vld [vmem:[%s11152_s0 + $0x170] sm:$0xff]  ;;  %v92_v17 = vld [vmem:[%s11152_s0 + $0x178] sm:$0xff] }
  0x13   :  { %6327 = vmatpush3.bf16.msra.mxu0 %v6659_v7  ;;  %v129_v7 = vpack.c.bf16 %v86_v4, %v85_v3  ;;  %v90_v11 = vld [vmem:[%s11152_s0 + $0x168] sm:$0xff]  ;;  %v93_v18 = vld [vmem:[%s11152_s0 + $0x180] sm:$0xff]  ;;  %v132_v20 = vpack.c.bf16 %v92_v17, %v91_v14  ;;  %v95_v24 = vld [vmem:[%s11152_s0 + $0x190] sm:$0xff] }
  0x14   :  { %6328 = vmatprep.subr.bf16.mxu0 %v6660_v8  ;;  %v94_v19 = vld [vmem:[%s11152_s0 + $0x188] sm:$0xff]  ;;  %v96_v25 = vld [vmem:[%s11152_s0 + $0x198] sm:$0xff]  ;;  %v97_v26 = vld [vmem:[%s11152_s0 + $0x1a0] sm:$0xff] }
  0x15   :  { %v133_v23 = vpack.c.bf16 %v94_v19, %v93_v18  ;;  %v98_v29 = vld [vmem:[%s11152_s0 + $0x1a8] sm:$0xff]  ;;  %v134_v30 = vpack.c.bf16 %v96_v25, %v95_v24  ;;  %v99_v32 = vld [vmem:[%s11152_s0 + $0x1b0] sm:$0xff]  ;;  %v101_v35 = vld [vmem:[%s11152_s0 + $0x1c0] sm:$0xff] }
  0x16   :  { %v135_v31 = vpack.c.bf16 %v98_v29, %v97_v26  ;;  %v102_v36 = vld [vmem:[%s11152_s0 + $0x1c8] sm:$0xff]  ;;  %v105_v41 = vld [vmem:[%s11152_s0 + $0x1e0] sm:$0xff]  ;;  %v1267_v47 = vld [vmem:[#allocation2 + $0x130] sm:$0x1] }
  0x17   :  { %6329 = vmatpush3.bf16.msra.mxu0 %v6660_v8  ;;  %v87_v8 = vld [vmem:[%s11152_s0 + $0x150] sm:$0xff]  ;;  %v137_v38 = vpack.c.bf16 %v102_v36, %v101_v35  ;;  %v106_v42 = vld [vmem:[%s11152_s0 + $0x1e8] sm:$0xff]  ;;  %vm7215_vm2 = vmand %vm1203_vm0, %vm1204_vm1 }
  0x18   :  { %6330 = vmatprep.subr.bf16.mxu0 %v6661_v9  ;;  %v139_v44 = vpack.c.bf16 %v106_v42, %v105_v41  ;;  %v11258_v49 = vsel %vm7215_vm2, 4294967295, %v11257_v49  ;;  %v1268_v50 = vsel %vm7215_vm2, 0, %v1267_v47  ;;  %v1264_v55 = vld [vmem:[#allocation2 + $0x128] sm:$0x1]  ;;  %v1273_v59 = vld [vmem:[#allocation2 + $0x140] sm:$0x1]  ;;  %vm8087_vm6 = vmand %vm1748_vm3, %vm1749_vm4 }
  0x19   :  { %11259 = vst [vmem:[#allocation11_spill] sm:$0xff] %v11258_v49  ;;  %1269 = vst [vmem:[#allocation2 + $0x130] sm:$0x1] %v1268_v50  ;;  %v1265_v56 = vsel %vm7215_vm2, 0, %v1264_v55  ;;  %v1282_v60 = vld [vmem:[#allocation2 + $0x158] sm:$0x1] }
  0x1a   :  { %1266 = vst [vmem:[#allocation2 + $0x128] sm:$0x1] %v1265_v56  ;;  %v1274_v61 = vsel %vm7215_vm2, 0, %v1273_v59  ;;  %v1283_v62 = vsel %vm7215_vm2, 0, %v1282_v60  ;;  %v1294_v1 = vld [vmem:[#allocation2 + $0x178] sm:$0x1] }
  0x1b   :  { %6331 = vmatpush3.bf16.msra.mxu0 %v6661_v9  ;;  %v88_v9 = vld [vmem:[%s11152_s0 + $0x158] sm:$0xff]  ;;  %1275 = vst [vmem:[#allocation2 + $0x140] sm:$0x1] %v1274_v61  ;;  %1284 = vst [vmem:[#allocation2 + $0x158] sm:$0x1] %v1283_v62  ;;  %v1295_v2 = vsel %vm7215_vm2, 0, %v1294_v1 }
  0x1c   :  { %6332 = vmatprep.subr.bf16.mxu0 %v6662_v10  ;;  %v130_v12 = vpack.c.bf16 %v88_v9, %v87_v8  ;;  %1296 = vst [vmem:[#allocation2 + $0x178] sm:$0x1] %v1295_v2  ;;  %v1288_v3 = vld [vmem:[#allocation2 + $0x168] sm:$0x1]  ;;  %v1297_v4 = vld [vmem:[#allocation2 + $0x180] sm:$0x1] }
  0x1d   :  { %v1291_v8 = vld [vmem:[#allocation2 + $0x170] sm:$0x1]  ;;  %v1209_v24 = vld [vmem:[#allocation2 + $0x8] sm:$0x1]  ;;  %v1218_v25 = vld [vmem:[#allocation2 + $0x20] sm:$0x1] }
  0x1e   :  { %v1292_v9 = vsel %vm7215_vm2, 0, %v1291_v8  ;;  %v1303_v18 = vld [vmem:[#allocation2 + $0x190] sm:$0x1]  ;;  %v1210_v26 = vsel %vm7215_vm2, 0, %v1209_v24  ;;  %v1219_v29 = vsel %vm7215_vm2, 0, %v1218_v25 }
  0x1f   :  { %6333 = vmatpush3.bf16.msra.mxu0 %v6662_v10  ;;  %v89_v10 = vld [vmem:[%s11152_s0 + $0x160] sm:$0xff]  ;;  %1293 = vst [vmem:[#allocation2 + $0x170] sm:$0x1] %v1292_v9  ;;  %v1304_v19 = vsel %vm7215_vm2, 0, %v1303_v18  ;;  %1211 = vst [vmem:[#allocation2 + $0x8] sm:$0x1] %v1210_v26 }
  0x20   :  { %v131_v13 = vpack.c.bf16 %v90_v11, %v89_v10  ;;  %v1306_v10 = vld [vmem:[#allocation2 + $0x198] sm:$0x1]  ;;  %1305 = vst [vmem:[#allocation2 + $0x190] sm:$0x1] %v1304_v19  ;;  %1220 = vst [vmem:[#allocation2 + $0x20] sm:$0x1] %v1219_v29 }
  0x21   :  { %v1307_v11 = vsel %vm7215_vm2, 0, %v1306_v10  ;;  %v1221_v35 = vld [vmem:[#allocation2 + $0x28] sm:$0x1]  ;;  %v1230_v36 = vld [vmem:[#allocation2 + $0x40] sm:$0x1] }
  0x22   :  { %6335 = vmatmul.mubr.bf16.vlgmr.msra.gmra.mrb[0].mxu0 %v7020_v15  ;;  %1308 = vst [vmem:[#allocation2 + $0x198] sm:$0x1] %v1307_v11  ;;  %v1242_v41 = vld [vmem:[#allocation2 + $0x60] sm:$0x1]  ;;  %v1239_v47 = vld [vmem:[#allocation2 + $0x58] sm:$0x1] }
  0x23   :  { %6338 = vmatprep.mubr.bf16.mxu0 %v7022_v16  ;;  %v1243_v42 = vsel %vm7215_vm2, 0, %v1242_v41  ;;  %v1254_v50 = vld [vmem:[#allocation2 + $0x80] sm:$0x1] }
  0x24   :  { %1244 = vst [vmem:[#allocation2 + $0x60] sm:$0x1] %v1243_v42 }
  0x2a   :  { %6339 = vmatmul.mubr.bf16.gmra.mrb[4].mxu0 %v7038_v21 }
  0x2b   :  { %6342 = vmatprep.mubr.bf16.mxu0 %v7040_v22 }
  0x32   :  { %6343 = vmatmul.mubr.bf16.gmra.mrb[8].mxu0 %v7056_v27 }
  0x33   :  { %6346 = vmatprep.mubr.bf16.mxu0 %v7058_v28 }
  0x3a   :  { %6347 = vmatmul.mubr.bf16.gmra.mrb[12].mxu0 %v7074_v33 }
  0x3b   :  { %6350 = vmatprep.mubr.bf16.mxu0 %v117_v34  ;;  %v100_v34 = vld [vmem:[%s11152_s0 + $0x1b8] sm:$0xff] }
  0x3c   :  { %v136_v37 = vpack.c.bf16 %v100_v34, %v99_v32  ;;  %v1227_v32 = vld [vmem:[#allocation2 + $0x38] sm:$0x1] }
  0x3d   :  { %v1228_v34 = vsel %vm7215_vm2, 0, %v1227_v32 }
  0x3e   :  { %1229 = vst [vmem:[#allocation2 + $0x38] sm:$0x1] %v1228_v34 }
  0x42   :  { %6351 = vmatmul.mubr.bf16.gmra.mrb[16].mxu0 %v118_v39  ;;  %v103_v39 = vld [vmem:[%s11152_s0 + $0x1d0] sm:$0xff] }
  0x43   :  { %6354 = vmatprep.mubr.bf16.mxu0 %v119_v40  ;;  %v104_v40 = vld [vmem:[%s11152_s0 + $0x1d8] sm:$0xff] }
  0x44   :  { %v138_v43 = vpack.c.bf16 %v104_v40, %v103_v39  ;;  %v1224_v39 = vld [vmem:[#allocation2 + $0x30] sm:$0x1] }
  0x45   :  { %v1225_v40 = vsel %vm7215_vm2, 0, %v1224_v39 }
  0x46   :  { %1226 = vst [vmem:[#allocation2 + $0x30] sm:$0x1] %v1225_v40 }
  0x4a   :  { %6355 = vmatmul.mubr.bf16.gmra.mrb[20].mxu0 %v120_v45  ;;  %v107_v45 = vld [vmem:[%s11152_s0 + $0x1f0] sm:$0xff] }
  0x4b   :  { %6358 = vmatprep.mubr.bf16.mxu0 %v121_v46  ;;  %v108_v46 = vld [vmem:[%s11152_s0 + $0x1f8] sm:$0xff] }
  0x4c   :  { %v140_v48 = vpack.c.bf16 %v108_v46, %v107_v45 }
  0x52   :  { %6359 = vmatmul.mubr.bf16.gmra.mrb[24].mxu0 %v122_v51  ;;  %v1261_v51 = vld [vmem:[#allocation2 + $0x120] sm:$0x1] }
  0x53   :  { %6362 = vmatprep.mubr.bf16.mxu0 %v123_v52  ;;  %v1270_v52 = vld [vmem:[#allocation2 + $0x138] sm:$0x1]  ;;  %v1262_v53 = vsel %vm7215_vm2, 0, %v1261_v51  ;;  %v1255_v51 = vsel %vm7215_vm2, 0, %v1254_v50 }
  0x54   :  { %v1271_v54 = vsel %vm7215_vm2, 0, %v1270_v52  ;;  %1263 = vst [vmem:[#allocation2 + $0x120] sm:$0x1] %v1262_v53  ;;  %1256 = vst [vmem:[#allocation2 + $0x80] sm:$0x1] %v1255_v51 }
  0x55   :  { %1272 = vst [vmem:[#allocation2 + $0x138] sm:$0x1] %v1271_v54  ;;  %v1248_v52 = vld [vmem:[#allocation2 + $0x70] sm:$0x1]  ;;  %v1257_v53 = vld [vmem:[#allocation2 + $0x88] sm:$0x1] }
  0x56   :  { %v1249_v54 = vsel %vm7215_vm2, 0, %v1248_v52  ;;  %v1258_v55 = vsel %vm7215_vm2, 0, %v1257_v53 }
  0x57   :  { %1250 = vst [vmem:[#allocation2 + $0x70] sm:$0x1] %v1249_v54  ;;  %1259 = vst [vmem:[#allocation2 + $0x88] sm:$0x1] %v1258_v55 }
  0x5a   :  { %6363 = vmatmul.mubr.bf16.gmra.mrb[28].mxu0 %v124_v57  ;;  %v1279_v57 = vld [vmem:[#allocation2 + $0x150] sm:$0x1] }
  0x5b   :  { %6366 = vmatprep.mubr.bf16.mxu0 %v125_v58  ;;  %v1280_v58 = vsel %vm7215_vm2, 0, %v1279_v57 }
  0x5c   :  { %1281 = vst [vmem:[#allocation2 + $0x150] sm:$0x1] %v1280_v58 }
  0x62   :  { %6367 = vmatmul.mubr.bf16.gmra.mrb[32].mxu0 %v126_v63  ;;  %v1276_v63 = vld [vmem:[#allocation2 + $0x148] sm:$0x1] }
  0x63   :  { %6370 = vmatprep.mubr.bf16.mxu0 %v127_v0  ;;  %v1277_v0 = vsel %vm7215_vm2, 0, %v1276_v63 }
  0x64   :  { %1278 = vst [vmem:[#allocation2 + $0x148] sm:$0x1] %v1277_v0 }
  0x6a   :  { %6371 = vmatmul.mubr.bf16.gmra.mrb[36].mxu0 %v128_v5  ;;  %v1289_v5 = vsel %vm7215_vm2, 0, %v1288_v3 }
  0x6b   :  { %6374 = vmatprep.mubr.bf16.mxu0 %v129_v7  ;;  %v1298_v7 = vsel %vm7215_vm2, 0, %v1297_v4  ;;  %1290 = vst [vmem:[#allocation2 + $0x168] sm:$0x1] %v1289_v5 }
  0x6c   :  { %1299 = vst [vmem:[#allocation2 + $0x180] sm:$0x1] %v1298_v7 }
  0x72   :  { %6375 = vmatmul.mubr.bf16.gmra.mrb[40].mxu0 %v130_v12  ;;  %v1300_v12 = vld [vmem:[#allocation2 + $0x188] sm:$0x1] }
  0x73   :  { %6378 = vmatprep.mubr.bf16.mxu0 %v131_v13  ;;  %v1309_v13 = vld [vmem:[#allocation2 + $0x1a0] sm:$0x1]  ;;  %v1301_v14 = vsel %vm7215_vm2, 0, %v1300_v12 }
  0x74   :  { %v1310_v17 = vsel %vm7215_vm2, 0, %v1309_v13  ;;  %1302 = vst [vmem:[#allocation2 + $0x188] sm:$0x1] %v1301_v14 }
  0x75   :  { %1311 = vst [vmem:[#allocation2 + $0x1a0] sm:$0x1] %v1310_v17 }
  0x7a   :  { %6379 = vmatmul.mubr.bf16.gmra.mrb[44].mxu0 %v132_v20  ;;  %v1215_v20 = vld [vmem:[#allocation2 + $0x18] sm:$0x1] }
  0x7b   :  { %6382 = vmatprep.mubr.bf16.mxu0 %v133_v23  ;;  %v1216_v23 = vsel %vm7215_vm2, 0, %v1215_v20 }
  0x7c   :  { %1217 = vst [vmem:[#allocation2 + $0x18] sm:$0x1] %v1216_v23 }
  0x82   :  { %6383 = vmatmul.mubr.bf16.gmra.mrb[48].mxu0 %v134_v30  ;;  %v1212_v30 = vld [vmem:[#allocation2 + $0x10] sm:$0x1] }
  0x83   :  { %6386 = vmatprep.mubr.bf16.mxu0 %v135_v31  ;;  %v1213_v31 = vsel %vm7215_vm2, 0, %v1212_v30 }
  0x84   :  { %1214 = vst [vmem:[#allocation2 + $0x10] sm:$0x1] %v1213_v31 }
  0x8a   :  { %6387 = vmatmul.mubr.bf16.gmra.mrb[52].mxu0 %v136_v37  ;;  %v1222_v37 = vsel %vm7215_vm2, 0, %v1221_v35 }
  0x8b   :  { %6390 = vmatprep.mubr.bf16.mxu0 %v137_v38  ;;  %v1231_v38 = vsel %vm7215_vm2, 0, %v1230_v36  ;;  %1223 = vst [vmem:[#allocation2 + $0x28] sm:$0x1] %v1222_v37 }
  0x8c   :  { %1232 = vst [vmem:[#allocation2 + $0x40] sm:$0x1] %v1231_v38 }
  0x92   :  { %6391 = vmatmul.mubr.bf16.gmra.mrb[56].mxu0 %v138_v43  ;;  %v1236_v43 = vld [vmem:[#allocation2 + $0x50] sm:$0x1] }
  0x93   :  { %6394 = vmatprep.mubr.bf16.mxu0 %v139_v44  ;;  %v1245_v44 = vld [vmem:[#allocation2 + $0x68] sm:$0x1]  ;;  %v1237_v45 = vsel %vm7215_vm2, 0, %v1236_v43 }
  0x94   :  { %v1246_v46 = vsel %vm7215_vm2, 0, %v1245_v44  ;;  %1238 = vst [vmem:[#allocation2 + $0x50] sm:$0x1] %v1237_v45 }
  0x95   :  { %1247 = vst [vmem:[#allocation2 + $0x68] sm:$0x1] %v1246_v46 }
  0x9a   :  { %6395 = vmatmul.mubr.bf16.gmra.mrb[60].mxu0 %v140_v48  ;;  %v1240_v48 = vsel %vm7215_vm2, 0, %v1239_v47 }
  0x9b   :  { %1241 = vst [vmem:[#allocation2 + $0x58] sm:$0x1] %v1240_v48 }
  0xf5   :  { %v7281_v56 = vpop.f32.mrb[0].mxu0 }
  0xf6   :  { %v7283_v57 = vpop.f32.mrb[1].mxu0 }
  0xf7   :  { %v7285_v58 = vpop.f32.mrb[2].mxu0 }
  0xf8   :  { %v7287_v59 = vpop.f32.mrb[3].mxu0 }
  0xf9   :  { %v496_v60 = vadd.f32 %v7287_v59, %v7283_v57 }
  0xfb   :  { %v497_v61 = vadd.f32 %v7281_v56, %v496_v60 }
  0xfd   :  { %v7292_v62 = vpop.f32.mrb[4].mxu0  ;;  %v498_v63 = vadd.f32 %v7285_v58, %v497_v61 }
  0xfe   :  { %v7295_v0 = vpop.f32.mrb[5].mxu0 }
  0xff   :  { %v499_v1 = vadd.f32 %v498_v63, %v7295_v0  ;;  %v7298_v2 = vpop.f32.mrb[6].mxu0 }
 0x100   :  { %v7300_v3 = vpop.f32.mrb[7].mxu0 }
 0x101   :  { %v500_v4 = vadd.f32 %v499_v1, %v7300_v3 }
 0x103   :  { %v501_v5 = vadd.f32 %v7292_v62, %v500_v4 }
 0x105   :  { %v7304_v7 = vpop.f32.mrb[8].mxu0  ;;  %v502_v8 = vadd.f32 %v7298_v2, %v501_v5 }
 0x106   :  { %v7307_v9 = vpop.f32.mrb[9].mxu0 }
 0x107   :  { %v503_v10 = vadd.f32 %v502_v8, %v7307_v9  ;;  %v7310_v11 = vpop.f32.mrb[10].mxu0 }
 0x108   :  { %v7312_v12 = vpop.f32.mrb[11].mxu0 }
 0x109   :  { %v504_v13 = vadd.f32 %v503_v10, %v7312_v12 }
 0x10b   :  { %v505_v14 = vadd.f32 %v7304_v7, %v504_v13 }
 0x10d   :  { %v7316_v17 = vpop.f32.mrb[12].mxu0  ;;  %v506_v18 = vadd.f32 %v7310_v11, %v505_v14 }
 0x10e   :  { %v7319_v19 = vpop.f32.mrb[13].mxu0 }
 0x10f   :  { %v507_v20 = vadd.f32 %v506_v18, %v7319_v19  ;;  %v7322_v23 = vpop.f32.mrb[14].mxu0 }
 0x110   :  { %v7324_v24 = vpop.f32.mrb[15].mxu0 }
 0x111   :  { %v508_v25 = vadd.f32 %v507_v20, %v7324_v24 }
 0x113   :  { %v509_v26 = vadd.f32 %v7316_v17, %v508_v25 }
 0x115   :  { %v7328_v29 = vpop.f32.mrb[16].mxu0  ;;  %v510_v30 = vadd.f32 %v7322_v23, %v509_v26 }
 0x116   :  { %v7331_v31 = vpop.f32.mrb[17].mxu0 }
 0x117   :  { %v511_v32 = vadd.f32 %v510_v30, %v7331_v31  ;;  %v7334_v34 = vpop.f32.mrb[18].mxu0 }
 0x118   :  { %v7336_v35 = vpop.f32.mrb[19].mxu0 }
 0x119   :  { %v512_v36 = vadd.f32 %v511_v32, %v7336_v35 }
 0x11b   :  { %v513_v37 = vadd.f32 %v7328_v29, %v512_v36 }
 0x11d   :  { %v7340_v38 = vpop.f32.mrb[20].mxu0  ;;  %v514_v39 = vadd.f32 %v7334_v34, %v513_v37 }
 0x11e   :  { %v7343_v40 = vpop.f32.mrb[21].mxu0 }
 0x11f   :  { %v515_v41 = vadd.f32 %v514_v39, %v7343_v40  ;;  %v7346_v42 = vpop.f32.mrb[22].mxu0 }
 0x120   :  { %v7348_v43 = vpop.f32.mrb[23].mxu0 }
 0x121   :  { %v516_v44 = vadd.f32 %v515_v41, %v7348_v43 }
 0x123   :  { %v517_v45 = vadd.f32 %v7340_v38, %v516_v44 }
 0x125   :  { %v7352_v46 = vpop.f32.mrb[24].mxu0  ;;  %v518_v47 = vadd.f32 %v7346_v42, %v517_v45 }
 0x126   :  { %v7355_v48 = vpop.f32.mrb[25].mxu0 }
 0x127   :  { %v519_v50 = vadd.f32 %v518_v47, %v7355_v48  ;;  %v7358_v51 = vpop.f32.mrb[26].mxu0 }
 0x128   :  { %v7360_v52 = vpop.f32.mrb[27].mxu0 }
 0x129   :  { %v520_v53 = vadd.f32 %v519_v50, %v7360_v52 }
 0x12b   :  { %v521_v54 = vadd.f32 %v7352_v46, %v520_v53 }
 0x12d   :  { %v7364_v55 = vpop.f32.mrb[28].mxu0  ;;  %v522_v60 = vadd.f32 %v7358_v51, %v521_v54 }
 0x12e   :  { %v7367_v61 = vpop.f32.mrb[29].mxu0 }
 0x12f   :  { %v523_v63 = vadd.f32 %v522_v60, %v7367_v61  ;;  %v7370_v1 = vpop.f32.mrb[30].mxu0 }
 0x130   :  { %v7372_v4 = vpop.f32.mrb[31].mxu0 }
 0x131   :  { %v524_v5 = vadd.f32 %v523_v63, %v7372_v4 }
 0x133   :  { %v525_v8 = vadd.f32 %v7364_v55, %v524_v5 }
 0x135   :  { %v7376_v10 = vpop.f32.mrb[32].mxu0  ;;  %v526_v13 = vadd.f32 %v7370_v1, %v525_v8 }
 0x136   :  { %v7379_v14 = vpop.f32.mrb[33].mxu0 }
 0x137   :  { %v527_v18 = vadd.f32 %v526_v13, %v7379_v14  ;;  %v7382_v20 = vpop.f32.mrb[34].mxu0 }
 0x138   :  { %v7384_v25 = vpop.f32.mrb[35].mxu0 }
 0x139   :  { %v528_v26 = vadd.f32 %v527_v18, %v7384_v25 }
 0x13b   :  { %v529_v30 = vadd.f32 %v7376_v10, %v528_v26 }
 0x13d   :  { %v7388_v32 = vpop.f32.mrb[36].mxu0  ;;  %v530_v36 = vadd.f32 %v7382_v20, %v529_v30 }
 0x13e   :  { %v7391_v37 = vpop.f32.mrb[37].mxu0 }
 0x13f   :  { %v531_v39 = vadd.f32 %v530_v36, %v7391_v37  ;;  %v7394_v41 = vpop.f32.mrb[38].mxu0 }
 0x140   :  { %v7396_v44 = vpop.f32.mrb[39].mxu0 }
 0x141   :  { %v532_v45 = vadd.f32 %v531_v39, %v7396_v44 }
 0x143   :  { %v533_v47 = vadd.f32 %v7388_v32, %v532_v45 }
 0x145   :  { %v7400_v50 = vpop.f32.mrb[40].mxu0  ;;  %v534_v53 = vadd.f32 %v7394_v41, %v533_v47 }
 0x146   :  { %v7403_v54 = vpop.f32.mrb[41].mxu0 }
 0x147   :  { %v535_v60 = vadd.f32 %v534_v53, %v7403_v54  ;;  %v7406_v63 = vpop.f32.mrb[42].mxu0 }
 0x148   :  { %v7408_v5 = vpop.f32.mrb[43].mxu0 }
 0x149   :  { %v536_v8 = vadd.f32 %v535_v60, %v7408_v5 }
 0x14b   :  { %v537_v13 = vadd.f32 %v7400_v50, %v536_v8 }
 0x14d   :  { %v7412_v18 = vpop.f32.mrb[44].mxu0  ;;  %v538_v26 = vadd.f32 %v7406_v63, %v537_v13 }
 0x14e   :  { %v7415_v30 = vpop.f32.mrb[45].mxu0 }
 0x14f   :  { %v539_v36 = vadd.f32 %v538_v26, %v7415_v30  ;;  %v7418_v39 = vpop.f32.mrb[46].mxu0 }
 0x150   :  { %v7420_v45 = vpop.f32.mrb[47].mxu0 }
 0x151   :  { %v540_v47 = vadd.f32 %v539_v36, %v7420_v45 }
 0x153   :  { %v541_v53 = vadd.f32 %v7412_v18, %v540_v47 }
 0x155   :  { %v7424_v21 = vpop.f32.mrb[48].mxu0  ;;  %v542_v60 = vadd.f32 %v7418_v39, %v541_v53 }
 0x156   :  { %11260 = vst [vmem:[#allocation12_spill] sm:$0xff] %v7424_v21  ;;  %v7427_v8 = vpop.f32.mrb[49].mxu0 }
 0x157   :  { %11261 = vst [vmem:[#allocation13_spill] sm:$0xff] %v7427_v8  ;;  %v543_v13 = vadd.f32 %v542_v60, %v7427_v8  ;;  %v7430_v16 = vpop.f32.mrb[50].mxu0 }
 0x158   :  { %11262 = vst [vmem:[#allocation14_spill] sm:$0xff] %v7430_v16  ;;  %v7432_v15 = vpop.f32.mrb[51].mxu0 }
 0x159   :  { %11263 = vst [vmem:[#allocation15_spill] sm:$0xff] %v7432_v15  ;;  %v544_v26 = vadd.f32 %v543_v13, %v7432_v15 }
 0x15b   :  { %v545_v6 = vadd.f32 %v7424_v21, %v544_v26 }
 0x15d   :  { %v7436_v33 = vpop.f32.mrb[52].mxu0  ;;  %v546_v36 = vadd.f32 %v7430_v16, %v545_v6 }
 0x15e   :  { %11264 = vst [vmem:[#allocation16_spill] sm:$0xff] %v7436_v33  ;;  %v7439_v47 = vpop.f32.mrb[53].mxu0 }
 0x15f   :  { %11265 = vst [vmem:[#allocation17_spill] sm:$0xff] %v7439_v47  ;;  %v547_v53 = vadd.f32 %v546_v36, %v7439_v47  ;;  %v7442_v28 = vpop.f32.mrb[54].mxu0 }
 0x160   :  { %11266 = vst [vmem:[#allocation18_spill] sm:$0xff] %v7442_v28  ;;  %v7444_v27 = vpop.f32.mrb[55].mxu0 }
 0x161   :  { %11267 = vst [vmem:[#allocation19_spill] sm:$0xff] %v7444_v27  ;;  %v548_v60 = vadd.f32 %v547_v53, %v7444_v27 }
 0x163   :  { %v549_v22 = vadd.f32 %v7436_v33, %v548_v60 }
 0x165   :  { %v7448_v49 = vpop.f32.mrb[56].mxu0  ;;  %v550_v13 = vadd.f32 %v7442_v28, %v549_v22 }
 0x166   :  { %11268 = vst [vmem:[#allocation20_spill] sm:$0xff] %v7448_v49  ;;  %v7451_v26 = vpop.f32.mrb[57].mxu0 }
 0x167   :  { %11269 = vst [vmem:[#allocation21_spill] sm:$0xff] %v7451_v26  ;;  %v551_v6 = vadd.f32 %v550_v13, %v7451_v26  ;;  %v7454_v16 = vpop.f32.mrb[58].mxu0 }
 0x168   :  { %11270 = vst [vmem:[#allocation22_spill] sm:$0xff] %v7454_v16  ;;  %v7456_v21 = vpop.f32.mrb[59].mxu0 }
 0x169   :  { %11271 = vst [vmem:[#allocation23_spill] sm:$0xff] %v7456_v21  ;;  %v552_v36 = vadd.f32 %v551_v6, %v7456_v21 }
 0x16b   :  { %v553_v47 = vadd.f32 %v7448_v49, %v552_v36 }
 0x16d   :  { %v7460_v15 = vpop.f32.mrb[60].mxu0  ;;  %v554_v53 = vadd.f32 %v7454_v16, %v553_v47 }
 0x16e   :  { %v7463_v60 = vpop.f32.mrb[61].mxu0 }
 0x16f   :  { %11272 = vst [vmem:[#allocation24_spill] sm:$0xff] %v7463_v60  ;;  %v555_v22 = vadd.f32 %v554_v53, %v7463_v60  ;;  %v7466_v28 = vpop.f32.mrb[62].mxu0 }
 0x170   :  { %v7468_v33 = vpop.f32.mrb[63].mxu0 }
 0x171   :  { %v556_v13 = vadd.f32 %v555_v22, %v7468_v33 }
 0x173   :  { %v557_v26 = vadd.f32 %v7460_v15, %v556_v13  ;;  %v11286_v13 = vld [vmem:[#allocation14_spill] sm:$0xff] }
 0x175   :  { %v558_v6 = vadd.f32 %v7466_v28, %v557_v26  ;;  %v11284_v26 = vld [vmem:[#allocation12_spill] sm:$0xff] }
 0x177   :  { %v559_v21 = vrot.slane %v558_v6, 4 }
 0x179   :  { %v560_v36 = vadd.f32 %v559_v21, %v558_v6  ;;  %v11288_v6 = vld [vmem:[#allocation17_spill] sm:$0xff] }
 0x17b   :  { %v561_v49 = vrot.slane %v560_v36, 2 }
 0x17d   :  { %v562_v27 = vadd.f32 %v561_v49, %v560_v36  ;;  %v11290_v36 = vld [vmem:[#allocation19_spill] sm:$0xff] }
 0x17f   :  { %v563_v8 = vrot.slane %v562_v27, 1 }
 0x181   :  { %v564_v47 = vadd.f32 %v563_v8, %v562_v27  ;;  %v11282_v8 = vld [vmem:[#allocation15_spill] sm:$0xff] }
 0x183   :  { %v7473_v16 = vmul.f32 0.001953125, %v564_v47 }
 0x185   :  { %v7477_v53 = vsub.f32 %v7283_v57, %v7473_v16  ;;  %v7481_v60 = vsub.f32 %v7287_v59, %v7473_v16  ;;  %v7485_v22 = vsub.f32 %v7281_v56, %v7473_v16  ;;  %v7489_v21 = vsub.f32 %v7285_v58, %v7473_v16 }
 0x186   :  { %v7493_v27 = vsub.f32 %v7295_v0, %v7473_v16  ;;  %v7497_v49 = vsub.f32 %v7300_v3, %v7473_v16  ;;  %v7501_v57 = vsub.f32 %v7292_v62, %v7473_v16  ;;  %v7505_v56 = vsub.f32 %v7298_v2, %v7473_v16 }
 0x187   :  { %11273 = vst [vmem:[#allocation25_spill] sm:$0xff] %v7477_v53  ;;  %11274 = vst [vmem:[#allocation26_spill] sm:$0xff] %v7481_v60  ;;  %v7509_v58 = vsub.f32 %v7307_v9, %v7473_v16  ;;  %v7513_v59 = vsub.f32 %v7312_v12, %v7473_v16  ;;  %v7517_v0 = vsub.f32 %v7304_v7, %v7473_v16 }
 0x188   :  { %11275 = vst [vmem:[#allocation27_spill] sm:$0xff] %v7485_v22  ;;  %v7521_v62 = vsub.f32 %v7310_v11, %v7473_v16  ;;  %v7525_v2 = vsub.f32 %v7319_v19, %v7473_v16  ;;  %v7529_v3 = vsub.f32 %v7324_v24, %v7473_v16  ;;  %v7533_v9 = vsub.f32 %v7316_v17, %v7473_v16 }
 0x189   :  { %v7537_v7 = vsub.f32 %v7322_v23, %v7473_v16  ;;  %v7541_v11 = vsub.f32 %v7331_v31, %v7473_v16  ;;  %v7545_v12 = vsub.f32 %v7336_v35, %v7473_v16  ;;  %v7549_v19 = vsub.f32 %v7328_v29, %v7473_v16 }
 0x18a   :  { %11276 = vst [vmem:[#allocation28_spill] sm:$0xff] %v7533_v9  ;;  %v7553_v17 = vsub.f32 %v7334_v34, %v7473_v16  ;;  %v7557_v23 = vsub.f32 %v7343_v40, %v7473_v16  ;;  %v7561_v24 = vsub.f32 %v7348_v43, %v7473_v16  ;;  %v7565_v31 = vsub.f32 %v7340_v38, %v7473_v16 }
 0x18b   :  { %v7569_v29 = vsub.f32 %v7346_v42, %v7473_v16  ;;  %v7573_v34 = vsub.f32 %v7355_v48, %v7473_v16  ;;  %v7577_v35 = vsub.f32 %v7360_v52, %v7473_v16  ;;  %v7581_v40 = vsub.f32 %v7352_v46, %v7473_v16 }
 0x18c   :  { %v7585_v38 = vsub.f32 %v7358_v51, %v7473_v16  ;;  %v7589_v42 = vsub.f32 %v7367_v61, %v7473_v16  ;;  %v7593_v43 = vsub.f32 %v7372_v4, %v7473_v16  ;;  %v7597_v48 = vsub.f32 %v7364_v55, %v7473_v16 }
 0x18d   :  { %v7601_v46 = vsub.f32 %v7370_v1, %v7473_v16  ;;  %v7605_v51 = vsub.f32 %v7379_v14, %v7473_v16  ;;  %v7609_v52 = vsub.f32 %v7384_v25, %v7473_v16  ;;  %v7613_v61 = vsub.f32 %v7376_v10, %v7473_v16 }
 0x18e   :  { %v7617_v55 = vsub.f32 %v7382_v20, %v7473_v16  ;;  %v7621_v1 = vsub.f32 %v7391_v37, %v7473_v16  ;;  %v7625_v4 = vsub.f32 %v7396_v44, %v7473_v16  ;;  %v7629_v14 = vsub.f32 %v7388_v32, %v7473_v16 }
 0x18f   :  { %v7633_v10 = vsub.f32 %v7394_v41, %v7473_v16  ;;  %v7637_v20 = vsub.f32 %v7403_v54, %v7473_v16  ;;  %v7641_v25 = vsub.f32 %v7408_v5, %v7473_v16  ;;  %v7645_v37 = vsub.f32 %v7400_v50, %v7473_v16  ;;  %v11280_v5 = vld [vmem:[#allocation13_spill] sm:$0xff] }
 0x190   :  { %v7649_v32 = vsub.f32 %v7406_v63, %v7473_v16  ;;  %v7653_v41 = vsub.f32 %v7415_v30, %v7473_v16  ;;  %v7657_v44 = vsub.f32 %v7420_v45, %v7473_v16  ;;  %v7661_v54 = vsub.f32 %v7412_v18, %v7473_v16 }
 0x191   :  { %v7665_v50 = vsub.f32 %v7418_v39, %v7473_v16  ;;  %v7669_v63 = vsub.f32 %v11280_v5, %v7473_v16  ;;  %v7673_v30 = vsub.f32 %v11282_v8, %v7473_v16  ;;  %v7677_v45 = vsub.f32 %v11284_v26, %v7473_v16  ;;  %v11292_v5 = vld [vmem:[#allocation16_spill] sm:$0xff] }
 0x192   :  { %11277 = vst [vmem:[#allocation29_spill] sm:$0xff] %v7657_v44  ;;  %11278 = vst [vmem:[#allocation30_spill] sm:$0xff] %v7661_v54  ;;  %v7681_v18 = vsub.f32 %v11286_v13, %v7473_v16  ;;  %v7685_v39 = vsub.f32 %v11288_v6, %v7473_v16  ;;  %v7689_v47 = vsub.f32 %v11290_v36, %v7473_v16 }
 0x193   :  { %11279 = vst [vmem:[#allocation31_spill] sm:$0xff] %v7665_v50  ;;  %11281 = vst [vmem:[#allocation13_spill] sm:$0xff] %v7669_v63  ;;  %v7693_v8 = vsub.f32 %v11292_v5, %v7473_v16 }
 0x194   :  { %11283 = vst [vmem:[#allocation15_spill] sm:$0xff] %v7673_v30  ;;  %11285 = vst [vmem:[#allocation12_spill] sm:$0xff] %v7677_v45  ;;  %v11294_v30 = vld [vmem:[#allocation18_spill] sm:$0xff]  ;;  %v11296_v45 = vld [vmem:[#allocation21_spill] sm:$0xff] }
 0x195   :  { %11287 = vst [vmem:[#allocation14_spill] sm:$0xff] %v7681_v18  ;;  %11289 = vst [vmem:[#allocation17_spill] sm:$0xff] %v7685_v39  ;;  %v7697_v26 = vsub.f32 %v11294_v30, %v7473_v16  ;;  %v7701_v13 = vsub.f32 %v11296_v45, %v7473_v16  ;;  %v11298_v18 = vld [vmem:[#allocation23_spill] sm:$0xff]  ;;  %v11300_v39 = vld [vmem:[#allocation20_spill] sm:$0xff]  ;;  %v7721_v45 = vsub.f32 %v7468_v33, %v7473_v16 }
 0x196   :  { %11291 = vst [vmem:[#allocation19_spill] sm:$0xff] %v7689_v47  ;;  %11293 = vst [vmem:[#allocation16_spill] sm:$0xff] %v7693_v8  ;;  %v7705_v6 = vsub.f32 %v11298_v18, %v7473_v16  ;;  %v7709_v36 = vsub.f32 %v11300_v39, %v7473_v16  ;;  %v11302_v47 = vld [vmem:[#allocation22_spill] sm:$0xff]  ;;  %v11304_v8 = vld [vmem:[#allocation24_spill] sm:$0xff]  ;;  %v7725_v18 = vsub.f32 %v7460_v15, %v7473_v16 }
 0x197   :  { %11295 = vst [vmem:[#allocation18_spill] sm:$0xff] %v7697_v26  ;;  %11297 = vst [vmem:[#allocation21_spill] sm:$0xff] %v7701_v13  ;;  %v7713_v5 = vsub.f32 %v11302_v47, %v7473_v16  ;;  %v7717_v30 = vsub.f32 %v11304_v8, %v7473_v16  ;;  %v7729_v39 = vsub.f32 %v7466_v28, %v7473_v16 }
 0x198   :  { %11299 = vst [vmem:[#allocation23_spill] sm:$0xff] %v7705_v6  ;;  %11301 = vst [vmem:[#allocation20_spill] sm:$0xff] %v7709_v36  ;;  %v630_v47 = vmul.f32 %v7477_v53, %v7477_v53  ;;  %v632_v8 = vmul.f32 %v7485_v22, %v7485_v22  ;;  %v633_v33 = vmul.f32 %v7489_v21, %v7489_v21 }
 0x199   :  { %11303 = vst [vmem:[#allocation22_spill] sm:$0xff] %v7713_v5  ;;  %11305 = vst [vmem:[#allocation24_spill] sm:$0xff] %v7717_v30  ;;  %v631_v5 = vmul.f32 %v7481_v60, %v7481_v60  ;;  %v634_v15 = vmul.f32 %v7493_v27, %v7493_v27  ;;  %v635_v16 = vmul.f32 %v7497_v49, %v7497_v49 }
 0x19a   :  { %11306 = vst [vmem:[#allocation32_spill] sm:$0xff] %v7721_v45  ;;  %11307 = vst [vmem:[#allocation33_spill] sm:$0xff] %v7725_v18  ;;  %v636_v53 = vmul.f32 %v7501_v57, %v7501_v57  ;;  %v637_v22 = vmul.f32 %v7505_v56, %v7505_v56 }
 0x19b   :  { %v694_v30 = vadd.f32 %v631_v5, %v630_v47  ;;  %v638_v47 = vmul.f32 %v7509_v58, %v7509_v58 }
 0x19d   :  { %v695_v45 = vadd.f32 %v694_v30, %v632_v8  ;;  %v639_v8 = vmul.f32 %v7513_v59, %v7513_v59 }
 0x19f   :  { %v696_v18 = vadd.f32 %v695_v45, %v633_v33  ;;  %v640_v33 = vmul.f32 %v7517_v0, %v7517_v0 }
 0x1a1   :  { %v697_v28 = vadd.f32 %v696_v18, %v634_v15  ;;  %v641_v15 = vmul.f32 %v7521_v62, %v7521_v62 }
 0x1a3   :  { %v698_v60 = vadd.f32 %v697_v28, %v635_v16  ;;  %v642_v28 = vmul.f32 %v7525_v2, %v7525_v2 }
 0x1a5   :  { %v699_v5 = vadd.f32 %v698_v60, %v636_v53  ;;  %v643_v53 = vmul.f32 %v7529_v3, %v7529_v3 }
 0x1a7   :  { %v700_v30 = vadd.f32 %v699_v5, %v637_v22  ;;  %v644_v5 = vmul.f32 %v7533_v9, %v7533_v9 }
 0x1a9   :  { %v701_v45 = vadd.f32 %v700_v30, %v638_v47  ;;  %v645_v30 = vmul.f32 %v7537_v7, %v7537_v7 }
 0x1ab   :  { %v702_v18 = vadd.f32 %v701_v45, %v639_v8  ;;  %v646_v45 = vmul.f32 %v7541_v11, %v7541_v11 }
 0x1ad   :  { %v703_v16 = vadd.f32 %v702_v18, %v640_v33  ;;  %v647_v18 = vmul.f32 %v7545_v12, %v7545_v12 }
 0x1af   :  { %v704_v60 = vadd.f32 %v703_v16, %v641_v15  ;;  %v648_v16 = vmul.f32 %v7549_v19, %v7549_v19 }
 0x1b1   :  { %v705_v22 = vadd.f32 %v704_v60, %v642_v28  ;;  %v1251_v60 = vld [vmem:[#allocation2 + $0x78] sm:$0x1] }
 0x1b3   :  { %v706_v47 = vadd.f32 %v705_v22, %v643_v53  ;;  %v649_v53 = vmul.f32 %v7553_v17, %v7553_v17 }
 0x1b5   :  { %v707_v8 = vadd.f32 %v706_v47, %v644_v5  ;;  %v1252_v5 = vsel %vm7215_vm2, 0, %v1251_v60  ;;  %v650_v47 = vmul.f32 %v7557_v23, %v7557_v23 }
 0x1b6   :  { %1253 = vst [vmem:[#allocation2 + $0x78] sm:$0x1] %v1252_v5  ;;  %v655_v5 = vmul.f32 %v7577_v35, %v7577_v35 }
 0x1b7   :  { %v708_v33 = vadd.f32 %v707_v8, %v645_v30  ;;  %v651_v8 = vmul.f32 %v7561_v24, %v7561_v24 }
 0x1b9   :  { %v709_v15 = vadd.f32 %v708_v33, %v646_v45  ;;  %v652_v33 = vmul.f32 %v7565_v31, %v7565_v31 }
 0x1bb   :  { %v710_v28 = vadd.f32 %v709_v15, %v647_v18  ;;  %v653_v15 = vmul.f32 %v7569_v29, %v7569_v29 }
 0x1bd   :  { %v711_v22 = vadd.f32 %v710_v28, %v648_v16  ;;  %v654_v28 = vmul.f32 %v7573_v34, %v7573_v34 }
 0x1bf   :  { %v712_v30 = vadd.f32 %v711_v22, %v649_v53  ;;  %v656_v22 = vmul.f32 %v7581_v40, %v7581_v40 }
 0x1c1   :  { %v713_v45 = vadd.f32 %v712_v30, %v650_v47  ;;  %v657_v30 = vmul.f32 %v7585_v38, %v7585_v38 }
 0x1c3   :  { %v714_v18 = vadd.f32 %v713_v45, %v651_v8  ;;  %v658_v45 = vmul.f32 %v7589_v42, %v7589_v42 }
 0x1c5   :  { %v715_v16 = vadd.f32 %v714_v18, %v652_v33  ;;  %v659_v18 = vmul.f32 %v7593_v43, %v7593_v43 }
 0x1c7   :  { %v716_v60 = vadd.f32 %v715_v16, %v653_v15  ;;  %v660_v16 = vmul.f32 %v7597_v48, %v7597_v48 }
 0x1c9   :  { %v717_v53 = vadd.f32 %v716_v60, %v654_v28  ;;  %v661_v60 = vmul.f32 %v7601_v46, %v7601_v46 }
 0x1cb   :  { %v718_v47 = vadd.f32 %v717_v53, %v655_v5  ;;  %v662_v53 = vmul.f32 %v7605_v51, %v7605_v51 }
 0x1cd   :  { %v719_v8 = vadd.f32 %v718_v47, %v656_v22  ;;  %v663_v47 = vmul.f32 %v7609_v52, %v7609_v52 }
 0x1cf   :  { %v720_v33 = vadd.f32 %v719_v8, %v657_v30  ;;  %v664_v8 = vmul.f32 %v7613_v61, %v7613_v61 }
 0x1d1   :  { %v721_v15 = vadd.f32 %v720_v33, %v658_v45  ;;  %v665_v33 = vmul.f32 %v7617_v55, %v7617_v55 }
 0x1d3   :  { %v722_v28 = vadd.f32 %v721_v15, %v659_v18  ;;  %v666_v15 = vmul.f32 %v7621_v1, %v7621_v1 }
 0x1d5   :  { %v723_v5 = vadd.f32 %v722_v28, %v660_v16  ;;  %v667_v28 = vmul.f32 %v7625_v4, %v7625_v4 }
 0x1d7   :  { %v724_v22 = vadd.f32 %v723_v5, %v661_v60  ;;  %v668_v5 = vmul.f32 %v7629_v14, %v7629_v14 }
 0x1d9   :  { %v725_v30 = vadd.f32 %v724_v22, %v662_v53  ;;  %v669_v22 = vmul.f32 %v7633_v10, %v7633_v10 }
 0x1db   :  { %v726_v45 = vadd.f32 %v725_v30, %v663_v47  ;;  %v670_v30 = vmul.f32 %v7637_v20, %v7637_v20 }
 0x1dd   :  { %v727_v18 = vadd.f32 %v726_v45, %v664_v8  ;;  %v671_v45 = vmul.f32 %v7641_v25, %v7641_v25 }
 0x1df   :  { %v728_v16 = vadd.f32 %v727_v18, %v665_v33  ;;  %v672_v18 = vmul.f32 %v7645_v37, %v7645_v37 }
 0x1e1   :  { %v729_v60 = vadd.f32 %v728_v16, %v666_v15  ;;  %v673_v16 = vmul.f32 %v7649_v32, %v7649_v32 }
 0x1e3   :  { %v730_v53 = vadd.f32 %v729_v60, %v667_v28  ;;  %v674_v60 = vmul.f32 %v7653_v41, %v7653_v41 }
 0x1e5   :  { %v731_v47 = vadd.f32 %v730_v53, %v668_v5  ;;  %v675_v53 = vmul.f32 %v7657_v44, %v7657_v44 }
 0x1e7   :  { %v732_v8 = vadd.f32 %v731_v47, %v669_v22  ;;  %v676_v47 = vmul.f32 %v7661_v54, %v7661_v54 }
 0x1e9   :  { %v733_v33 = vadd.f32 %v732_v8, %v670_v30  ;;  %v677_v8 = vmul.f32 %v7665_v50, %v7665_v50 }
 0x1eb   :  { %v734_v15 = vadd.f32 %v733_v33, %v671_v45  ;;  %v678_v33 = vmul.f32 %v7669_v63, %v7669_v63 }
 0x1ed   :  { %v735_v28 = vadd.f32 %v734_v15, %v672_v18  ;;  %v11309_v15 = vld [vmem:[#allocation15_spill] sm:$0xff] }
 0x1ee   :  { %v679_v9 = vmul.f32 %v11309_v15, %v11309_v15 }
 0x1ef   :  { %v736_v5 = vadd.f32 %v735_v28, %v673_v16  ;;  %v11310_v28 = vld [vmem:[#allocation12_spill] sm:$0xff] }
 0x1f0   :  { %v680_v44 = vmul.f32 %v11310_v28, %v11310_v28 }
 0x1f1   :  { %v737_v22 = vadd.f32 %v736_v5, %v674_v60  ;;  %v11311_v5 = vld [vmem:[#allocation14_spill] sm:$0xff] }
 0x1f2   :  { %v681_v54 = vmul.f32 %v11311_v5, %v11311_v5 }
 0x1f3   :  { %v738_v30 = vadd.f32 %v737_v22, %v675_v53  ;;  %v11312_v22 = vld [vmem:[#allocation17_spill] sm:$0xff] }
 0x1f4   :  { %v682_v50 = vmul.f32 %v11312_v22, %v11312_v22 }
 0x1f5   :  { %v739_v45 = vadd.f32 %v738_v30, %v676_v47  ;;  %v11313_v30 = vld [vmem:[#allocation19_spill] sm:$0xff] }
 0x1f6   :  { %v683_v63 = vmul.f32 %v11313_v30, %v11313_v30 }
 0x1f7   :  { %v740_v18 = vadd.f32 %v739_v45, %v677_v8  ;;  %v11314_v45 = vld [vmem:[#allocation16_spill] sm:$0xff] }
 0x1f8   :  { %v684_v15 = vmul.f32 %v11314_v45, %v11314_v45 }
 0x1f9   :  { %v741_v16 = vadd.f32 %v740_v18, %v678_v33  ;;  %v685_v18 = vmul.f32 %v7697_v26, %v7697_v26 }
 0x1fb   :  { %v742_v60 = vadd.f32 %v741_v16, %v679_v9  ;;  %v686_v16 = vmul.f32 %v7701_v13, %v7701_v13 }
 0x1fd   :  { %v743_v53 = vadd.f32 %v742_v60, %v680_v44  ;;  %v687_v60 = vmul.f32 %v7705_v6, %v7705_v6 }
 0x1ff   :  { %v744_v47 = vadd.f32 %v743_v53, %v681_v54  ;;  %v688_v53 = vmul.f32 %v7709_v36, %v7709_v36 }
 0x201   :  { %v745_v8 = vadd.f32 %v744_v47, %v682_v50  ;;  %v11315_v47 = vld [vmem:[#allocation22_spill] sm:$0xff] }
 0x202   :  { %v689_v45 = vmul.f32 %v11315_v47, %v11315_v47 }
 0x203   :  { %v746_v33 = vadd.f32 %v745_v8, %v683_v63  ;;  %v11316_v8 = vld [vmem:[#allocation24_spill] sm:$0xff] }
 0x204   :  { %v690_v26 = vmul.f32 %v11316_v8, %v11316_v8 }
 0x205   :  { %v747_v9 = vadd.f32 %v746_v33, %v684_v15  ;;  %v11317_v33 = vld [vmem:[#allocation32_spill] sm:$0xff] }
 0x206   :  { %v691_v13 = vmul.f32 %v11317_v33, %v11317_v33 }
 0x207   :  { %v748_v44 = vadd.f32 %v747_v9, %v685_v18  ;;  %v11318_v9 = vld [vmem:[#allocation33_spill] sm:$0xff] }
 0x208   :  { %v692_v6 = vmul.f32 %v11318_v9, %v11318_v9 }
 0x209   :  { %v749_v54 = vadd.f32 %v748_v44, %v686_v16  ;;  %v693_v44 = vmul.f32 %v7729_v39, %v7729_v39 }
 0x20b   :  { %v750_v50 = vadd.f32 %v749_v54, %v687_v60 }
 0x20d   :  { %v751_v63 = vadd.f32 %v750_v50, %v688_v53 }
 0x20f   :  { %v752_v15 = vadd.f32 %v751_v63, %v689_v45 }
 0x211   :  { %v753_v18 = vadd.f32 %v752_v15, %v690_v26  ;;  %v7866_v26 = vld [vmem:[%s11154_s2] ss:$0 sm:$0xff] }
 0x213   :  { %v754_v16 = vadd.f32 %v753_v18, %v691_v13  ;;  %v7885_v18 = vld [vmem:[%s11155_s3] ss:$0 sm:$0xff] }
 0x214   :  { %11322 = vst [vmem:[#allocation12_spill] sm:$0xff] %v7885_v18 }
 0x215   :  { %v755_v60 = vadd.f32 %v754_v16, %v692_v6  ;;  %v11319_v6 = vld [vmem:[#allocation25_spill] sm:$0xff] }
 0x217   :  { %v756_v54 = vadd.f32 %v755_v60, %v693_v44 }
 0x219   :  { %v757_v36 = vrot.slane %v756_v54, 4 }
 0x21b   :  { %v758_v47 = vadd.f32 %v757_v36, %v756_v54  ;;  %v6663_v54 = vld [vmem:[%s11153_s4 + $0x100] sm:$0xff]  }
 0x21c   :  { %6046 = vmatprep.subr.bf16.mxu1 %v6663_v54 }
 0x21d   :  { %v759_v53 = vrot.slane %v758_v47, 2 }
 0x21f   :  { %v760_v50 = vadd.f32 %v759_v53, %v758_v47  ;;  %v11320_v47 = vld [vmem:[#allocation26_spill] sm:$0xff] }
 0x221   :  { %v761_v30 = vrot.slane %v760_v50, 1 }
 0x223   :  { %v762_v8 = vadd.f32 %v761_v30, %v760_v50  ;;  %v6664_v50 = vld [vmem:[%s11153_s4 + $0xc0] sm:$0xff]  }
 0x224   :  { %6047 = vmatpush3.bf16.msra.mxu1 %v6664_v50 }
 0x225   :  { %v763_v45 = vmul.f32 0.001953125, %v762_v8  ;;  %v11321_v8 = vld [vmem:[#allocation27_spill] sm:$0xff] }
 0x227   :  { %v764_v63 = vadd.f32 1e-05, %v763_v45  ;;  %v6666_v45 = vld [vmem:[%s11153_s4 + $0x180] sm:$0xff]  }
 0x229   :  { %6895 = vrsqrt.f32 %v764_v63 }
 0x233   :  { %v7861_v22 = vpop.eup %6895 }
 0x234   :  { %v827_v13 = vmul.f32 %v7861_v22, %v11317_v33  ;;  %v7872_v36 = vmul.f32 %v7861_v22, %v11319_v6  ;;  %v7876_v30 = vmul.f32 %v7861_v22, %v11320_v47  ;;  %v7880_v15 = vmul.f32 %v7861_v22, %v11321_v8  ;;  %v11323_v6 = vld [vmem:[#allocation28_spill] sm:$0xff] }
 0x235   :  { %v7889_v33 = vmul.f32 %v7861_v22, %v7489_v21  ;;  %v7893_v16 = vmul.f32 %v7861_v22, %v7493_v27  ;;  %v7897_v44 = vmul.f32 %v7861_v22, %v7497_v49  ;;  %v7901_v60 = vmul.f32 %v7861_v22, %v7501_v57  ;;  %v6665_v21 = vld [vmem:[%s11153_s4 + $0x1c0] sm:$0xff]  }
 0x236   :  { %v897_v27 = vmul.f32 %v7866_v26, %v827_v13  ;;  %v7912_v49 = vmul.f32 %v7861_v22, %v7505_v56  ;;  %v7916_v57 = vmul.f32 %v7861_v22, %v7509_v58  ;;  %v7920_v53 = vmul.f32 %v7861_v22, %v7513_v59  ;;  %6206 = vmatprep.subr.bf16.mxu0 %v6665_v21  ;;  %v6670_v21 = vld [vmem:[%s11153_s4 + $0x188] sm:$0xff]  }
 0x237   :  { %v7930_v56 = vmul.f32 %v7861_v22, %v7517_v0  ;;  %v7934_v58 = vmul.f32 %v7861_v22, %v7521_v62  ;;  %v7938_v59 = vmul.f32 %v7861_v22, %v7525_v2  ;;  %v7942_v63 = vmul.f32 %v7861_v22, %v7529_v3  ;;  %6207 = vmatpush3.bf16.msra.mxu0 %v6666_v45 }
 0x238   :  { %v967_v13 = vadd.f32 %v7885_v18, %v897_v27  ;;  %v7947_v47 = vmul.f32 %v7861_v22, %v11323_v6  ;;  %v7951_v0 = vmul.f32 %v7861_v22, %v7537_v7  ;;  %v7955_v62 = vmul.f32 %v7861_v22, %v7541_v11  ;;  %v6667_v11 = vld [vmem:[%s11153_s4 + $0x108] sm:$0xff]   ;;  %v11334_v18 = vld [vmem:[#allocation31_spill] sm:$0xff] }
 0x239   :  { %v7959_v2 = vmul.f32 %v7861_v22, %v7545_v12  ;;  %v7963_v3 = vmul.f32 %v7861_v22, %v7549_v19  ;;  %v7967_v8 = vmul.f32 %v7861_v22, %v7553_v17  ;;  %v7971_v7 = vmul.f32 %v7861_v22, %v7557_v23  ;;  %v6669_v12 = vld [vmem:[%s11153_s4 + $0x1c8] sm:$0xff]   ;;  %6048 = vmatprep.subr.bf16.mxu1 %v6667_v11 }
 0x23a   :  { %vm1031_vm5 = vcmp.ge.f32.partialorder %v967_v13, 0.0  ;;  %v1095_v19 = vmul.f32 0.01, %v967_v13  ;;  %v7981_v54 = vmul.f32 %v7861_v22, %v7561_v24  ;;  %v7985_v17 = vmul.f32 %v7861_v22, %v7565_v31  ;;  %v6668_v23 = vld [vmem:[%s11153_s4 + $0xc8] sm:$0xff]   ;;  %6208 = vmatprep.subr.bf16.mxu0 %v6669_v12  ;;  %v6672_v12 = vld [vmem:[%s11153_s4 + $0xd0] sm:$0xff]  }
 0x23b   :  { %v7995_v27 = vmul.f32 %v7861_v22, %v7569_v29  ;;  %v7999_v24 = vmul.f32 %v7861_v22, %v7573_v34  ;;  %v8003_v31 = vmul.f32 %v7861_v22, %v7577_v35  ;;  %v8007_v50 = vmul.f32 %v7861_v22, %v7581_v40  ;;  %6049 = vmatpush3.bf16.msra.mxu1 %v6668_v23 }
 0x23c   :  { %v1159_v45 = vsel %vm1031_vm5, %v967_v13, %v1095_v19  ;;  %v8011_v6 = vmul.f32 %v7861_v22, %v7585_v38  ;;  %v8015_v29 = vmul.f32 %v7861_v22, %v7589_v42  ;;  %v8019_v34 = vmul.f32 %v7861_v22, %v7593_v43  ;;  %v6671_v42 = vld [vmem:[%s11153_s4 + $0x110] sm:$0xff]   ;;  %6209 = vmatpush3.bf16.msra.mxu0 %v6670_v21 }
 0x23d   :  { %v6003_v35 = vpack.c.bf16 %v1159_v45, %v1159_v45  ;;  %v8023_v40 = vmul.f32 %v7861_v22, %v7597_v48  ;;  %v8027_v13 = vmul.f32 %v7861_v22, %v7601_v46  ;;  %v8031_v38 = vmul.f32 %v7861_v22, %v7605_v51  ;;  %v6673_v43 = vld [vmem:[%s11153_s4 + $0x1d0] sm:$0xff]   ;;  %6050 = vmatprep.subr.bf16.mxu1 %v6671_v42  ;;  %v6675_v42 = vld [vmem:[%s11153_s4 + $0x118] sm:$0xff]  }
 0x23e   :  { %v8041_v48 = vmul.f32 %v7861_v22, %v7609_v52  ;;  %v8045_v46 = vmul.f32 %v7861_v22, %v7613_v61  ;;  %v8049_v51 = vmul.f32 %v7861_v22, %v7617_v55  ;;  %v8053_v11 = vmul.f32 %v7861_v22, %v7621_v1  ;;  %v6674_v52 = vld [vmem:[%s11153_s4 + $0x190] sm:$0xff]   ;;  %6210 = vmatprep.subr.bf16.mxu0 %v6673_v43  ;;  %v6677_v43 = vld [vmem:[%s11153_s4 + $0x1d8] sm:$0xff]  }
 0x23f   :  { %v1924_v19 = vshrl.u32 %v6003_v35, 16  ;;  %v1927_v61 = vshll.u32 %v6003_v35, 16  ;;  %v8063_v23 = vmul.f32 %v7861_v22, %v7625_v4  ;;  %v8067_v55 = vmul.f32 %v7861_v22, %v7629_v14  ;;  %6051 = vmatpush3.bf16.msra.mxu1 %v6672_v12  ;;  %v11330_v35 = vld [vmem:[#allocation29_spill] sm:$0xff]  ;;  %v2000_v12 = vld [vmem:[#allocation2 + $0x78] sm:$0x1f] }
 0x240   :  { %v8071_v1 = vmul.f32 %v7861_v22, %v7633_v10  ;;  %v8075_v21 = vmul.f32 %v7861_v22, %v7637_v20  ;;  %v8079_v45 = vmul.f32 %v7861_v22, %v7641_v25  ;;  %v8083_v4 = vmul.f32 %v7861_v22, %v7645_v37  ;;  %6211 = vmatpush3.bf16.msra.mxu0 %v6674_v52 }
 0x241   :  { %v11325_v14 = vmov 0  ;;  %v1926_v10 = vrot.slane %v1924_v19, 7  ;;  %v8093_v20 = vmul.f32 %v7861_v22, %v7649_v32  ;;  %v8097_v25 = vmul.f32 %v7861_v22, %v7653_v41  ;;  %v11332_v19 = vld [vmem:[#allocation30_spill] sm:$0xff]  ;;  %6052 = vmatprep.subr.bf16.mxu1 %v6675_v42  ;;  %6212 = vmatprep.subr.bf16.mxu0 %v6677_v43 }
 0x242   :  { %11324 = vst [vmem:[#allocation14_spill] sm:$0xff] %v8083_v4  ;;  %v11326_v14 = vsel %vm8087_vm6, 4294967295, %v11325_v14  ;;  %v8101_v37 = vmul.f32 %v7861_v22, %v11330_v35  ;;  %v8111_v32 = vmul.f32 %v7861_v22, %v11332_v19  ;;  %v8115_v41 = vmul.f32 %v7861_v22, %v11334_v18  ;;  %v6676_v4 = vld [vmem:[%s11153_s4 + $0xd8] sm:$0xff]  }
 0x243   :  { %11327 = vst [vmem:[#allocation32_spill] sm:$0xff] %v11326_v14  ;;  %11328 = vst [vmem:[#allocation33_spill] sm:$0xff] %v8093_v20  ;;  %v6678_v19 = vld [vmem:[%s11153_s4 + $0x198] sm:$0xff]   ;;  %v8133_v18 = vmul.f32 %v7861_v22, %v11310_v28  ;;  %6053 = vmatpush3.bf16.msra.mxu1 %v6676_v4  ;;  %v6679_v4 = vld [vmem:[%s11153_s4 + $0x120] sm:$0xff]   ;;  %v8189_v43 = vmul.f32 %v7861_v22, %v7729_v39  ;;  %v8207_v39 = vmul.f32 %v7866_v26, %v7880_v15 }
 0x244   :  { %11329 = vst [vmem:[#allocation25_spill] sm:$0xff] %v8097_v25  ;;  %11331 = vst [vmem:[#allocation26_spill] sm:$0xff] %v8101_v37  ;;  %v11336_v25 = vld [vmem:[#allocation13_spill] sm:$0xff]  ;;  %v11338_v37 = vld [vmem:[#allocation15_spill] sm:$0xff]  ;;  %6213 = vmatpush3.bf16.msra.mxu0 %v6678_v19  ;;  %6054 = vmatprep.subr.bf16.mxu1 %v6679_v4  ;;  %v8219_v19 = vmul.f32 %v7866_v26, %v7897_v44  ;;  %v8227_v15 = vmul.f32 %v7866_v26, %v7912_v49 }
 0x245   :  { %11333 = vst [vmem:[#allocation27_spill] sm:$0xff] %v8111_v32  ;;  %11335 = vst [vmem:[#allocation28_spill] sm:$0xff] %v8115_v41  ;;  %v8119_v35 = vmul.f32 %v7861_v22, %v11336_v25  ;;  %v8123_v20 = vmul.f32 %v7861_v22, %v11338_v37  ;;  %v1929_v32 = vor.u32 %v1927_v61, %v1926_v10  ;;  %v11341_v37 = vld [vmem:[#allocation17_spill] sm:$0xff]  ;;  %v11344_v41 = vld [vmem:[#allocation16_spill] sm:$0xff] }
 0x246   :  { %11340 = vst [vmem:[#allocation31_spill] sm:$0xff] %v8133_v18  ;;  %v8137_v25 = vmul.f32 %v7861_v22, %v11311_v5  ;;  %v8141_v52 = vmul.f32 %v7861_v22, %v11341_v37  ;;  %v8149_v61 = vmul.f32 %v7861_v22, %v11344_v41  ;;  %v11346_v10 = vld [vmem:[#allocation18_spill] sm:$0xff]  ;;  %v11347_v18 = vld [vmem:[#allocation21_spill] sm:$0xff]  ;;  %v11348_v37 = vld [vmem:[#allocation23_spill] sm:$0xff]  ;;  %v8239_v44 = vmul.f32 %v7866_v26, %v7930_v56 }
 0x247   :  { %11337 = vst [vmem:[#allocation29_spill] sm:$0xff] %v8119_v35  ;;  %11339 = vst [vmem:[#allocation30_spill] sm:$0xff] %v8123_v20  ;;  %v11342_v20 = vld [vmem:[#allocation19_spill] sm:$0xff]  ;;  %v8153_v28 = vmul.f32 %v7861_v22, %v11346_v10  ;;  %v8157_v5 = vmul.f32 %v7861_v22, %v11347_v18  ;;  %v2001_v42 = vsel %vm8087_vm6, %v1929_v32, %v2000_v12  ;;  %v11351_v32 = vld [vmem:[#allocation24_spill] sm:$0xff] }
 0x248   :  { %v8145_v35 = vmul.f32 %v7861_v22, %v11342_v20  ;;  %11345 = vst [vmem:[#allocation15_spill] sm:$0xff] %v8149_v61  ;;  %v8163_v20 = vmul.f32 %v7861_v22, %v11348_v37  ;;  %v11350_v61 = vld [vmem:[#allocation22_spill] sm:$0xff]  ;;  %v6681_v12 = vld [vmem:[%s11153_s4 + $0x1e0] sm:$0xff]   ;;  %2002 = vst [vmem:[#allocation2 + $0x78] sm:$0x1f] %v2001_v42  ;;  %v8181_v18 = vmul.f32 %v7861_v22, %v11351_v32 }
 0x249   :  { %v8171_v10 = vmul.f32 %v7861_v22, %v11350_v61  ;;  %v8193_v61 = vmul.f32 %v7866_v26, %v7872_v36  ;;  %v6680_v42 = vld [vmem:[%s11153_s4 + $0xe0] sm:$0xff]   ;;  %v8215_v36 = vmul.f32 %v7866_v26, %v7893_v16  ;;  %v8235_v16 = vmul.f32 %v7866_v26, %v7920_v53  ;;  %6214 = vmatprep.subr.bf16.mxu0 %v6681_v12  ;;  %v6685_v53 = vld [vmem:[%s11153_s4 + $0x1e8] sm:$0xff]  }
 0x24a   :  { %11343 = vst [vmem:[#allocation13_spill] sm:$0xff] %v8145_v35  ;;  %v11349_v35 = vld [vmem:[#allocation20_spill] sm:$0xff]  ;;  %v6682_v37 = vld [vmem:[%s11153_s4 + $0x1a0] sm:$0xff]   ;;  %6055 = vmatpush3.bf16.msra.mxu1 %v6680_v42  ;;  %v8247_v49 = vmul.f32 %v7866_v26, %v7938_v59  ;;  %v8257_v56 = vmul.f32 %v7866_v26, %v7942_v63  ;;  %v8265_v59 = vmul.f32 %v7866_v26, %v7951_v0  ;;  %v11357_v14 = vld [vmem:[#allocation33_spill] sm:$0xff] }
 0x24b   :  { %v8167_v41 = vmul.f32 %v7861_v22, %v11349_v35  ;;  %v8185_v35 = vmul.f32 %v7861_v22, %v11318_v9  ;;  %v8203_v9 = vmul.f32 %v7866_v26, %v7876_v30  ;;  %v8211_v22 = vmul.f32 %v7866_v26, %v7889_v33  ;;  %6215 = vmatpush3.bf16.msra.mxu0 %v6682_v37  ;;  %v6684_v12 = vld [vmem:[%s11153_s4 + $0xe8] sm:$0xff]  }
 0x24c   :  { %v8223_v30 = vmul.f32 %v7866_v26, %v7901_v60  ;;  %v8231_v33 = vmul.f32 %v7866_v26, %v7916_v57  ;;  %v8243_v60 = vmul.f32 %v7866_v26, %v7934_v58  ;;  %v6683_v57 = vld [vmem:[%s11153_s4 + $0x128] sm:$0xff]   ;;  %v8261_v58 = vmul.f32 %v7866_v26, %v7947_v47  ;;  %6216 = vmatprep.subr.bf16.mxu0 %v6685_v53  ;;  %v6691_v53 = vld [vmem:[%s11153_s4 + $0x1b0] sm:$0xff]  }
 0x24d   :  { %v8269_v4 = vmul.f32 %v7866_v26, %v7955_v62  ;;  %v6686_v63 = vld [vmem:[%s11153_s4 + $0x1a8] sm:$0xff]   ;;  %v8279_v47 = vmul.f32 %v7866_v26, %v7959_v2  ;;  %v8283_v0 = vmul.f32 %v7866_v26, %v7963_v3  ;;  %v8287_v62 = vmul.f32 %v7866_v26, %v7967_v8  ;;  %6056 = vmatprep.subr.bf16.mxu1 %v6683_v57 }
 0x24e   :  { %v8291_v32 = vmul.f32 %v7866_v26, %v7971_v7  ;;  %v8295_v42 = vmul.f32 %v7866_v26, %v7981_v54  ;;  %v8299_v2 = vmul.f32 %v7866_v26, %v7985_v17  ;;  %v8303_v3 = vmul.f32 %v7866_v26, %v7995_v27  ;;  %6057 = vmatpush3.bf16.msra.mxu1 %v6684_v12  ;;  %v6693_v12 = vld [vmem:[%s11153_s4 + $0x138] sm:$0xff]  }
 0x24f   :  { %v8307_v8 = vmul.f32 %v7866_v26, %v7999_v24  ;;  %v8311_v7 = vmul.f32 %v7866_v26, %v8003_v31  ;;  %v8315_v54 = vmul.f32 %v7866_v26, %v8007_v50  ;;  %v8319_v17 = vmul.f32 %v7866_v26, %v8011_v6  ;;  %v6687_v24 = vld [vmem:[%s11153_s4 + $0x130] sm:$0xff]   ;;  %6217 = vmatpush3.bf16.msra.mxu0 %v6686_v63  ;;  %v6694_v63 = vld [vmem:[%s11153_s4 + $0xf8] sm:$0xff]  }
 0x250   :  { %v8323_v27 = vmul.f32 %v7866_v26, %v8015_v29  ;;  %v6688_v31 = vld [vmem:[%s11153_s4 + $0xf0] sm:$0xff]   ;;  %v8336_v6 = vmul.f32 %v7866_v26, %v8019_v34  ;;  %v8340_v29 = vmul.f32 %v7866_v26, %v8023_v40  ;;  %v8344_v37 = vmul.f32 %v7866_v26, %v8027_v13  ;;  %6058 = vmatprep.subr.bf16.mxu1 %v6687_v24  ;;  %v11355_v24 = vld [vmem:[#allocation14_spill] sm:$0xff] }
 0x251   :  { %v6689_v50 = vld [vmem:[%s11153_s4 + $0x1f0] sm:$0xff]   ;;  %v8348_v57 = vmul.f32 %v7866_v26, %v8031_v38  ;;  %v8355_v34 = vmul.f32 %v7866_v26, %v8041_v48  ;;  %v8359_v40 = vmul.f32 %v7866_v26, %v8045_v46  ;;  %v8363_v13 = vmul.f32 %v7866_v26, %v8049_v51 }
 0x252   :  { %v8367_v38 = vmul.f32 %v7866_v26, %v8053_v11  ;;  %v8374_v48 = vmul.f32 %v7866_v26, %v8063_v23  ;;  %v8378_v46 = vmul.f32 %v7866_v26, %v8067_v55  ;;  %v8382_v51 = vmul.f32 %v7866_v26, %v8071_v1  ;;  %6059 = vmatpush3.bf16.msra.mxu1 %v6688_v31  ;;  %v6695_v31 = vld [vmem:[%s11153_s4 + $0x1f8] sm:$0xff]  }
 0x253   :  { %v8386_v11 = vmul.f32 %v7866_v26, %v8075_v21  ;;  %v8393_v23 = vmul.f32 %v7866_v26, %v8079_v45  ;;  %v8397_v55 = vmul.f32 %v7866_v26, %v11355_v24  ;;  %v8401_v1 = vmul.f32 %v7866_v26, %v11357_v14  ;;  %6218 = vmatprep.subr.bf16.mxu0 %v6689_v50  ;;  %v6696_v50 = vld [vmem:[%s11153_s4 + $0x1b8] sm:$0xff]  }
 0x254   :  { %11352 = vst [vmem:[#allocation17_spill] sm:$0xff] %v8382_v51  ;;  %v11359_v51 = vld [vmem:[#allocation25_spill] sm:$0xff]  ;;  %6219 = vmatpush3.bf16.msra.mxu0 %v6691_v53  ;;  %6060 = vmatprep.subr.bf16.mxu1 %v6693_v12  ;;  %v6697_v53 = vld [vmem:[%s11153_s4 + $0x140] sm:$0xff]   ;;  %v8466_v12 = vmul.f32 %v7866_v26, %v8163_v20  ;;  %v8486_v20 = vmul.f32 %v7866_v26, %v8189_v43 }
 0x255   :  { %11353 = vst [vmem:[#allocation19_spill] sm:$0xff] %v8386_v11  ;;  %11354 = vst [vmem:[#allocation16_spill] sm:$0xff] %v8393_v23  ;;  %v8405_v21 = vmul.f32 %v7866_v26, %v11359_v51  ;;  %v11361_v11 = vld [vmem:[#allocation26_spill] sm:$0xff]  ;;  %v11363_v23 = vld [vmem:[#allocation27_spill] sm:$0xff]  ;;  %6220 = vmatprep.subr.bf16.mxu0 %v6695_v31 }
 0x256   :  { %11356 = vst [vmem:[#allocation18_spill] sm:$0xff] %v8397_v55  ;;  %11358 = vst [vmem:[#allocation21_spill] sm:$0xff] %v8401_v1  ;;  %v8412_v45 = vmul.f32 %v7866_v26, %v11361_v11  ;;  %v8416_v24 = vmul.f32 %v7866_v26, %v11363_v23  ;;  %v11364_v55 = vld [vmem:[#allocation28_spill] sm:$0xff]  ;;  %v11365_v1 = vld [vmem:[#allocation29_spill] sm:$0xff]  ;;  %6061 = vmatpush3.bf16.msra.mxu1 %v6694_v63 }
 0x257   :  { %11360 = vst [vmem:[#allocation23_spill] sm:$0xff] %v8405_v21  ;;  %v8420_v14 = vmul.f32 %v7866_v26, %v11364_v55  ;;  %v8424_v51 = vmul.f32 %v7866_v26, %v11365_v1  ;;  %v11367_v21 = vld [vmem:[#allocation30_spill] sm:$0xff]  ;;  %v8439_v55 = vmul.f32 %v7866_v26, %v8137_v25  ;;  %v8443_v1 = vmul.f32 %v7866_v26, %v8141_v52 }
 0x258   :  { %11362 = vst [vmem:[#allocation20_spill] sm:$0xff] %v8412_v45  ;;  %v8431_v11 = vmul.f32 %v7866_v26, %v11367_v21  ;;  %v11369_v45 = vld [vmem:[#allocation31_spill] sm:$0xff]  ;;  %v8458_v25 = vmul.f32 %v7866_v26, %v8153_v28  ;;  %v8462_v52 = vmul.f32 %v7866_v26, %v8157_v5  ;;  %v8478_v28 = vmul.f32 %v7866_v26, %v8181_v18 }
 0x259   :  { %11366 = vst [vmem:[#allocation22_spill] sm:$0xff] %v8424_v51  ;;  %v8435_v23 = vmul.f32 %v7866_v26, %v11369_v45  ;;  %v11370_v51 = vld [vmem:[#allocation13_spill] sm:$0xff]  ;;  %v8482_v5 = vmul.f32 %v7866_v26, %v8185_v35  ;;  %6221 = vmatpush3.bf16.msra.mxu0 %v6696_v50  ;;  %6398 = vmatprep.subr.bf16.mxu1 %v6697_v53 }
 0x25a   :  { %11368 = vst [vmem:[#allocation24_spill] sm:$0xff] %v8431_v11  ;;  %v8450_v21 = vmul.f32 %v7866_v26, %v11370_v51  ;;  %v11371_v11 = vld [vmem:[#allocation15_spill] sm:$0xff]  ;;  %v8470_v51 = vmul.f32 %v7866_v26, %v8167_v41  ;;  %v11372_v41 = vld [vmem:[#allocation12_spill] sm:$0xff] }
 0x25b   :  { %v8454_v45 = vmul.f32 %v7866_v26, %v11371_v11  ;;  %v8474_v11 = vmul.f32 %v7866_v26, %v8171_v10  ;;  %v8490_v63 = vadd.f32 %v11372_v41, %v8193_v61  ;;  %v8494_v10 = vadd.f32 %v11372_v41, %v8203_v9 }
 0x25c   :  { %v8498_v18 = vadd.f32 %v11372_v41, %v8207_v39  ;;  %v8502_v35 = vadd.f32 %v11372_v41, %v8211_v22  ;;  %v8506_v26 = vadd.f32 %v11372_v41, %v8215_v36  ;;  %v8510_v43 = vadd.f32 %v11372_v41, %v8219_v19  ;;  %v11377_v31 = vld [vmem:[#allocation19_spill] sm:$0xff]  ;;  %v11378_v50 = vld [vmem:[#allocation16_spill] sm:$0xff] }
 0x25d   :  { %v8514_v61 = vadd.f32 %v11372_v41, %v8223_v30  ;;  %v8518_v9 = vadd.f32 %v11372_v41, %v8227_v15  ;;  %v8522_v39 = vadd.f32 %v11372_v41, %v8231_v33  ;;  %v8526_v22 = vadd.f32 %v11372_v41, %v8235_v16  ;;  %v11379_v53 = vld [vmem:[#allocation18_spill] sm:$0xff] }
 0x25e   :  { %v8530_v36 = vadd.f32 %v11372_v41, %v8239_v44  ;;  %v8534_v19 = vadd.f32 %v11372_v41, %v8243_v60  ;;  %v8538_v30 = vadd.f32 %v11372_v41, %v8247_v49  ;;  %v8542_v15 = vadd.f32 %v11372_v41, %v8257_v56 }
 0x25f   :  { %v8546_v33 = vadd.f32 %v11372_v41, %v8261_v58  ;;  %v8550_v16 = vadd.f32 %v11372_v41, %v8265_v59  ;;  %v8554_v44 = vadd.f32 %v11372_v41, %v8269_v4  ;;  %v8558_v60 = vadd.f32 %v11372_v41, %v8279_v47 }
 0x260   :  { %v8562_v49 = vadd.f32 %v11372_v41, %v8283_v0  ;;  %v8566_v56 = vadd.f32 %v11372_v41, %v8287_v62  ;;  %v8570_v58 = vadd.f32 %v11372_v41, %v8291_v32  ;;  %v8574_v59 = vadd.f32 %v11372_v41, %v8295_v42 }
 0x261   :  { %v8578_v4 = vadd.f32 %v11372_v41, %v8299_v2  ;;  %v8582_v47 = vadd.f32 %v11372_v41, %v8303_v3  ;;  %v8586_v0 = vadd.f32 %v11372_v41, %v8307_v8  ;;  %v8590_v62 = vadd.f32 %v11372_v41, %v8311_v7 }
 0x262   :  { %v8594_v32 = vadd.f32 %v11372_v41, %v8315_v54  ;;  %v8598_v42 = vadd.f32 %v11372_v41, %v8319_v17  ;;  %v8602_v2 = vadd.f32 %v11372_v41, %v8323_v27  ;;  %v8606_v3 = vadd.f32 %v11372_v41, %v8336_v6 }
 0x263   :  { %v8610_v8 = vadd.f32 %v11372_v41, %v8340_v29  ;;  %v8614_v7 = vadd.f32 %v11372_v41, %v8344_v37  ;;  %v8618_v54 = vadd.f32 %v11372_v41, %v8348_v57  ;;  %v8622_v17 = vadd.f32 %v11372_v41, %v8355_v34  ;;  %v11375_v34 = vld [vmem:[#allocation17_spill] sm:$0xff] }
 0x264   :  { %v8626_v27 = vadd.f32 %v11372_v41, %v8359_v40  ;;  %v8630_v6 = vadd.f32 %v11372_v41, %v8363_v13  ;;  %v8634_v29 = vadd.f32 %v11372_v41, %v8367_v38  ;;  %v8638_v37 = vadd.f32 %v11372_v41, %v8374_v48 }
 0x265   :  { %v8642_v57 = vadd.f32 %v11372_v41, %v8378_v46  ;;  %v8646_v40 = vadd.f32 %v11372_v41, %v11375_v34  ;;  %v8650_v13 = vadd.f32 %v11372_v41, %v11377_v31  ;;  %v8654_v38 = vadd.f32 %v11372_v41, %v11378_v50 }
 0x266   :  { %11373 = vst [vmem:[#allocation14_spill] sm:$0xff] %v8638_v37  ;;  %v8658_v48 = vadd.f32 %v11372_v41, %v11379_v53  ;;  %v11381_v37 = vld [vmem:[#allocation21_spill] sm:$0xff]  ;;  %v8674_v50 = vadd.f32 %v11372_v41, %v8416_v24  ;;  %v8678_v53 = vadd.f32 %v11372_v41, %v8420_v14  ;;  %v8694_v24 = vadd.f32 %v11372_v41, %v8439_v55 }
 0x267   :  { %11374 = vst [vmem:[#allocation33_spill] sm:$0xff] %v8642_v57  ;;  %11376 = vst [vmem:[#allocation25_spill] sm:$0xff] %v8646_v40  ;;  %v8662_v46 = vadd.f32 %v11372_v41, %v11381_v37  ;;  %v11383_v57 = vld [vmem:[#allocation23_spill] sm:$0xff]  ;;  %v11384_v40 = vld [vmem:[#allocation20_spill] sm:$0xff]  ;;  %v8698_v14 = vadd.f32 %v11372_v41, %v8443_v1  ;;  %v8714_v55 = vadd.f32 %v11372_v41, %v8462_v52  ;;  %vm970_vm7 = vcmp.ge.f32.partialorder %v8490_v63, 0.0 }
 0x268   :  { %11380 = vst [vmem:[#allocation26_spill] sm:$0xff] %v8658_v48  ;;  %v8666_v34 = vadd.f32 %v11372_v41, %v11383_v57  ;;  %v8670_v31 = vadd.f32 %v11372_v41, %v11384_v40  ;;  %11385 = vst [vmem:[#allocation28_spill] sm:$0xff] %v8678_v53  ;;  %v11386_v48 = vld [vmem:[#allocation22_spill] sm:$0xff]  ;;  %v8690_v40 = vadd.f32 %v11372_v41, %v8435_v23  ;;  %vm971_vm8 = vcmp.ge.f32.partialorder %v8494_v10, 0.0 }
 0x269   :  { %11382 = vst [vmem:[#allocation27_spill] sm:$0xff] %v8662_v46  ;;  %v8682_v37 = vadd.f32 %v11372_v41, %v11386_v48  ;;  %v11388_v46 = vld [vmem:[#allocation24_spill] sm:$0xff]  ;;  %11391 = vst [vmem:[#allocation13_spill] sm:$0xff] %v8694_v24  ;;  %v8702_v48 = vadd.f32 %v11372_v41, %v8450_v21  ;;  %v8710_v23 = vadd.f32 %v11372_v41, %v8458_v25  ;;  %vm972_vm9 = vcmp.ge.f32.partialorder %v8498_v18, 0.0 }
 0x26a   :  { %v8686_v57 = vadd.f32 %v11372_v41, %v11388_v46  ;;  %11390 = vst [vmem:[#allocation31_spill] sm:$0xff] %v8690_v40  ;;  %11392 = vst [vmem:[#allocation15_spill] sm:$0xff] %v8698_v14  ;;  %v8706_v46 = vadd.f32 %v11372_v41, %v8454_v45  ;;  %v8718_v1 = vadd.f32 %v11372_v41, %v8466_v12  ;;  %vm973_vm10 = vcmp.ge.f32.partialorder %v8502_v35, 0.0 }
 0x26b   :  { %11387 = vst [vmem:[#allocation29_spill] sm:$0xff] %v8682_v37  ;;  %11393 = vst [vmem:[#allocation12_spill] sm:$0xff] %v8702_v48  ;;  %v8722_v21 = vadd.f32 %v11372_v41, %v8470_v51  ;;  %v8726_v45 = vadd.f32 %v11372_v41, %v8474_v11  ;;  %v8730_v25 = vadd.f32 %v11372_v41, %v8478_v28  ;;  %vm974_vm11 = vcmp.ge.f32.partialorder %v8506_v26, 0.0 }
 0x26c   :  { %11389 = vst [vmem:[#allocation30_spill] sm:$0xff] %v8686_v57  ;;  %11394 = vst [vmem:[#allocation17_spill] sm:$0xff] %v8706_v46  ;;  %v8734_v52 = vadd.f32 %v11372_v41, %v8482_v5  ;;  %v8738_v12 = vadd.f32 %v11372_v41, %v8486_v20  ;;  %vm975_vm12 = vcmp.ge.f32.partialorder %v8510_v43, 0.0  ;;  %vm976_vm13 = vcmp.ge.f32.partialorder %v8514_v61, 0.0 }
 0x26d   :  { %11395 = vst [vmem:[#allocation19_spill] sm:$0xff] %v8710_v23  ;;  %11396 = vst [vmem:[#allocation16_spill] sm:$0xff] %v8714_v55  ;;  %vm977_vm14 = vcmp.ge.f32.partialorder %v8518_v9, 0.0  ;;  %vm978_vm15 = vcmp.ge.f32.partialorder %v8522_v39, 0.0  ;;  %vm979_vm0 = vcmp.ge.f32.partialorder %v8526_v22, 0.0  ;;  %vm980_vm1 = vcmp.ge.f32.partialorder %v8530_v36, 0.0 }
 0x26e   :  { %11397 = vst [vmem:[#allocation18_spill] sm:$0xff] %v8718_v1  ;;  %11398 = vst [vmem:[#allocation21_spill] sm:$0xff] %v8722_v21  ;;  %v1034_v51 = vmul.f32 0.01, %v8490_v63  ;;  %v1035_v11 = vmul.f32 0.01, %v8494_v10 }
 0x26f   :  { %11399 = vst [vmem:[#allocation23_spill] sm:$0xff] %v8726_v45  ;;  %11400 = vst [vmem:[#allocation20_spill] sm:$0xff] %v8730_v25  ;;  %v1036_v28 = vmul.f32 0.01, %v8498_v18  ;;  %v1037_v5 = vmul.f32 0.01, %v8502_v35 }
 0x270   :  { %11401 = vst [vmem:[#allocation22_spill] sm:$0xff] %v8734_v52  ;;  %11402 = vst [vmem:[#allocation24_spill] sm:$0xff] %v8738_v12  ;;  %v1038_v20 = vmul.f32 0.01, %v8506_v26  ;;  %v1039_v41 = vmul.f32 0.01, %v8510_v43  ;;  %v8764_v45 = vsel %vm970_vm7, %v8490_v63, %v1034_v51  ;;  %v8775_v23 = vsel %vm971_vm8, %v8494_v10, %v1035_v11 }
 0x271   :  { %vm981_vm3 = vcmp.ge.f32.partialorder %v8534_v19, 0.0  ;;  %v1040_v12 = vmul.f32 0.01, %v8514_v61  ;;  %v1041_v52 = vmul.f32 0.01, %v8518_v9  ;;  %11403 = vst [vmem:[#allocation34_spill] sm:$0xff] %v8764_v45  ;;  %v8790_v45 = vsel %vm972_vm9, %v8498_v18, %v1036_v28 }
 0x272   :  { %v1042_v25 = vmul.f32 0.01, %v8522_v39  ;;  %vm982_vm4 = vcmp.ge.f32.partialorder %v8538_v30, 0.0  ;;  %v1043_v21 = vmul.f32 0.01, %v8526_v22  ;;  %11404 = vst [vmem:[#allocation35_spill] sm:$0xff] %v8775_v23  ;;  %v8805_v48 = vsel %vm973_vm10, %v8502_v35, %v1037_v5 }
 0x273   :  { %v1044_v1 = vmul.f32 0.01, %v8530_v36  ;;  %v8770_v55 = vmul.f32 0.01, %v8534_v19  ;;  %vm983_vm5 = vcmp.ge.f32.partialorder %v8542_v15, 0.0  ;;  %11405 = vst [vmem:[#allocation36_spill] sm:$0xff] %v8790_v45 }
 0x274   :  { %v8779_v46 = vmul.f32 0.01, %v8538_v30  ;;  %v8782_v63 = vmul.f32 0.01, %v8542_v15  ;;  %v8785_v51 = vmul.f32 0.01, %v8546_v33 }
 0x275   :  { %vm984_vm7 = vcmp.ge.f32.partialorder %v8546_v33, 0.0  ;;  %v8794_v10 = vmul.f32 0.01, %v8550_v16  ;;  %v8797_v11 = vmul.f32 0.01, %v8554_v44  ;;  %11407 = vst [vmem:[#allocation38_spill] sm:$0xff] %v8805_v48 }
 0x276   :  { %v8800_v23 = vmul.f32 0.01, %v8558_v60  ;;  %vm985_vm8 = vcmp.ge.f32.partialorder %v8550_v16, 0.0  ;;  %v8809_v18 = vmul.f32 0.01, %v8562_v49  ;;  %vm986_vm9 = vcmp.ge.f32.partialorder %v8554_v44, 0.0 }
 0x277   :  { %v8812_v28 = vmul.f32 0.01, %v8566_v56  ;;  %v8815_v45 = vmul.f32 0.01, %v8570_v58  ;;  %v8824_v35 = vmul.f32 0.01, %v8574_v59 }
 0x278   :  { %11406 = vst [vmem:[#allocation37_spill] sm:$0xff] %v8800_v23  ;;  %v8820_v23 = vsel %vm974_vm11, %v8506_v26, %v1038_v20  ;;  %v8827_v5 = vmul.f32 0.01, %v8578_v4  ;;  %v8830_v48 = vmul.f32 0.01, %v8582_v47 }
 0x279   :  { %11408 = vst [vmem:[#allocation39_spill] sm:$0xff] %v8815_v45  ;;  %11409 = vst [vmem:[#allocation40_spill] sm:$0xff] %v8820_v23  ;;  %v8835_v45 = vsel %vm975_vm12, %v8510_v43, %v1039_v41  ;;  %v8839_v26 = vmul.f32 0.01, %v8586_v0  ;;  %v8842_v20 = vmul.f32 0.01, %v8590_v62 }
 0x27a   :  { %11410 = vst [vmem:[#allocation41_spill] sm:$0xff] %v8830_v48  ;;  %11411 = vst [vmem:[#allocation42_spill] sm:$0xff] %v8835_v45  ;;  %v8845_v23 = vmul.f32 0.01, %v8594_v32  ;;  %v8850_v48 = vsel %vm976_vm13, %v8514_v61, %v1040_v12  ;;  %v8854_v43 = vmul.f32 0.01, %v8598_v42 }
 0x27b   :  { %11413 = vst [vmem:[#allocation44_spill] sm:$0xff] %v8850_v48  ;;  %v8857_v41 = vmul.f32 0.01, %v8602_v2  ;;  %v8860_v45 = vmul.f32 0.01, %v8606_v3  ;;  %vm989_vm12 = vcmp.ge.f32.partialorder %v8566_v56, 0.0 }
 0x27c   :  { %11412 = vst [vmem:[#allocation43_spill] sm:$0xff] %v8845_v23  ;;  %v8865_v23 = vsel %vm977_vm14, %v8518_v9, %v1041_v52  ;;  %v8872_v61 = vmul.f32 0.01, %v8610_v8  ;;  %v8875_v12 = vmul.f32 0.01, %v8614_v7  ;;  %v8883_v9 = vsel %vm978_vm15, %v8522_v39, %v1042_v25 }
 0x27d   :  { %11414 = vst [vmem:[#allocation45_spill] sm:$0xff] %v8865_v23  ;;  %v8878_v48 = vmul.f32 0.01, %v8618_v54  ;;  %11416 = vst [vmem:[#allocation47_spill] sm:$0xff] %v8883_v9  ;;  %vm993_vm14 = vcmp.ge.f32.partialorder %v8582_v47, 0.0  ;;  %v8901_v39 = vsel %vm979_vm0, %v8526_v22, %v1043_v21  ;;  %vm997_vm15 = vcmp.ge.f32.partialorder %v8598_v42, 0.0 }
 0x27e   :  { %v8890_v52 = vmul.f32 0.01, %v8622_v17  ;;  %v8893_v23 = vmul.f32 0.01, %v8626_v27  ;;  %11420 = vst [vmem:[#allocation51_spill] sm:$0xff] %v8901_v39  ;;  %v11421_v9 = vld [vmem:[#allocation14_spill] sm:$0xff]  ;;  %v8919_v22 = vsel %vm980_vm1, %v8530_v36, %v1044_v1  ;;  %v8938_v36 = vsel %vm981_vm3, %v8534_v19, %v8770_v55 }
 0x27f   :  { %11415 = vst [vmem:[#allocation46_spill] sm:$0xff] %v8878_v48  ;;  %v8896_v48 = vmul.f32 0.01, %v8630_v6  ;;  %v8908_v25 = vmul.f32 0.01, %v8634_v29  ;;  %11425 = vst [vmem:[#allocation52_spill] sm:$0xff] %v8919_v22  ;;  %v8957_v19 = vsel %vm982_vm4, %v8538_v30, %v8779_v46  ;;  %v8976_v30 = vsel %vm983_vm5, %v8542_v15, %v8782_v63 }
 0x280   :  { %11417 = vst [vmem:[#allocation48_spill] sm:$0xff] %v8890_v52  ;;  %11418 = vst [vmem:[#allocation49_spill] sm:$0xff] %v8893_v23  ;;  %v8911_v23 = vmul.f32 0.01, %v11421_v9  ;;  %vm1001_vm0 = vcmp.ge.f32.partialorder %v8614_v7, 0.0  ;;  %v11426_v21 = vld [vmem:[#allocation25_spill] sm:$0xff]  ;;  %v8995_v15 = vsel %vm984_vm7, %v8546_v33, %v8785_v51  ;;  %v9008_v33 = vsel %vm985_vm8, %v8550_v16, %v8794_v10 }
 0x281   :  { %11419 = vst [vmem:[#allocation50_spill] sm:$0xff] %v8896_v48  ;;  %v11423_v48 = vld [vmem:[#allocation33_spill] sm:$0xff]  ;;  %v8926_v39 = vmul.f32 0.01, %v11426_v21  ;;  %11430 = vst [vmem:[#allocation55_spill] sm:$0xff] %v8938_v36  ;;  %vm1005_vm1 = vcmp.ge.f32.partialorder %v8630_v6, 0.0  ;;  %v9021_v16 = vsel %vm986_vm9, %v8554_v44, %v8797_v11 }
 0x282   :  { %11422 = vst [vmem:[#allocation14_spill] sm:$0xff] %v8911_v23  ;;  %v8914_v52 = vmul.f32 0.01, %v11423_v48  ;;  %v8929_v23 = vmul.f32 0.01, %v8650_v13  ;;  %v11431_v1 = vld [vmem:[#allocation26_spill] sm:$0xff] }
 0x283   :  { %11427 = vst [vmem:[#allocation25_spill] sm:$0xff] %v8926_v39  ;;  %v8945_v22 = vmul.f32 0.01, %v11431_v1  ;;  %vm1009_vm3 = vcmp.ge.f32.partialorder %v11426_v21, 0.0  ;;  %v8964_v55 = vmul.f32 0.01, %v8670_v31 }
 0x284   :  { %11424 = vst [vmem:[#allocation33_spill] sm:$0xff] %v8914_v52  ;;  %11428 = vst [vmem:[#allocation53_spill] sm:$0xff] %v8929_v23  ;;  %v8932_v52 = vmul.f32 0.01, %v8654_v38  ;;  %v11432_v23 = vld [vmem:[#allocation27_spill] sm:$0xff]  ;;  %vm1017_vm5 = vcmp.ge.f32.partialorder %v8678_v53, 0.0 }
 0x285   :  { %v8948_v39 = vmul.f32 0.01, %v11432_v23  ;;  %11434 = vst [vmem:[#allocation27_spill] sm:$0xff] %v8957_v19  ;;  %v8967_v36 = vmul.f32 0.01, %v8674_v50  ;;  %11436 = vst [vmem:[#allocation57_spill] sm:$0xff] %v8976_v30 }
 0x286   :  { %11429 = vst [vmem:[#allocation54_spill] sm:$0xff] %v8932_v52  ;;  %v8951_v52 = vmul.f32 0.01, %v8666_v34  ;;  %vm1013_vm4 = vcmp.ge.f32.partialorder %v11432_v23, 0.0  ;;  %v8983_v46 = vmul.f32 0.01, %v8682_v37 }
 0x287   :  { %v8986_v19 = vmul.f32 0.01, %v8686_v57  ;;  %11440 = vst [vmem:[#allocation61_spill] sm:$0xff] %v8995_v15  ;;  %v1085_v63 = vmul.f32 0.01, %v8694_v24  ;;  %11442 = vst [vmem:[#allocation62_spill] sm:$0xff] %v9008_v33 }
 0x288   :  { %11433 = vst [vmem:[#allocation26_spill] sm:$0xff] %v8951_v52  ;;  %v8970_v52 = vmul.f32 0.01, %v8678_v53  ;;  %11437 = vst [vmem:[#allocation58_spill] sm:$0xff] %v8983_v46  ;;  %v1086_v30 = vmul.f32 0.01, %v8698_v14 }
 0x289   :  { %11438 = vst [vmem:[#allocation59_spill] sm:$0xff] %v8986_v19  ;;  %v11441_v19 = vld [vmem:[#allocation12_spill] sm:$0xff]  ;;  %v11443_v51 = vld [vmem:[#allocation17_spill] sm:$0xff]  ;;  %11446 = vst [vmem:[#allocation63_spill] sm:$0xff] %v9021_v16  ;;  %vm11451_vm7 = vcmp.ge.f32.partialorder %v8558_v60, 0.0  ;;  %vm11456_vm8 = vcmp.ge.f32.partialorder %v8562_v49, 0.0 }
 0x28a   :  { %11435 = vst [vmem:[#allocation56_spill] sm:$0xff] %v8970_v52  ;;  %v8989_v52 = vmul.f32 0.01, %v8690_v40  ;;  %v1088_v15 = vmul.f32 0.01, %v11443_v51  ;;  %v11444_v40 = vld [vmem:[#allocation19_spill] sm:$0xff] }
 0x28b   :  { %v1089_v57 = vmul.f32 0.01, %v11444_v40  ;;  %v11445_v37 = vld [vmem:[#allocation16_spill] sm:$0xff]  ;;  %v11447_v10 = vld [vmem:[#allocation18_spill] sm:$0xff]  ;;  %v11448_v33 = vld [vmem:[#allocation21_spill] sm:$0xff]  ;;  %vm11459_vm13 = vcmp.ge.f32.partialorder %v8574_v59, 0.0 }
 0x28c   :  { %11439 = vst [vmem:[#allocation60_spill] sm:$0xff] %v8989_v52  ;;  %v1087_v52 = vmul.f32 0.01, %v11441_v19  ;;  %v1090_v46 = vmul.f32 0.01, %v11445_v37  ;;  %v11449_v14 = vld [vmem:[#allocation23_spill] sm:$0xff] }
 0x28d   :  { %v1091_v51 = vmul.f32 0.01, %v11447_v10  ;;  %v1092_v19 = vmul.f32 0.01, %v11448_v33  ;;  %v1093_v24 = vmul.f32 0.01, %v11449_v14 }
 0x28e   :  { %v11450_v53 = vld [vmem:[#allocation37_spill] sm:$0xff]  ;;  %vm1029_vm9 = vcmp.ge.f32.partialorder %v11449_v14, 0.0  ;;  %v11453_v11 = vld [vmem:[#allocation20_spill] sm:$0xff]  ;;  %v11454_v16 = vld [vmem:[#allocation22_spill] sm:$0xff] }
 0x28f   :  { %v9034_v44 = vsel %vm11451_vm7, %v8558_v60, %v11450_v53  ;;  %vm1030_vm11 = vcmp.ge.f32.partialorder %v11453_v11, 0.0  ;;  %vm1032_vm10 = vcmp.ge.f32.partialorder %v11454_v16, 0.0  ;;  %v11455_v37 = vld [vmem:[#allocation24_spill] sm:$0xff]  ;;  %v1094_v10 = vmul.f32 0.01, %v11453_v11 }
 0x290   :  { %11452 = vst [vmem:[#allocation23_spill] sm:$0xff] %v9034_v44  ;;  %v1096_v33 = vmul.f32 0.01, %v11454_v16  ;;  %v1097_v40 = vmul.f32 0.01, %v11455_v37  ;;  %v9047_v60 = vsel %vm11456_vm8, %v8562_v49, %v8809_v18  ;;  %v9053_v53 = vsel %vm989_vm12, %v8566_v56, %v8812_v28  ;;  %v11457_v44 = vld [vmem:[#allocation39_spill] sm:$0xff] }
 0x291   :  { %vm11458_vm7 = vcmp.ge.f32.partialorder %v8570_v58, 0.0  ;;  %v9065_v37 = vsel %vm11459_vm13, %v8574_v59, %v8824_v35  ;;  %vm11460_vm8 = vcmp.ge.f32.partialorder %v8578_v4, 0.0  ;;  %v11461_v56 = vld [vmem:[#allocation41_spill] sm:$0xff]  ;;  %vm11462_vm12 = vcmp.ge.f32.partialorder %v8586_v0, 0.0 }
 0x292   :  { %v9059_v11 = vsel %vm11458_vm7, %v8570_v58, %v11457_v44  ;;  %v9071_v49 = vsel %vm11460_vm8, %v8578_v4, %v8827_v5  ;;  %v9077_v18 = vsel %vm993_vm14, %v8582_v47, %v11461_v56  ;;  %v9083_v58 = vsel %vm11462_vm12, %v8586_v0, %v8839_v26  ;;  %v11464_v4 = vld [vmem:[#allocation43_spill] sm:$0xff]  ;;  %v11494_v44 = vld [vmem:[#allocation29_spill] sm:$0xff] }
 0x293   :  { %vm11463_vm13 = vcmp.ge.f32.partialorder %v8590_v62, 0.0  ;;  %vm11465_vm7 = vcmp.ge.f32.partialorder %v8594_v32, 0.0  ;;  %v9101_v47 = vsel %vm997_vm15, %v8598_v42, %v8854_v43  ;;  %vm11466_vm14 = vcmp.ge.f32.partialorder %v8602_v2, 0.0 }
 0x294   :  { %v9089_v59 = vsel %vm11463_vm13, %v8590_v62, %v8842_v20  ;;  %v9095_v28 = vsel %vm11465_vm7, %v8594_v32, %v11464_v4  ;;  %v9107_v0 = vsel %vm11466_vm14, %v8602_v2, %v8857_v41  ;;  %vm11467_vm8 = vcmp.ge.f32.partialorder %v8606_v3, 0.0  ;;  %v11469_v2 = vld [vmem:[#allocation46_spill] sm:$0xff] }
 0x295   :  { %v9113_v62 = vsel %vm11467_vm8, %v8606_v3, %v8860_v45  ;;  %vm11468_vm12 = vcmp.ge.f32.partialorder %v8610_v8, 0.0  ;;  %v9125_v42 = vsel %vm1001_vm0, %v8614_v7, %v8875_v12  ;;  %vm11470_vm15 = vcmp.ge.f32.partialorder %v8618_v54, 0.0  ;;  %v11471_v3 = vld [vmem:[#allocation48_spill] sm:$0xff]  ;;  %v11475_v7 = vld [vmem:[#allocation50_spill] sm:$0xff] }
 0x296   :  { %v9119_v32 = vsel %vm11468_vm12, %v8610_v8, %v8872_v61  ;;  %v9131_v35 = vsel %vm11470_vm15, %v8618_v54, %v11469_v2  ;;  %vm11472_vm13 = vcmp.ge.f32.partialorder %v8622_v17, 0.0  ;;  %v11473_v8 = vld [vmem:[#allocation49_spill] sm:$0xff]  ;;  %vm11474_vm7 = vcmp.ge.f32.partialorder %v8626_v27, 0.0  ;;  %v11484_v12 = vld [vmem:[#allocation54_spill] sm:$0xff] }
 0x297   :  { %v9137_v45 = vsel %vm11472_vm13, %v8622_v17, %v11471_v3  ;;  %v9143_v5 = vsel %vm11474_vm7, %v8626_v27, %v11473_v8  ;;  %v9149_v26 = vsel %vm1005_vm1, %v8630_v6, %v11475_v7  ;;  %vm11476_vm0 = vcmp.ge.f32.partialorder %v8634_v29, 0.0  ;;  %v11477_v17 = vld [vmem:[#allocation14_spill] sm:$0xff]  ;;  %v11479_v27 = vld [vmem:[#allocation33_spill] sm:$0xff]  ;;  %v11504_v7 = vld [vmem:[#allocation15_spill] sm:$0xff] }
 0x298   :  { %v9155_v54 = vsel %vm11476_vm0, %v8634_v29, %v8908_v25  ;;  %vm11478_vm14 = vcmp.ge.f32.partialorder %v11421_v9, 0.0  ;;  %vm11480_vm8 = vcmp.ge.f32.partialorder %v11423_v48, 0.0  ;;  %v11481_v6 = vld [vmem:[#allocation25_spill] sm:$0xff]  ;;  %vm11483_vm1 = vcmp.ge.f32.partialorder %v8650_v13, 0.0 }
 0x299   :  { %v9161_v20 = vsel %vm11478_vm14, %v11421_v9, %v11477_v17  ;;  %v9167_v43 = vsel %vm11480_vm8, %v11423_v48, %v11479_v27  ;;  %v9173_v41 = vsel %vm1009_vm3, %v11426_v21, %v11481_v6  ;;  %v11482_v29 = vld [vmem:[#allocation53_spill] sm:$0xff]  ;;  %vm11485_vm12 = vcmp.ge.f32.partialorder %v8654_v38, 0.0  ;;  %v11506_v27 = vld [vmem:[#allocation12_spill] sm:$0xff] }
 0x29a   :  { %v9179_v61 = vsel %vm11483_vm1, %v8650_v13, %v11482_v29  ;;  %v9185_v9 = vsel %vm11485_vm12, %v8654_v38, %v11484_v12  ;;  %vm11486_vm15 = vcmp.ge.f32.partialorder %v11431_v1, 0.0  ;;  %v9197_v25 = vsel %vm1013_vm4, %v11432_v23, %v8948_v39  ;;  %v11487_v13 = vld [vmem:[#allocation26_spill] sm:$0xff]  ;;  %v11491_v23 = vld [vmem:[#allocation56_spill] sm:$0xff]  ;;  %v11502_v3 = vld [vmem:[#allocation13_spill] sm:$0xff] }
 0x29b   :  { %v9191_v48 = vsel %vm11486_vm15, %v11431_v1, %v8945_v22  ;;  %vm11488_vm3 = vcmp.ge.f32.partialorder %v8666_v34, 0.0  ;;  %vm11489_vm13 = vcmp.ge.f32.partialorder %v8670_v31, 0.0  ;;  %vm11490_vm7 = vcmp.ge.f32.partialorder %v8674_v50, 0.0  ;;  %v11492_v39 = vld [vmem:[#allocation28_spill] sm:$0xff]  ;;  %v11508_v29 = vld [vmem:[#allocation17_spill] sm:$0xff] }
 0x29c   :  { %v9203_v21 = vsel %vm11488_vm3, %v8666_v34, %v11487_v13  ;;  %v9209_v38 = vsel %vm11489_vm13, %v8670_v31, %v8964_v55  ;;  %v9215_v22 = vsel %vm11490_vm7, %v8674_v50, %v8967_v36  ;;  %v9221_v1 = vsel %vm1017_vm5, %v11492_v39, %v11491_v23  ;;  %v11493_v34 = vld [vmem:[#allocation58_spill] sm:$0xff]  ;;  %v11496_v31 = vld [vmem:[#allocation59_spill] sm:$0xff]  ;;  %v11499_v50 = vld [vmem:[#allocation60_spill] sm:$0xff] }
 0x29d   :  { %vm11495_vm4 = vcmp.ge.f32.partialorder %v11494_v44, 0.0  ;;  %v11497_v55 = vld [vmem:[#allocation30_spill] sm:$0xff]  ;;  %v11500_v36 = vld [vmem:[#allocation31_spill] sm:$0xff]  ;;  %vm11503_vm5 = vcmp.ge.f32.partialorder %v11502_v3, 0.0  ;;  %vm11505_vm8 = vcmp.ge.f32.partialorder %v11504_v7, 0.0  ;;  %vm11507_vm1 = vcmp.ge.f32.partialorder %v11506_v27, 0.0 }
 0x29e   :  { %v9227_v56 = vsel %vm11495_vm4, %v11494_v44, %v11493_v34  ;;  %vm11498_vm0 = vcmp.ge.f32.partialorder %v11497_v55, 0.0  ;;  %vm11501_vm14 = vcmp.ge.f32.partialorder %v11500_v36, 0.0  ;;  %v9244_v8 = vsel %vm11503_vm5, %v11502_v3, %v1085_v63  ;;  %v11510_v13 = vld [vmem:[#allocation19_spill] sm:$0xff]  ;;  %v11512_v23 = vld [vmem:[#allocation16_spill] sm:$0xff]  ;;  %v11514_v39 = vld [vmem:[#allocation18_spill] sm:$0xff] }
 0x29f   :  { %v9233_v4 = vsel %vm11498_vm0, %v11497_v55, %v11496_v31  ;;  %v9239_v2 = vsel %vm11501_vm14, %v11500_v36, %v11499_v50  ;;  %v9249_v17 = vsel %vm11505_vm8, %v11504_v7, %v1086_v30  ;;  %v9254_v6 = vsel %vm11507_vm1, %v11506_v27, %v1087_v52  ;;  %v11516_v34 = vld [vmem:[#allocation21_spill] sm:$0xff]  ;;  %v11518_v44 = vld [vmem:[#allocation20_spill] sm:$0xff]  ;;  %v11524_v55 = vld [vmem:[#allocation34_spill] sm:$0xff] }
 0x2a0   :  { %vm11509_vm12 = vcmp.ge.f32.partialorder %v11508_v29, 0.0  ;;  %vm11511_vm15 = vcmp.ge.f32.partialorder %v11510_v13, 0.0  ;;  %vm11513_vm3 = vcmp.ge.f32.partialorder %v11512_v23, 0.0  ;;  %vm11515_vm13 = vcmp.ge.f32.partialorder %v11514_v39, 0.0  ;;  %v11521_v31 = vld [vmem:[#allocation24_spill] sm:$0xff]  ;;  %v11527_v3 = vld [vmem:[#allocation38_spill] sm:$0xff] }
 0x2a1   :  { %v9259_v12 = vsel %vm11509_vm12, %v11508_v29, %v1088_v15  ;;  %v9264_v63 = vsel %vm11511_vm15, %v11510_v13, %v1089_v57  ;;  %v9269_v30 = vsel %vm11513_vm3, %v11512_v23, %v1090_v46  ;;  %v9274_v52 = vsel %vm11515_vm13, %v11514_v39, %v1091_v51  ;;  %v11526_v36 = vld [vmem:[#allocation36_spill] sm:$0xff]  ;;  %v11531_v23 = vld [vmem:[#allocation45_spill] sm:$0xff] }
 0x2a2   :  { %vm11517_vm7 = vcmp.ge.f32.partialorder %v11516_v34, 0.0  ;;  %v9284_v57 = vsel %vm1029_vm9, %v11449_v14, %v1093_v24  ;;  %v9289_v46 = vsel %vm1030_vm11, %v11518_v44, %v1094_v10  ;;  %v9294_v51 = vsel %vm1032_vm10, %v11454_v16, %v1096_v33  ;;  %v11525_v24 = vld [vmem:[#allocation35_spill] sm:$0xff]  ;;  %v11528_v27 = vld [vmem:[#allocation40_spill] sm:$0xff]  ;;  %v11529_v16 = vld [vmem:[#allocation42_spill] sm:$0xff] }
 0x2a3   :  { %v9279_v15 = vsel %vm11517_vm7, %v11516_v34, %v1092_v19  ;;  %11519 = vst [vmem:[#allocation37_spill] sm:$0xff] %v9289_v46  ;;  %11520 = vst [vmem:[#allocation22_spill] sm:$0xff] %v9294_v51  ;;  %vm11522_vm4 = vcmp.ge.f32.partialorder %v11521_v31, 0.0  ;;  %v5942_v50 = vpack.c.bf16 %v11524_v55, %v11524_v55  ;;  %v5943_v14 = vpack.c.bf16 %v11525_v24, %v11525_v24  ;;  %v11532_v34 = vld [vmem:[#allocation47_spill] sm:$0xff]  ;;  %v11534_v24 = vld [vmem:[#allocation52_spill] sm:$0xff] }
 0x2a4   :  { %v9299_v19 = vsel %vm11522_vm4, %v11521_v31, %v1097_v40  ;;  %v5944_v10 = vpack.c.bf16 %v11526_v36, %v11526_v36  ;;  %v5945_v7 = vpack.c.bf16 %v11527_v3, %v11527_v3  ;;  %v5946_v33 = vpack.c.bf16 %v11528_v27, %v11528_v27  ;;  %v11530_v40 = vld [vmem:[#allocation44_spill] sm:$0xff]  ;;  %v11533_v31 = vld [vmem:[#allocation51_spill] sm:$0xff] }
 0x2a5   :  { %11523 = vst [vmem:[#allocation39_spill] sm:$0xff] %v9299_v19  ;;  %v5947_v29 = vpack.c.bf16 %v11529_v16, %v11529_v16  ;;  %v5948_v13 = vpack.c.bf16 %v11530_v40, %v11530_v40  ;;  %v5949_v39 = vpack.c.bf16 %v11531_v23, %v11531_v23  ;;  %v5950_v44 = vpack.c.bf16 %v11532_v34, %v11532_v34  ;;  %v11535_v3 = vld [vmem:[#allocation55_spill] sm:$0xff]  ;;  %v11537_v23 = vld [vmem:[#allocation57_spill] sm:$0xff] }
 0x2a6   :  { %v5951_v55 = vpack.c.bf16 %v11533_v31, %v11533_v31  ;;  %v5952_v36 = vpack.c.bf16 %v11534_v24, %v11534_v24  ;;  %v5953_v27 = vpack.c.bf16 %v11535_v3, %v11535_v3  ;;  %1588 = vst [vmem:[#allocation2 + $0x1b0] sm:$0xf] %v5942_v50  ;;  %1589 = vst [vmem:[#allocation2 + $0x1b8] sm:$0xf] %v5943_v14  ;;  %v11536_v16 = vld [vmem:[#allocation27_spill] sm:$0xff]  ;;  %v11538_v34 = vld [vmem:[#allocation61_spill] sm:$0xff] }
 0x2a7   :  { %1590 = vst [vmem:[#allocation2 + $0x1c0] sm:$0xf] %v5944_v10  ;;  %1591 = vst [vmem:[#allocation2 + $0x1c8] sm:$0xf] %v5945_v7  ;;  %v5954_v40 = vpack.c.bf16 %v11536_v16, %v11536_v16  ;;  %v5955_v19 = vpack.c.bf16 %v11537_v23, %v11537_v23  ;;  %v5956_v51 = vpack.c.bf16 %v11538_v34, %v11538_v34  ;;  %v11539_v31 = vld [vmem:[#allocation62_spill] sm:$0xff]  ;;  %vm1316_vm9 = vcmask 1044484  }
 0x2a8   :  { %v5957_v46 = vpack.c.bf16 %v11539_v31, %v11539_v31  ;;  %1592 = vst [vmem:[#allocation2 + $0x1d0] sm:$0xf] %v5946_v33  ;;  %1593 = vst [vmem:[#allocation2 + $0x1d8] sm:$0xf] %v5947_v29  ;;  %v5958_v50 = vpack.c.bf16 %v9131_v35, %v9131_v35  ;;  %v5959_v14 = vpack.c.bf16 %v9137_v45, %v9137_v45  ;;  %vm2138_vm10 = vsmask.f32 7440 }
 0x2a9   :  { %1594 = vst [vmem:[#allocation2 + $0x1e0] sm:$0xf] %v5948_v13  ;;  %1595 = vst [vmem:[#allocation2 + $0x1e8] sm:$0xf] %v5949_v39  ;;  %v5960_v10 = vpack.c.bf16 %v9143_v5, %v9143_v5  ;;  %v5961_v7 = vpack.c.bf16 %v9149_v26, %v9149_v26  ;;  %v5962_v33 = vpack.c.bf16 %v9155_v54, %v9155_v54  ;;  %vm1317_vm0 = vsmask.f32 4352 }
 0x2aa   :  { %1596 = vst [vmem:[#allocation2 + $0x1f8] sm:$0xf] %v5950_v44  ;;  %1597 = vst [vmem:[#allocation2 + $0x200] sm:$0xf] %v5951_v55  ;;  %v5963_v29 = vpack.c.bf16 %v9161_v20, %v9161_v20  ;;  %v5964_v35 = vpack.c.bf16 %v9167_v43, %v9167_v43  ;;  %v5965_v45 = vpack.c.bf16 %v9173_v41, %v9173_v41 }
 0x2ab   :  { %1598 = vst [vmem:[#allocation2 + $0x208] sm:$0xf] %v5952_v36  ;;  %1599 = vst [vmem:[#allocation2 + $0x210] sm:$0xf] %v5953_v27  ;;  %v5966_v5 = vpack.c.bf16 %v9179_v61, %v9179_v61  ;;  %v5967_v26 = vpack.c.bf16 %v9185_v9, %v9185_v9  ;;  %v5968_v54 = vpack.c.bf16 %v9191_v48, %v9191_v48  ;;  %v11540_v48 = vld [vmem:[#allocation63_spill] sm:$0xff] }
 0x2ac   :  { %1600 = vst [vmem:[#allocation2 + $0x218] sm:$0xf] %v5954_v40  ;;  %1601 = vst [vmem:[#allocation2 + $0x220] sm:$0xf] %v5955_v19  ;;  %v5969_v20 = vpack.c.bf16 %v9197_v25, %v9197_v25  ;;  %v5970_v43 = vpack.c.bf16 %v9203_v21, %v9203_v21  ;;  %v5971_v41 = vpack.c.bf16 %v9209_v38, %v9209_v38 }
 0x2ad   :  { %1602 = vst [vmem:[#allocation2 + $0x228] sm:$0xf] %v5956_v51  ;;  %1603 = vst [vmem:[#allocation2 + $0x230] sm:$0xf] %v5957_v46  ;;  %v5972_v61 = vpack.c.bf16 %v9215_v22, %v9215_v22  ;;  %v5973_v9 = vpack.c.bf16 %v9221_v1, %v9221_v1  ;;  %v5974_v25 = vpack.c.bf16 %v11540_v48, %v11540_v48  ;;  %v11541_v46 = vld [vmem:[#allocation23_spill] sm:$0xff] }
 0x2ae   :  { %1800 = vst [vmem:[#allocation2 + $0x98] sm:$0xf] %v5958_v50  ;;  %1801 = vst [vmem:[#allocation2 + $0xa0] sm:$0xf] %v5959_v14  ;;  %v5975_v51 = vpack.c.bf16 %v11541_v46, %v11541_v46  ;;  %v5976_v21 = vpack.c.bf16 %v9047_v60, %v9047_v60  ;;  %v5977_v38 = vpack.c.bf16 %v9053_v53, %v9053_v53  ;;  %v6690_v60 = vld [vmem:[#allocation2 + $0x1b0] ss:$8 sps:$4 sm:$0xff]  }
 0x2af   :  { %1802 = vst [vmem:[#allocation2 + $0xa8] sm:$0xf] %v5960_v10  ;;  %1803 = vst [vmem:[#allocation2 + $0xb0] sm:$0xf] %v5961_v7  ;;  %v5978_v22 = vpack.c.bf16 %v9059_v11, %v9059_v11  ;;  %v5979_v1 = vpack.c.bf16 %v9065_v37, %v9065_v37  ;;  %v5980_v19 = vpack.c.bf16 %v9071_v49, %v9071_v49  ;;  %3245 = vmatprep.mubr.bf16.mxu1 %v6690_v60  ;;  %v1757_v60 = vld [vmem:[#allocation2 + $0x130] sm:$0x1f] }
 0x2b0   :  { %1804 = vst [vmem:[#allocation2 + $0xb8] sm:$0xf] %v5962_v33  ;;  %1805 = vst [vmem:[#allocation2 + $0xc0] sm:$0xf] %v5963_v29  ;;  %v5981_v13 = vpack.c.bf16 %v9077_v18, %v9077_v18  ;;  %v5982_v53 = vpack.c.bf16 %v9083_v58, %v9083_v58  ;;  %v5983_v11 = vpack.c.bf16 %v9089_v59, %v9089_v59  ;;  %v1628_v44 = vshrl.u32 %v5975_v51, 16 }
 0x2b1   :  { %1806 = vst [vmem:[#allocation2 + $0xc8] sm:$0xf] %v5964_v35  ;;  %1807 = vst [vmem:[#allocation2 + $0xd0] sm:$0xf] %v5965_v45  ;;  %v9387_v37 = vpack.c.bf16 %v9095_v28, %v9095_v28  ;;  %v9391_v49 = vpack.c.bf16 %v9101_v47, %v9101_v47  ;;  %v9395_v18 = vpack.c.bf16 %v9107_v0, %v9107_v0  ;;  %v1621_v28 = vshrl.u32 %v5974_v25, 16 }
 0x2b2   :  { %1808 = vst [vmem:[#allocation2 + $0xe0] sm:$0xf] %v5966_v5  ;;  %1809 = vst [vmem:[#allocation2 + $0xe8] sm:$0xf] %v5967_v26  ;;  %v9399_v39 = vpack.c.bf16 %v9113_v62, %v9113_v62  ;;  %v9403_v58 = vpack.c.bf16 %v9119_v32, %v9119_v32  ;;  %v9407_v59 = vpack.c.bf16 %v9125_v42, %v9125_v42  ;;  %v1624_v47 = vshll.u32 %v5974_v25, 16 }
 0x2b3   :  { %1810 = vst [vmem:[#allocation2 + $0xf0] sm:$0xf] %v5968_v54  ;;  %1811 = vst [vmem:[#allocation2 + $0xf8] sm:$0xf] %v5969_v20  ;;  %v1631_v55 = vshll.u32 %v5975_v51, 16  ;;  %v1635_v24 = vshrl.u32 %v5976_v21, 16 }
 0x2b4   :  { %1812 = vst [vmem:[#allocation2 + $0x100] sm:$0xf] %v5970_v43  ;;  %1813 = vst [vmem:[#allocation2 + $0x108] sm:$0xf] %v5971_v41  ;;  %v1638_v0 = vshll.u32 %v5976_v21, 16  ;;  %v1642_v36 = vshrl.u32 %v5977_v38, 16 }
 0x2b5   :  { %1814 = vst [vmem:[#allocation2 + $0x110] sm:$0xf] %v5972_v61  ;;  %1815 = vst [vmem:[#allocation2 + $0x118] sm:$0xf] %v5973_v9  ;;  %v1645_v3 = vshll.u32 %v5977_v38, 16  ;;  %v1623_v27 = vrot.slane %v1621_v28, 7 }
 0x2b6   :  { %v1630_v62 = vrot.slane %v1628_v44, 7  ;;  %v1649_v16 = vshrl.u32 %v5978_v22, 16  ;;  %v1652_v40 = vshll.u32 %v5978_v22, 16  ;;  %v1637_v23 = vrot.slane %v1635_v24, 7  ;;  %v6692_v50 = vld [vmem:[#allocation2 + $0x98] ss:$8 sps:$4 sm:$0xff]   ;;  %vm9867_vm14 = vmand %vm1316_vm9, %vm1317_vm0 }
 0x2b7   :  { %v1644_v32 = vrot.slane %v1642_v36, 7  ;;  %v1656_v34 = vshrl.u32 %v5979_v1, 16  ;;  %v1659_v31 = vshll.u32 %v5979_v1, 16  ;;  %v1626_v42 = vor.u32 %v1624_v47, %v1623_v27  ;;  %4450 = vmatprep.mubr.bf16.mxu0 %v6692_v50  ;;  %v1751_v21 = vld [vmem:[#allocation2 + $0x120] sm:$0x1f] }
 0x2b8   :  { %v9409_v14 = vor.u32 %v1631_v55, %v1630_v62  ;;  %v1651_v10 = vrot.slane %v1649_v16, 7  ;;  %v1663_v7 = vshrl.u32 %v5980_v19, 16  ;;  %v9411_v33 = vor.u32 %v1638_v0, %v1637_v23  ;;  %v1760_v55 = vld [vmem:[#allocation2 + $0x138] sm:$0x1f]  ;;  %v1763_v24 = vld [vmem:[#allocation2 + $0x140] sm:$0x1f] }
 0x2b9   :  { %v9413_v29 = vor.u32 %v1645_v3, %v1644_v32  ;;  %v1658_v35 = vrot.slane %v1656_v34, 7  ;;  %v1666_v45 = vshll.u32 %v5980_v19, 16  ;;  %v1670_v54 = vshrl.u32 %v5981_v13, 16  ;;  %v1769_v62 = vld [vmem:[#allocation2 + $0x150] sm:$0x1f] }
 0x2ba   :  { %v9415_v5 = vor.u32 %v1652_v40, %v1651_v10  ;;  %v1665_v26 = vrot.slane %v1663_v7, 7  ;;  %v1673_v20 = vshll.u32 %v5981_v13, 16  ;;  %v1677_v41 = vshrl.u32 %v5982_v53, 16  ;;  %v1754_v13 = vld [vmem:[#allocation2 + $0x128] sm:$0x1f] }
 0x2bb   :  { %v9417_v43 = vor.u32 %v1659_v31, %v1658_v35  ;;  %v1680_v61 = vshll.u32 %v5982_v53, 16  ;;  %v1684_v9 = vshrl.u32 %v5983_v11, 16  ;;  %v1672_v25 = vrot.slane %v1670_v54, 7  ;;  %v1781_v34 = vld [vmem:[#allocation2 + $0x178] sm:$0x1f] }
 0x2bc   :  { %v9419_v48 = vor.u32 %v1666_v45, %v1665_v26  ;;  %v1687_v46 = vshll.u32 %v5983_v11, 16  ;;  %v1691_v51 = vshrl.u32 %v9387_v37, 16  ;;  %v1679_v38 = vrot.slane %v1677_v41, 7  ;;  %v1766_v11 = vld [vmem:[#allocation2 + $0x148] sm:$0x1f] }
 0x2bd   :  { %v1686_v22 = vrot.slane %v1684_v9, 7  ;;  %v1694_v1 = vshll.u32 %v9387_v37, 16  ;;  %v1698_v19 = vshrl.u32 %v9391_v49, 16  ;;  %v1675_v28 = vor.u32 %v1673_v20, %v1672_v25  ;;  %v1772_v37 = vld [vmem:[#allocation2 + $0x158] sm:$0x1f] }
 0x2be   :  { %v1693_v47 = vrot.slane %v1691_v51, 7  ;;  %v1701_v53 = vshll.u32 %v9391_v49, 16  ;;  %v1705_v44 = vshrl.u32 %v9395_v18, 16  ;;  %v1682_v0 = vor.u32 %v1680_v61, %v1679_v38  ;;  %v1775_v49 = vld [vmem:[#allocation2 + $0x168] sm:$0x1f] }
 0x2bf   :  { %v1689_v36 = vor.u32 %v1687_v46, %v1686_v22  ;;  %v1700_v3 = vrot.slane %v1698_v19, 7  ;;  %v1708_v27 = vshll.u32 %v9395_v18, 16  ;;  %v1712_v23 = vshrl.u32 %v9399_v39, 16  ;;  %v1784_v31 = vld [vmem:[#allocation2 + $0x180] sm:$0x1f] }
 0x2c0   :  { %v1696_v16 = vor.u32 %v1694_v1, %v1693_v47  ;;  %v1707_v40 = vrot.slane %v1705_v44, 7  ;;  %v1715_v32 = vshll.u32 %v9399_v39, 16  ;;  %v1778_v50 = vld [vmem:[#allocation2 + $0x170] sm:$0x1f]  ;;  %v1719_v7 = vshrl.u32 %v9403_v58, 16 }
 0x2c1   :  { %v1703_v10 = vor.u32 %v1701_v53, %v1700_v3  ;;  %v1722_v35 = vshll.u32 %v9403_v58, 16  ;;  %v1726_v45 = vshrl.u32 %v9407_v59, 16  ;;  %v1793_v18 = vld [vmem:[#allocation2 + $0x198] sm:$0x1f]  ;;  %v1787_v26 = vld [vmem:[#allocation2 + $0x188] sm:$0x1f]  ;;  %v1752_v39 = vsel %vm8087_vm6, %v1626_v42, %v1751_v21 }
 0x2c2   :  { %v1710_v54 = vor.u32 %v1708_v27, %v1707_v40  ;;  %v1714_v20 = vrot.slane %v1712_v23, 7  ;;  %v1729_v41 = vshll.u32 %v9407_v59, 16  ;;  %v1796_v9 = vld [vmem:[#allocation2 + $0x1a0] sm:$0x1f]  ;;  %v1721_v25 = vrot.slane %v1719_v7, 7  ;;  %v11544_v3 = vld [vmem:[#allocation22_spill] sm:$0xff] }
 0x2c3   :  { %v1728_v46 = vrot.slane %v1726_v45, 7  ;;  %1753 = vst [vmem:[#allocation2 + $0x120] sm:$0x1f] %v1752_v39  ;;  %v1755_v51 = vsel %vm8087_vm6, %v9409_v14, %v1754_v13  ;;  %v1758_v58 = vsel %vm8087_vm6, %v9411_v33, %v1757_v60  ;;  %v1790_v38 = vld [vmem:[#allocation2 + $0x190] sm:$0x1f]  ;;  %v1761_v59 = vsel %vm8087_vm6, %v9413_v29, %v1760_v55  ;;  %v11545_v27 = vld [vmem:[#allocation39_spill] sm:$0xff] }
 0x2c4   :  { %v1717_v22 = vor.u32 %v1715_v32, %v1714_v20  ;;  %1756 = vst [vmem:[#allocation2 + $0x128] sm:$0x1f] %v1755_v51  ;;  %1759 = vst [vmem:[#allocation2 + $0x130] sm:$0x1f] %v1758_v58  ;;  %v1764_v42 = vsel %vm8087_vm6, %v9415_v5, %v1763_v24  ;;  %v1767_v14 = vsel %vm8087_vm6, %v9417_v43, %v1766_v11  ;;  %v6903_v45 = vld [vmem:[%s11153_s4 + $0x140] sm:$0xff]  }
 0x2c5   :  { %v1724_v21 = vor.u32 %v1722_v35, %v1721_v25  ;;  %v1731_v1 = vor.u32 %v1729_v41, %v1728_v46  ;;  %1762 = vst [vmem:[#allocation2 + $0x138] sm:$0x1f] %v1761_v59  ;;  %1765 = vst [vmem:[#allocation2 + $0x140] sm:$0x1f] %v1764_v42  ;;  %v1770_v33 = vsel %vm8087_vm6, %v9419_v48, %v1769_v62  ;;  %v6707_v41 = vld [vmem:[%s11153_s4 + $0x150] sm:$0xff]  }
 0x2c6   :  { %1768 = vst [vmem:[#allocation2 + $0x148] sm:$0x1f] %v1767_v14  ;;  %v1773_v29 = vsel %vm8087_vm6, %v1675_v28, %v1772_v37  ;;  %1771 = vst [vmem:[#allocation2 + $0x150] sm:$0x1f] %v1770_v33  ;;  %v1776_v5 = vsel %vm8087_vm6, %v1682_v0, %v1775_v49  ;;  %v1779_v43 = vsel %vm8087_vm6, %v1689_v36, %v1778_v50 }
 0x2c7   :  { %1774 = vst [vmem:[#allocation2 + $0x158] sm:$0x1f] %v1773_v29  ;;  %v1782_v19 = vsel %vm8087_vm6, %v1696_v16, %v1781_v34  ;;  %v1785_v60 = vsel %vm8087_vm6, %v1703_v10, %v1784_v31  ;;  %1777 = vst [vmem:[#allocation2 + $0x168] sm:$0x1f] %v1776_v5  ;;  %v1788_v48 = vsel %vm8087_vm6, %v1710_v54, %v1787_v26 }
 0x2c8   :  { %1780 = vst [vmem:[#allocation2 + $0x170] sm:$0x1f] %v1779_v43  ;;  %1783 = vst [vmem:[#allocation2 + $0x178] sm:$0x1f] %v1782_v19  ;;  %v1791_v13 = vsel %vm8087_vm6, %v1717_v22, %v1790_v38  ;;  %v1794_v28 = vsel %vm8087_vm6, %v1724_v21, %v1793_v18  ;;  %v1797_v47 = vsel %vm8087_vm6, %v1731_v1, %v1796_v9  ;;  %v6705_v1 = vld [vmem:[#allocation2 + $0x1d0] ss:$8 sps:$4 sm:$0xff]  }
 0x2c9   :  { %1786 = vst [vmem:[#allocation2 + $0x180] sm:$0x1f] %v1785_v60  ;;  %1789 = vst [vmem:[#allocation2 + $0x188] sm:$0x1f] %v1788_v48  ;;  %v5990_v53 = vpack.c.bf16 %v9227_v56, %v9227_v56  ;;  %v5991_v44 = vpack.c.bf16 %v9233_v4, %v9233_v4  ;;  %v5992_v55 = vpack.c.bf16 %v9239_v2, %v9239_v2  ;;  %v6712_v60 = vld [vmem:[%s11153_s4 + $0x158] sm:$0xff]  }
 0x2ca   :  { %1792 = vst [vmem:[#allocation2 + $0x190] sm:$0x1f] %v1791_v13  ;;  %1795 = vst [vmem:[#allocation2 + $0x198] sm:$0x1f] %v1794_v28  ;;  %v5993_v24 = vpack.c.bf16 %v9244_v8, %v9244_v8  ;;  %v5994_v11 = vpack.c.bf16 %v9249_v17, %v9249_v17  ;;  %v5995_v0 = vpack.c.bf16 %v9254_v6, %v9254_v6  ;;  %v6700_v6 = vld [vmem:[#allocation2 + $0x1c0] ss:$8 sps:$4 sm:$0xff]  }
 0x2cb   :  { %1798 = vst [vmem:[#allocation2 + $0x1a0] sm:$0x1f] %v1797_v47  ;;  %v5996_v36 = vpack.c.bf16 %v9259_v12, %v9259_v12  ;;  %v9487_v56 = vpack.c.bf16 %v9264_v63, %v9264_v63  ;;  %v9491_v4 = vpack.c.bf16 %v9269_v30, %v9269_v30  ;;  %v9495_v2 = vpack.c.bf16 %v9274_v52, %v9274_v52  ;;  %v11543_v12 = vld [vmem:[#allocation37_spill] sm:$0xff]  ;;  %v1961_v48 = vld [vmem:[#allocation2 + $0x8] sm:$0x1f] }
 0x2cc   :  { %v9499_v8 = vpack.c.bf16 %v9279_v15, %v9279_v15  ;;  %v9503_v17 = vpack.c.bf16 %v9284_v57, %v9284_v57  ;;  %v9507_v63 = vpack.c.bf16 %v11543_v12, %v11543_v12  ;;  %v9511_v30 = vpack.c.bf16 %v11544_v3, %v11544_v3  ;;  %v6698_v15 = vld [vmem:[#allocation2 + $0x120] ss:$8 sps:$4 sm:$0xff]   ;;  %v6703_v19 = vld [vmem:[#allocation2 + $0x130] ss:$8 sps:$4 sm:$0xff]  }
 0x2cd   :  { %v9515_v52 = vpack.c.bf16 %v11545_v27, %v11545_v27  ;;  %v1833_v62 = vshrl.u32 %v5990_v53, 16  ;;  %v6702_v57 = vld [vmem:[%s11153_s4 + $0x148] sm:$0xff]   ;;  %v1836_v37 = vshll.u32 %v5990_v53, 16  ;;  %v1840_v16 = vshrl.u32 %v5991_v44, 16  ;;  %3246 = vmatmul.mubr.bf16.vlgmr.msra.gmra.mrb[0].mxu1 %v6698_v15  ;;  %v1982_v15 = vld [vmem:[#allocation2 + $0x40] sm:$0x1f] }
 0x2ce   :  { %v1843_v40 = vshll.u32 %v5991_v44, 16  ;;  %v1847_v23 = vshrl.u32 %v5992_v55, 16  ;;  %v1850_v34 = vshll.u32 %v5992_v55, 16  ;;  %v1854_v49 = vshrl.u32 %v5993_v24, 16  ;;  %6399 = vmatpush3.bf16.msra.mxu1 %v6903_v45  ;;  %3253 = vmatprep.mubr.bf16.mxu1 %v6700_v6  ;;  %v1967_v44 = vld [vmem:[#allocation2 + $0x18] sm:$0x1f] }
 0x2cf   :  { %v1835_v32 = vrot.slane %v1833_v62, 7  ;;  %v1857_v31 = vshll.u32 %v5993_v24, 16  ;;  %v1842_v50 = vrot.slane %v1840_v16, 7  ;;  %v1861_v7 = vshrl.u32 %v5994_v11, 16  ;;  %6400 = vmatprep.subr.bf16.mxu1 %v6702_v57  ;;  %v1964_v55 = vld [vmem:[#allocation2 + $0x10] sm:$0x1f] }
 0x2d0   :  { %v1849_v10 = vrot.slane %v1847_v23, 7  ;;  %v1864_v35 = vshll.u32 %v5994_v11, 16  ;;  %v1856_v26 = vrot.slane %v1854_v49, 7  ;;  %v1868_v54 = vshrl.u32 %v5995_v0, 16  ;;  %v1976_v6 = vld [vmem:[#allocation2 + $0x30] sm:$0x1f] }
 0x2d1   :  { %v9523_v18 = vor.u32 %v1836_v37, %v1835_v32  ;;  %v1871_v20 = vshll.u32 %v5995_v0, 16  ;;  %v9528_v39 = vor.u32 %v1843_v40, %v1842_v50  ;;  %v1863_v25 = vrot.slane %v1861_v7, 7  ;;  %v1979_v62 = vld [vmem:[#allocation2 + $0x38] sm:$0x1f]  ;;  %v6717_v23 = vld [vmem:[%s11153_s4 + $0x160] sm:$0xff]  }
 0x2d2   :  { %v9530_v9 = vor.u32 %v1850_v34, %v1849_v10  ;;  %v1875_v46 = vshrl.u32 %v5996_v36, 16  ;;  %v9532_v51 = vor.u32 %v1857_v31, %v1856_v26  ;;  %v1870_v58 = vrot.slane %v1868_v54, 7  ;;  %6401 = vmatpush3.bf16.msra.mxu1 %v6702_v57  ;;  %v1985_v57 = vld [vmem:[#allocation2 + $0x50] sm:$0x1f]  ;;  %v1991_v32 = vld [vmem:[#allocation2 + $0x60] sm:$0x1f] }
 0x2d3   :  { %v1878_v38 = vshll.u32 %v5996_v36, 16  ;;  %v1882_v22 = vshrl.u32 %v9487_v56, 16  ;;  %v9535_v59 = vor.u32 %v1864_v35, %v1863_v25  ;;  %v1885_v14 = vshll.u32 %v9487_v56, 16  ;;  %6402 = vmatprep.subr.bf16.mxu1 %v6707_v41  ;;  %v1970_v56 = vld [vmem:[#allocation2 + $0x20] sm:$0x1f] }
 0x2d4   :  { %v1877_v42 = vrot.slane %v1875_v46, 7  ;;  %v1889_v21 = vshrl.u32 %v9491_v4, 16  ;;  %v9539_v33 = vor.u32 %v1871_v20, %v1870_v58  ;;  %v1892_v5 = vshll.u32 %v9491_v4, 16  ;;  %v1973_v4 = vld [vmem:[#allocation2 + $0x28] sm:$0x1f] }
 0x2d5   :  { %v1884_v29 = vrot.slane %v1882_v22, 7  ;;  %v1896_v43 = vshrl.u32 %v9495_v2, 16  ;;  %v1899_v47 = vshll.u32 %v9495_v2, 16  ;;  %v1903_v53 = vshrl.u32 %v9499_v8, 16  ;;  %3254 = vmatmul.mubr.bf16.gmra.mrb[4].mxu1 %v6703_v19  ;;  %v1988_v34 = vld [vmem:[#allocation2 + $0x58] sm:$0x1f] }
 0x2d6   :  { %v9546_v13 = vor.u32 %v1878_v38, %v1877_v42  ;;  %v1891_v28 = vrot.slane %v1889_v21, 7  ;;  %v1906_v0 = vshll.u32 %v9499_v8, 16  ;;  %v1910_v36 = vshrl.u32 %v9503_v17, 16  ;;  %3261 = vmatprep.mubr.bf16.mxu1 %v6705_v1  ;;  %6403 = vmatpush3.bf16.msra.mxu1 %v6707_v41  ;;  %v2003_v7 = vld [vmem:[#allocation2 + $0x80] sm:$0x1f] }
 0x2d7   :  { %v1887_v24 = vor.u32 %v1885_v14, %v1884_v29  ;;  %v1898_v11 = vrot.slane %v1896_v43, 7  ;;  %v1905_v3 = vrot.slane %v1903_v53, 7  ;;  %v1913_v27 = vshll.u32 %v9503_v17, 16  ;;  %6404 = vmatprep.subr.bf16.mxu1 %v6712_v60  ;;  %v1994_v17 = vld [vmem:[#allocation2 + $0x68] sm:$0x1f] }
 0x2d8   :  { %v1894_v12 = vor.u32 %v1892_v5, %v1891_v28  ;;  %v1917_v2 = vshrl.u32 %v9507_v63, 16  ;;  %v1912_v16 = vrot.slane %v1910_v36, 7  ;;  %v1920_v8 = vshll.u32 %v9507_v63, 16  ;;  %v1997_v35 = vld [vmem:[#allocation2 + $0x70] sm:$0x1f]  ;;  %v6732_v28 = vld [vmem:[%s11153_s4 + $0x178] sm:$0xff]  }
 0x2d9   :  { %v1901_v37 = vor.u32 %v1899_v47, %v1898_v11  ;;  %v1931_v40 = vshrl.u32 %v9511_v30, 16  ;;  %v1908_v49 = vor.u32 %v1906_v0, %v1905_v3  ;;  %v1934_v50 = vshll.u32 %v9511_v30, 16  ;;  %v2006_v20 = vld [vmem:[#allocation2 + $0x88] sm:$0x1f]  ;;  %v2572_v19 = vld [vmem:[#allocation2 + $0x120] sm:$0x1f] }
 0x2da   :  { %v1919_v31 = vrot.slane %v1917_v2, 7  ;;  %v1938_v10 = vshrl.u32 %v9515_v52, 16  ;;  %v1915_v45 = vor.u32 %v1913_v27, %v1912_v16  ;;  %v1941_v26 = vshll.u32 %v9515_v52, 16  ;;  %6405 = vmatpush3.bf16.msra.mxu1 %v6712_v60  ;;  %v6722_v52 = vld [vmem:[%s11153_s4 + $0x168] sm:$0xff]   ;;  %v6727_v60 = vld [vmem:[%s11153_s4 + $0x170] sm:$0xff]  }
 0x2db   :  { %v1933_v63 = vrot.slane %v1931_v40, 7  ;;  %v1962_v54 = vsel %vm8087_vm6, %v9523_v18, %v1961_v48  ;;  %v1965_v30 = vsel %vm8087_vm6, %v9528_v39, %v1964_v55  ;;  %v1968_v46 = vsel %vm8087_vm6, %v9530_v9, %v1967_v44  ;;  %v6708_v38 = vld [vmem:[#allocation2 + $0x140] ss:$8 sps:$4 sm:$0xff]   ;;  %6406 = vmatprep.subr.bf16.mxu1 %v6717_v23  ;;  %v9610_v53 = vld [vmem:[#allocation2 + $0x130] sm:$0x1f] }
 0x2dc   :  { %v1922_v41 = vor.u32 %v1920_v8, %v1919_v31  ;;  %v1940_v25 = vrot.slane %v1938_v10, 7  ;;  %1963 = vst [vmem:[#allocation2 + $0x8] sm:$0x1f] %v1962_v54  ;;  %1966 = vst [vmem:[#allocation2 + $0x10] sm:$0x1f] %v1965_v30  ;;  %v1971_v18 = vsel %vm8087_vm6, %v9532_v51, %v1970_v56  ;;  %v1974_v39 = vsel %vm8087_vm6, %v9535_v59, %v1973_v4 }
 0x2dd   :  { %v1936_v58 = vor.u32 %v1934_v50, %v1933_v63  ;;  %1969 = vst [vmem:[#allocation2 + $0x18] sm:$0x1f] %v1968_v46  ;;  %v1977_v9 = vsel %vm8087_vm6, %v9539_v33, %v1976_v6  ;;  %1972 = vst [vmem:[#allocation2 + $0x20] sm:$0x1f] %v1971_v18  ;;  %v1980_v42 = vsel %vm8087_vm6, %v9546_v13, %v1979_v62  ;;  %v6710_v14 = vld [vmem:[#allocation2 + $0x1e0] ss:$8 sps:$4 sm:$0xff]   ;;  %3262 = vmatmul.mubr.bf16.gmra.mrb[8].mxu1 %v6708_v38 }
 0x2de   :  { %v1943_v22 = vor.u32 %v1941_v26, %v1940_v25  ;;  %1975 = vst [vmem:[#allocation2 + $0x28] sm:$0x1f] %v1974_v39  ;;  %1978 = vst [vmem:[#allocation2 + $0x30] sm:$0x1f] %v1977_v9  ;;  %v1983_v51 = vsel %vm8087_vm6, %v1887_v24, %v1982_v15  ;;  %v1986_v59 = vsel %vm8087_vm6, %v1894_v12, %v1985_v57  ;;  %3269 = vmatprep.mubr.bf16.mxu1 %v6710_v14  ;;  %v6701_v48 = vld [vmem:[#allocation2 + $0xa8] ss:$8 sps:$4 sm:$0xff]  }
 0x2df   :  { %1981 = vst [vmem:[#allocation2 + $0x38] sm:$0x1f] %v1980_v42  ;;  %1984 = vst [vmem:[#allocation2 + $0x40] sm:$0x1f] %v1983_v51  ;;  %v1989_v21 = vsel %vm8087_vm6, %v1901_v37, %v1988_v34  ;;  %v1992_v1 = vsel %vm8087_vm6, %v1908_v49, %v1991_v32  ;;  %v1995_v33 = vsel %vm8087_vm6, %v1915_v45, %v1994_v17  ;;  %6407 = vmatpush3.bf16.msra.mxu1 %v6717_v23  ;;  %v6713_v13 = vld [vmem:[#allocation2 + $0x150] ss:$8 sps:$4 sm:$0xff]  }
 0x2e0   :  { %1987 = vst [vmem:[#allocation2 + $0x50] sm:$0x1f] %v1986_v59  ;;  %v1998_v29 = vsel %vm8087_vm6, %v1922_v41, %v1997_v35  ;;  %1990 = vst [vmem:[#allocation2 + $0x58] sm:$0x1f] %v1989_v21  ;;  %v2004_v5 = vsel %vm8087_vm6, %v1936_v58, %v2003_v7  ;;  %v2007_v43 = vsel %vm8087_vm6, %v1943_v22, %v2006_v20  ;;  %6408 = vmatprep.subr.bf16.mxu1 %v6722_v52  ;;  %v9608_v47 = vld [vmem:[#allocation2 + $0x128] sm:$0x1f] }
 0x2e1   :  { %1993 = vst [vmem:[#allocation2 + $0x60] sm:$0x1f] %v1992_v1  ;;  %1996 = vst [vmem:[#allocation2 + $0x68] sm:$0x1f] %v1995_v33  ;;  %v5640_v61 = vcombine.low %v2572_v19, %v2572_v19  ;;  %v6715_v55 = vld [vmem:[#allocation2 + $0x1f8] ss:$8 sps:$4 sm:$0xff]   ;;  %v5641_v11 = vcombine.high %v2572_v19, %v2572_v19  ;;  %v5642_v56 = vcombine.low %v9608_v47, %v9608_v47 }
 0x2e2   :  { %1999 = vst [vmem:[#allocation2 + $0x70] sm:$0x1f] %v1998_v29  ;;  %2005 = vst [vmem:[#allocation2 + $0x80] sm:$0x1f] %v2004_v5  ;;  %v9612_v24 = vld [vmem:[#allocation2 + $0x138] sm:$0x1f]  ;;  %v5643_v3 = vcombine.high %v9608_v47, %v9608_v47  ;;  %v5644_v27 = vcombine.low %v9610_v53, %v9610_v53  ;;  %v5645_v57 = vcombine.high %v9610_v53, %v9610_v53 }
 0x2e3   :  { %2008 = vst [vmem:[#allocation2 + $0x88] sm:$0x1f] %v2007_v43  ;;  %v6699_v44 = vld [vmem:[#allocation2 + $0x8] ss:$8 sps:$4 sm:$0xff]   ;;  %6409 = vmatpush3.bf16.msra.mxu1 %v6722_v52  ;;  %v9614_v0 = vld [vmem:[#allocation2 + $0x140] sm:$0x1f]  ;;  %v5646_v37 = vcombine.low %v9612_v24, %v9612_v24  ;;  %v5647_v16 = vcombine.high %v9612_v24, %v9612_v24 }
 0x2e4   :  { %6410 = vmatprep.subr.bf16.mxu1 %v6727_v60  ;;  %v9616_v36 = vld [vmem:[#allocation2 + $0x148] sm:$0x1f]  ;;  %4451 = vmatmul.mubr.bf16.vlgmr.msra.gmra.mrb[64].mxu0 %v6699_v44  ;;  %v9620_v4 = vld [vmem:[#allocation2 + $0x150] sm:$0x1f]  ;;  %v2669_v6 = vshrl.u32 %v5640_v61, 16  ;;  %v2672_v12 = vshll.u32 %v5640_v61, 16  ;;  %v5648_v40 = vcombine.low %v9614_v0, %v9614_v0  ;;  %v5649_v23 = vcombine.high %v9614_v0, %v9614_v0 }
 0x2e5   :  { %4458 = vmatprep.mubr.bf16.mxu0 %v6701_v48  ;;  %3270 = vmatmul.mubr.bf16.gmra.mrb[12].mxu1 %v6713_v13  ;;  %vm2137_vm6 = vsmask.f32 3328  ;;  %v9626_v2 = vld [vmem:[#allocation2 + $0x158] sm:$0x1f]  ;;  %v9628_v62 = vshll.u32 %v5641_v11, 16  ;;  %v6739_v15 = vld [vmem:[%s11153_s4 + $0x40] sm:$0xff]   ;;  %v9645_v32 = vcombine.low %v9616_v36, %v9616_v36  ;;  %v5651_v31 = vcombine.high %v9616_v36, %v9616_v36 }
 0x2e6   :  { %3277 = vmatprep.mubr.bf16.mxu1 %v6715_v55  ;;  %v2683_v8 = vshrl.u32 %v5642_v56, 16  ;;  %v6706_v17 = vld [vmem:[#allocation2 + $0xb8] ss:$8 sps:$4 sm:$0xff]   ;;  %v2671_v34 = vrot.slane %v2669_v6, 4  ;;  %v2674_v49 = vrot.slane %v2672_v12, 5  ;;  %v9651_v50 = vcombine.low %v9620_v4, %v9620_v4  ;;  %vm9692_vm11 = vmor %vm2137_vm6, %vm2138_vm10 }
 0x2e7   :  { %6411 = vmatpush3.bf16.msra.mxu1 %v6727_v60  ;;  %v9653_v10 = vld [vmem:[#allocation2 + $0x168] sm:$0x1f]  ;;  %v6704_v7 = vld [vmem:[#allocation2 + $0x18] ss:$8 sps:$4 sm:$0xff]   ;;  %v2686_v35 = vshll.u32 %v5642_v56, 16  ;;  %v2697_v45 = vshrl.u32 %v5644_v27, 16  ;;  %v5653_v26 = vcombine.high %v9620_v4, %v9620_v4  ;;  %v9659_v25 = vcombine.low %v9626_v2, %v9626_v2 }
 0x2e8   :  { %6412 = vmatprep.subr.bf16.mxu1 %v6732_v28  ;;  %v2700_v63 = vshll.u32 %v5644_v27, 16  ;;  %v6718_v54 = vld [vmem:[#allocation2 + $0x168] ss:$8 sps:$4 sm:$0xff]   ;;  %v2711_v20 = vshrl.u32 %v5646_v37, 16  ;;  %v2714_v41 = vshll.u32 %v5646_v37, 16  ;;  %v5655_v30 = vcombine.high %v9626_v2, %v9626_v2 }
 0x2e9   :  { %v9663_v46 = vld [vmem:[#allocation2 + $0x170] sm:$0x1f]  ;;  %v2675_v58 = vor.u32 %v2674_v49, %v2671_v34  ;;  %v2685_v18 = vrot.slane %v2683_v8, 4  ;;  %v2688_v39 = vrot.slane %v2686_v35, 5  ;;  %v9667_v9 = vcombine.low %v9653_v10, %v9653_v10  ;;  %v9669_v38 = vld [vmem:[#allocation2 + $0x178] sm:$0x1f] }
 0x2ea   :  { %v6720_v52 = vld [vmem:[#allocation2 + $0x208] ss:$8 sps:$4 sm:$0xff]   ;;  %v2699_v22 = vrot.slane %v2697_v45, 4  ;;  %v2702_v42 = vrot.slane %v2700_v63, 5  ;;  %v2713_v51 = vrot.slane %v2711_v20, 4  ;;  %v2716_v59 = vrot.slane %v2714_v41, 5 }
 0x2eb   :  { %6413 = vmatpush3.bf16.msra.mxu1 %v6732_v28  ;;  %v9671_v14 = vld [vmem:[#allocation2 + $0x180] sm:$0x1f]  ;;  %v2725_v21 = vshrl.u32 %v5648_v40, 16  ;;  %v5657_v1 = vcombine.high %v9653_v10, %v9653_v10  ;;  %v9677_v33 = vcombine.low %v9663_v46, %v9663_v46  ;;  %v5659_v29 = vcombine.high %v9663_v46, %v9663_v46  ;;  %v9688_v61 = vld [vmem:[#allocation2 + $0x188] sm:$0x1f] }
 0x2ec   :  { %6126 = vmatprep.subr.bf16.mxu1 %v6739_v15  ;;  %4459 = vmatmul.mubr.bf16.gmra.mrb[68].mxu0 %v6704_v7  ;;  %v2692_v5 = vshll.u32 %v5643_v3, 16  ;;  %v2706_v43 = vshll.u32 %v5645_v57, 16  ;;  %v2728_v19 = vshll.u32 %v5648_v40, 16  ;;  %v9683_v60 = vcombine.low %v9669_v38, %v9669_v38  ;;  %v6709_v53 = vld [vmem:[#allocation2 + $0x28] ss:$8 sps:$4 sm:$0xff]  }
 0x2ed   :  { %4466 = vmatprep.mubr.bf16.mxu0 %v6706_v17  ;;  %3278 = vmatmul.mubr.bf16.gmra.mrb[16].mxu1 %v6718_v54  ;;  %v2676_v48 = vrot.slane %v2675_v58, 4  ;;  %v2680_v13 = vrot.slane %v9628_v62, 5  ;;  %v2689_v28 = vor.u32 %v2688_v39, %v2685_v18  ;;  %v5661_v47 = vcombine.high %v9669_v38, %v9669_v38  ;;  %v6711_v44 = vld [vmem:[#allocation2 + $0xc8] ss:$8 sps:$4 sm:$0xff]   ;;  %v6723_v55 = vld [vmem:[#allocation2 + $0x178] ss:$8 sps:$4 sm:$0xff]  }
 0x2ee   :  { %3285 = vmatprep.mubr.bf16.mxu1 %v6720_v52  ;;  %v2703_v56 = vor.u32 %v2702_v42, %v2699_v22  ;;  %v2717_v6 = vor.u32 %v2716_v59, %v2713_v51  ;;  %v2727_v12 = vrot.slane %v2725_v21, 4  ;;  %v2730_v3 = vrot.slane %v2728_v19, 5  ;;  %v6725_v27 = vld [vmem:[#allocation2 + $0x218] ss:$8 sps:$4 sm:$0xff]   ;;  %v6730_v19 = vld [vmem:[#allocation2 + $0x228] ss:$8 sps:$4 sm:$0xff]  }
 0x2ef   :  { %v2739_v62 = vshrl.u32 %v9645_v32, 16  ;;  %v2742_v15 = vshll.u32 %v9645_v32, 16  ;;  %v9700_v57 = vcombine.low %v9671_v14, %v9671_v14  ;;  %v5663_v37 = vcombine.high %v9671_v14, %v9671_v14  ;;  %v6716_v51 = vld [vmem:[#allocation2 + $0xe0] ss:$8 sps:$4 sm:$0xff]  }
 0x2f0   :  { %v2694_v8 = vrot.slane %v2692_v5, 5  ;;  %v2708_v40 = vrot.slane %v2706_v43, 5  ;;  %v2720_v17 = vshll.u32 %v5647_v16, 16  ;;  %v9709_v34 = vcombine.low %v9688_v61, %v9688_v61  ;;  %v6714_v43 = vld [vmem:[#allocation2 + $0x38] ss:$8 sps:$4 sm:$0xff]  }
 0x2f1   :  { %v9713_v32 = vsel %vm9692_vm11, %v2676_v48, %v2680_v13  ;;  %v2690_v49 = vrot.slane %v2689_v28, 4  ;;  %v2734_v7 = vshll.u32 %v5649_v23, 16  ;;  %v2753_v35 = vshrl.u32 %v9651_v50, 16  ;;  %v9789_v46 = vld [vmem:[#allocation2 + $0x1a0] sm:$0x1f] }
 0x2f2   :  { %v2704_v24 = vrot.slane %v2703_v56, 4  ;;  %v2718_v16 = vrot.slane %v2717_v6, 4  ;;  %v2756_v45 = vshll.u32 %v9651_v50, 16  ;;  %v2767_v63 = vshrl.u32 %v9659_v25, 16 }
 0x2f3   :  { %v2731_v54 = vor.u32 %v2730_v3, %v2727_v12  ;;  %v2741_v20 = vrot.slane %v2739_v62, 4  ;;  %v2744_v41 = vrot.slane %v2742_v15, 5  ;;  %v2770_v52 = vshll.u32 %v9659_v25, 16 }
 0x2f4   :  { %4467 = vmatmul.mubr.bf16.gmra.mrb[72].mxu0 %v6709_v53  ;;  %v2722_v58 = vrot.slane %v2720_v17, 5  ;;  %v2755_v18 = vrot.slane %v2753_v35, 4  ;;  %v2758_v0 = vrot.slane %v2756_v45, 5  ;;  %v2769_v23 = vrot.slane %v2767_v63, 4 }
 0x2f5   :  { %4474 = vmatprep.mubr.bf16.mxu0 %v6711_v44  ;;  %3286 = vmatmul.mubr.bf16.gmra.mrb[20].mxu1 %v6723_v55  ;;  %v9724_v39 = vsel %vm9692_vm11, %v2690_v49, %v2694_v8  ;;  %v2736_v22 = vrot.slane %v2734_v7, 5  ;;  %v2772_v42 = vrot.slane %v2770_v52, 5  ;;  %v2781_v50 = vshrl.u32 %v9667_v9, 16  ;;  %v6728_v44 = vld [vmem:[#allocation2 + $0x188] ss:$8 sps:$4 sm:$0xff]  }
 0x2f6   :  { %3293 = vmatprep.mubr.bf16.mxu1 %v6725_v27  ;;  %v9729_v59 = vsel %vm9692_vm11, %v2704_v24, %v2708_v40  ;;  %v2748_v25 = vshll.u32 %v5651_v31, 16  ;;  %v2784_v21 = vshll.u32 %v9667_v9, 16  ;;  %v2795_v5 = vshrl.u32 %v9677_v33, 16  ;;  %v9747_v27 = vld [vmem:[#allocation2 + $0x190] sm:$0x1f] }
 0x2f7   :  { %v9738_v48 = vsel %vm9692_vm11, %v2718_v16, %v2722_v58  ;;  %v2732_v13 = vrot.slane %v2731_v54, 4  ;;  %v2745_v28 = vor.u32 %v2744_v41, %v2741_v20  ;;  %v2798_v53 = vshll.u32 %v9677_v33, 16  ;;  %v6719_v49 = vld [vmem:[#allocation2 + $0x50] ss:$8 sps:$4 sm:$0xff]  }
 0x2f8   :  { %v2759_v55 = vor.u32 %v2758_v0, %v2755_v18  ;;  %v2773_v56 = vor.u32 %v2772_v42, %v2769_v23  ;;  %v2783_v6 = vrot.slane %v2781_v50, 4  ;;  %v2786_v36 = vrot.slane %v2784_v21, 5  ;;  %v6721_v16 = vld [vmem:[#allocation2 + $0xf0] ss:$8 sps:$4 sm:$0xff]  }
 0x2f9   :  { %v2762_v31 = vshll.u32 %v5653_v26, 16  ;;  %v2776_v9 = vshll.u32 %v5655_v30, 16  ;;  %v2797_v12 = vrot.slane %v2795_v5, 4  ;;  %v2800_v3 = vrot.slane %v2798_v53, 5  ;;  %v6733_v58 = vld [vmem:[#allocation2 + $0x198] ss:$8 sps:$4 sm:$0xff]  }
 0x2fa   :  { %v5688_v33 = vcombine.low %v9713_v32, %v9724_v39  ;;  %v2809_v62 = vshrl.u32 %v9683_v60, 16  ;;  %v2812_v15 = vshll.u32 %v9683_v60, 16  ;;  %v5665_v4 = vcombine.high %v9688_v61, %v9688_v61 }
 0x2fb   :  { %v5689_v2 = vcombine.low %v9729_v59, %v9738_v48  ;;  %v2746_v26 = vrot.slane %v2745_v28, 4  ;;  %v2750_v30 = vrot.slane %v2748_v25, 5  ;;  %v2790_v8 = vshll.u32 %v5657_v1, 16 }
 0x2fc   :  { %4475 = vmatmul.mubr.bf16.gmra.mrb[76].mxu0 %v6714_v43  ;;  %v9762_v40 = vsel %vm9692_vm11, %v2732_v13, %v2736_v22  ;;  %v2760_v17 = vrot.slane %v2759_v55, 4  ;;  %v2774_v32 = vrot.slane %v2773_v56, 4  ;;  %v2787_v60 = vor.u32 %v2786_v36, %v2783_v6 }
 0x2fd   :  { %4482 = vmatprep.mubr.bf16.mxu0 %v6716_v51  ;;  %3294 = vmatmul.mubr.bf16.gmra.mrb[24].mxu1 %v6728_v44  ;;  %v2811_v7 = vrot.slane %v2809_v62, 4  ;;  %v2814_v61 = vrot.slane %v2812_v15, 5  ;;  %v2823_v35 = vshrl.u32 %v9700_v57, 16  ;;  %v2826_v24 = vshll.u32 %v9700_v57, 16  ;;  %v9785_v51 = vld [vmem:[#allocation2 + $0x198] sm:$0x1f] }
 0x2fe   :  { %3301 = vmatprep.mubr.bf16.mxu1 %v6730_v19  ;;  %v2764_v45 = vrot.slane %v2762_v31, 5  ;;  %v2778_v63 = vrot.slane %v2776_v9, 5  ;;  %v2801_v54 = vor.u32 %v2800_v3, %v2797_v12  ;;  %v5666_v10 = vcombine.low %v9747_v27, %v9747_v27  ;;  %v6724_v9 = vld [vmem:[#allocation2 + $0x60] ss:$8 sps:$4 sm:$0xff]  }
 0x2ff   :  { %v9770_v1 = vsel %vm9692_vm11, %v2746_v26, %v2750_v30  ;;  %v2792_v20 = vrot.slane %v2790_v8, 5  ;;  %v2825_v41 = vrot.slane %v2823_v35, 4  ;;  %v2828_v52 = vrot.slane %v2826_v24, 5  ;;  %v6744_v12 = vld [vmem:[%s11153_s4] sm:$0xff]   ;;  %v6749_v3 = vld [vmem:[%s11153_s4 + $0x48] sm:$0xff]  }
 0x300   :  { %v9774_v18 = vsel %vm9692_vm11, %v2760_v17, %v2764_v45  ;;  %v9778_v57 = vsel %vm9692_vm11, %v2774_v32, %v2778_v63  ;;  %v2804_v0 = vshll.u32 %v5659_v29, 16  ;;  %v2837_v23 = vshrl.u32 %v9709_v34, 16  ;;  %v1322_v17 = vld [vmem:[#allocation2 + $0x98] sm:$0x10]  ;;  %v1325_v32 = vld [vmem:[#allocation2 + $0xa0] sm:$0x10] }
 0x301   :  { %v2788_v39 = vrot.slane %v2787_v60, 4  ;;  %v2815_v22 = vor.u32 %v2814_v61, %v2811_v7  ;;  %v2840_v42 = vshll.u32 %v9709_v34, 16  ;;  %v2851_v50 = vshrl.u32 %v5666_v10, 16  ;;  %v1328_v60 = vld [vmem:[#allocation2 + $0xa8] sm:$0x10] }
 0x302   :  { %v2802_v25 = vrot.slane %v2801_v54, 4  ;;  %v2829_v21 = vor.u32 %v2828_v52, %v2825_v41  ;;  %v5667_v5 = vcombine.high %v9747_v27, %v9747_v27  ;;  %v2854_v43 = vshll.u32 %v5666_v10, 16  ;;  %v1334_v45 = vld [vmem:[#allocation2 + $0xb8] sm:$0x10]  ;;  %v1337_v63 = vld [vmem:[#allocation2 + $0xc0] sm:$0x10] }
 0x303   :  { %v2818_v29 = vshll.u32 %v5661_v47, 16  ;;  %v2832_v34 = vshll.u32 %v5663_v37, 16  ;;  %v2839_v19 = vrot.slane %v2837_v23, 4  ;;  %v2842_v13 = vrot.slane %v2840_v42, 5  ;;  %v6751_v54 = vld [vmem:[%s11153_s4 + $0x50] sm:$0xff]  }
 0x304   :  { %4483 = vmatmul.mubr.bf16.gmra.mrb[80].mxu0 %v6719_v49  ;;  %v2806_v28 = vrot.slane %v2804_v0, 5  ;;  %v9797_v53 = vrot.slane %v2851_v50, 4  ;;  %v2856_v44 = vrot.slane %v2854_v43, 5  ;;  %v9801_v55 = vcombine.low %v9785_v51, %v9785_v51  ;;  %v6750_v49 = vld [vmem:[%s11153_s4 + $0x8] sm:$0xff]   ;;  %v1343_v52 = vld [vmem:[#allocation2 + $0xd0] sm:$0x10] }
 0x305   :  { %4490 = vmatprep.mubr.bf16.mxu0 %v6721_v16  ;;  %3302 = vmatmul.mubr.bf16.gmra.mrb[28].mxu1 %v6733_v58  ;;  %v5690_v56 = vcombine.low %v9762_v40, %v9770_v1  ;;  %v2816_v6 = vrot.slane %v2815_v22, 4  ;;  %v9805_v38 = vshll.u32 %v5665_v4, 16  ;;  %v9809_v14 = vcombine.low %v9789_v46, %v9789_v46  ;;  %v6726_v4 = vld [vmem:[#allocation2 + $0x100] ss:$8 sps:$4 sm:$0xff]   ;;  %v1331_v16 = vld [vmem:[#allocation2 + $0xb0] sm:$0x10] }
 0x306   :  { %6414 = vmatprep.mubr.bf16.mxu1 %v5688_v33  ;;  %v9813_v47 = vsel %vm9692_vm11, %v2788_v39, %v2792_v20  ;;  %v9817_v37 = vsel %vm9692_vm11, %v2802_v25, %v2806_v28  ;;  %v2830_v36 = vrot.slane %v2829_v21, 4  ;;  %v9819_v31 = vshll.u32 %v5667_v5, 16  ;;  %v1340_v41 = vld [vmem:[#allocation2 + $0xc8] sm:$0x10]  ;;  %v1349_v58 = vld [vmem:[#allocation2 + $0xe0] sm:$0x10] }
 0x307   :  { %v5691_v27 = vcombine.low %v9774_v18, %v9778_v57  ;;  %v2820_v33 = vrot.slane %v2818_v29, 5  ;;  %v2834_v62 = vrot.slane %v2832_v34, 5  ;;  %v2843_v15 = vor.u32 %v2842_v13, %v2839_v19  ;;  %v1355_v23 = vld [vmem:[#allocation2 + $0xf0] sm:$0x10]  ;;  %v1358_v39 = vld [vmem:[#allocation2 + $0xf8] sm:$0x10] }
 0x308   :  { %v2857_v26 = vor.u32 %v2856_v44, %v9797_v53  ;;  %v5669_v30 = vcombine.high %v9785_v51, %v9785_v51  ;;  %v2865_v8 = vshrl.u32 %v9801_v55, 16  ;;  %v2868_v40 = vshll.u32 %v9801_v55, 16  ;;  %v9871_v21 = vld [vmem:[#allocation2 + $0x100] sm:$0x10]  ;;  %v9873_v5 = vld [vmem:[#allocation2 + $0x108] sm:$0x10] }
 0x309   :  { %v5692_v7 = vcombine.low %v9813_v47, %v9817_v37  ;;  %v9841_v61 = vsel %vm9692_vm11, %v2816_v6, %v2820_v33  ;;  %v2848_v35 = vrot.slane %v9805_v38, 5  ;;  %v2879_v24 = vshrl.u32 %v9809_v14, 16  ;;  %v9875_v43 = vld [vmem:[#allocation2 + $0x110] sm:$0x10]  ;;  %v1370_v28 = vld [vmem:[#allocation2 + $0x118] sm:$0x10] }
 0x30a   :  { %v9853_v10 = vsel %vm9692_vm11, %v2830_v36, %v2834_v62  ;;  %v2862_v1 = vrot.slane %v9819_v31, 5  ;;  %v2882_v20 = vshll.u32 %v9809_v14, 16  ;;  %v2844_v0 = vrot.slane %v2843_v15, 4  ;;  %v9898_v6 = vld [vmem:[#allocation2 + $0x1b0] sm:$0x10]  ;;  %v9934_v38 = vld [vmem:[%s11153_s4 + $0x18] sm:$0xff]  }
 0x30b   :  { %v5671_v59 = vcombine.high %v9789_v46, %v9789_v46  ;;  %v6904_v48 = vmov 0   ;;  %v9859_v22 = vrot.slane %v2857_v26, 4  ;;  %v9861_v42 = vrot.slane %v2865_v8, 4  ;;  %v9880_v46 = vld [vmem:[%s11153_s4 + $0x10] sm:$0xff]   ;;  %v9908_v33 = vld [vmem:[#allocation2 + $0x1b8] sm:$0x10] }
 0x30c   :  { %4491 = vmatmul.mubr.bf16.gmra.mrb[84].mxu0 %v6724_v9  ;;  %1196 = vst [vmem:[#allocation2 + $0x90] sm:$0xff] %v6904_v48  ;;  %1199 = vst [vmem:[#allocation2 + $0x160] sm:$0xff] %v6904_v48  ;;  %v9863_v50 = vrot.slane %v2868_v40, 5  ;;  %v9865_v51 = vshll.u32 %v5669_v30, 16  ;;  %v9882_v29 = vrot.slane %v2879_v24, 4  ;;  %v1323_v34 = vsel %vm9867_vm14, 0, %v1322_v17 }
 0x30d   :  { %4498 = vmatprep.mubr.bf16.mxu0 %v6726_v4  ;;  %6415 = vmatmul.mubr.bf16.vlgmr.msra.gmra.mrb[32].mxu1 %v5689_v2  ;;  %1200 = vst [vmem:[#allocation2 + $0x1a8] sm:$0xff] %v6904_v48  ;;  %1201 = vst [vmem:[#allocation2 + $0x1f0] sm:$0xff] %v6904_v48  ;;  %v1352_v2 = vld [vmem:[#allocation2 + $0xe8] sm:$0x10]  ;;  %v1326_v19 = vsel %vm9867_vm14, 0, %v1325_v32  ;;  %v1329_v13 = vsel %vm9867_vm14, 0, %v1328_v60  ;;  %v9923_v8 = vsel %vm9692_vm11, %v2844_v0, %v2848_v35 }
 0x30e   :  { %6127 = vmatpush3.bf16.msra.mxu1 %v6744_v12  ;;  %6418 = vmatprep.mubr.bf16.mxu1 %v5690_v56  ;;  %1202 = vst [vmem:[#allocation2 + $0x238] sm:$0xff] %v6904_v48  ;;  %1194 = vst [vmem:[#allocation2] sm:$0xff] %v6904_v48  ;;  %v9890_v53 = vrot.slane %v2882_v20, 5  ;;  %v1332_v44 = vsel %vm9867_vm14, 0, %v1331_v16  ;;  %v1335_v55 = vsel %vm9867_vm14, 0, %v1334_v45  ;;  %v1338_v56 = vsel %vm9867_vm14, 0, %v1337_v63 }
 0x30f   :  { %1195 = vst [vmem:[#allocation2 + $0x48] sm:$0xff] %v6904_v48  ;;  %1197 = vst [vmem:[#allocation2 + $0xd8] sm:$0xff] %v6904_v48  ;;  %6128 = vmatprep.subr.bf16.mxu1 %v6749_v3  ;;  %v6729_v14 = vld [vmem:[#allocation2 + $0x70] ss:$8 sps:$4 sm:$0xff]   ;;  %v9900_v36 = vshll.u32 %v5671_v59, 16  ;;  %v1341_v9 = vsel %vm9867_vm14, 0, %v1340_v41  ;;  %v9958_v0 = vsel %vm9692_vm11, %v9859_v22, %v2862_v1  ;;  %v2871_v59 = vor.u32 %v9863_v50, %v9861_v42 }
 0x310   :  { %1324 = vst [vmem:[#allocation2 + $0x98] sm:$0x10] %v1323_v34  ;;  %1327 = vst [vmem:[#allocation2 + $0xa0] sm:$0x10] %v1326_v19  ;;  %v1344_v12 = vsel %vm9867_vm14, 0, %v1343_v52  ;;  %v1350_v3 = vsel %vm9867_vm14, 0, %v1349_v58  ;;  %v2885_v48 = vor.u32 %v9890_v53, %v9882_v29 }
 0x311   :  { %1330 = vst [vmem:[#allocation2 + $0xa8] sm:$0x10] %v1329_v13  ;;  %1333 = vst [vmem:[#allocation2 + $0xb0] sm:$0x10] %v1332_v44  ;;  %v9910_v62 = vld [vmem:[#allocation2 + $0x1c0] sm:$0x10] }
 0x312   :  { %6129 = vmatpush3.bf16.msra.mxu1 %v6750_v49  ;;  %1336 = vst [vmem:[#allocation2 + $0xb8] sm:$0x10] %v1335_v55  ;;  %1339 = vst [vmem:[#allocation2 + $0xc0] sm:$0x10] %v1338_v56  ;;  %v9912_v15 = vld [vmem:[#allocation2 + $0x1c8] sm:$0x10] }
 0x313   :  { %v9914_v4 = vld [vmem:[#allocation2 + $0x1d0] sm:$0x10]  ;;  %v6731_v26 = vld [vmem:[#allocation2 + $0x110] ss:$8 sps:$4 sm:$0xff]   ;;  %6130 = vmatprep.subr.bf16.mxu1 %v6751_v54  ;;  %1342 = vst [vmem:[#allocation2 + $0xc8] sm:$0x10] %v1341_v9 }
 0x314   :  { %v6761_v30 = vld [vmem:[%s11153_s4 + $0x58] sm:$0xff]   ;;  %1345 = vst [vmem:[#allocation2 + $0xd0] sm:$0x10] %v1344_v12  ;;  %1351 = vst [vmem:[#allocation2 + $0xe0] sm:$0x10] %v1350_v3  ;;  %v1353_v40 = vsel %vm9867_vm14, 0, %v1352_v2  ;;  %4499 = vmatmul.mubr.bf16.gmra.mrb[88].mxu0 %v6729_v14 }
 0x315   :  { %v1356_v17 = vsel %vm9867_vm14, 0, %v1355_v23  ;;  %v1359_v32 = vsel %vm9867_vm14, 0, %v1358_v39  ;;  %v1389_v60 = vld [vmem:[#allocation2 + $0x1d8] sm:$0x10]  ;;  %v1392_v49 = vld [vmem:[#allocation2 + $0x1e0] sm:$0x10]  ;;  %4506 = vmatprep.mubr.bf16.mxu0 %v6731_v26  ;;  %6419 = vmatmul.mubr.bf16.gmra.mrb[36].mxu1 %v5691_v27 }
 0x316   :  { %v1395_v24 = vld [vmem:[#allocation2 + $0x1e8] sm:$0x10]  ;;  %1354 = vst [vmem:[#allocation2 + $0xe8] sm:$0x10] %v1353_v40  ;;  %1357 = vst [vmem:[#allocation2 + $0xf0] sm:$0x10] %v1356_v17  ;;  %6131 = vmatpush3.bf16.msra.mxu1 %v9880_v46  ;;  %6422 = vmatprep.mubr.bf16.mxu1 %v5692_v7  ;;  %v5693_v40 = vcombine.low %v9841_v61, %v9853_v10 }
 0x317   :  { %1360 = vst [vmem:[#allocation2 + $0xf8] sm:$0x10] %v1359_v32  ;;  %v1362_v35 = vsel %vm9867_vm14, 0, %v9871_v21  ;;  %v1365_v16 = vsel %vm9867_vm14, 0, %v9873_v5  ;;  %v1368_v45 = vsel %vm9867_vm14, 0, %v9875_v43  ;;  %v1371_v63 = vsel %vm9867_vm14, 0, %v1370_v28  ;;  %6132 = vmatprep.subr.bf16.mxu1 %v6761_v30 }
 0x318   :  { %v1401_v54 = vld [vmem:[#allocation2 + $0x1f8] sm:$0x10]  ;;  %v1404_v20 = vld [vmem:[#allocation2 + $0x200] sm:$0x10]  ;;  %v1407_v41 = vld [vmem:[#allocation2 + $0x208] sm:$0x10] }
 0x319   :  { %v1410_v52 = vld [vmem:[#allocation2 + $0x210] sm:$0x10]  ;;  %v6763_v58 = vld [vmem:[%s11153_s4 + $0x60] sm:$0xff]   ;;  %v1312_v18 = vld [vmem:[#allocation2 + $0x1a8] sm:$0x1]  ;;  %v1375_v43 = vsel %vm9867_vm14, 0, %v9898_v6 }
 0x31a   :  { %v1285_v2 = vld [vmem:[#allocation2 + $0x160] sm:$0x1]  ;;  %v1319_v57 = vld [vmem:[#allocation2 + $0x90] sm:$0x10]  ;;  %1363 = vst [vmem:[#allocation2 + $0x100] sm:$0x10] %v1362_v35  ;;  %6133 = vmatpush3.bf16.msra.mxu1 %v9934_v38 }
 0x31b   :  { %1366 = vst [vmem:[#allocation2 + $0x108] sm:$0x10] %v1365_v16  ;;  %1369 = vst [vmem:[#allocation2 + $0x110] sm:$0x10] %v1368_v45  ;;  %v1413_v27 = vld [vmem:[#allocation2 + $0x218] sm:$0x10]  ;;  %6134 = vmatprep.subr.bf16.mxu1 %v6763_v58 }
 0x31c   :  { %1372 = vst [vmem:[#allocation2 + $0x118] sm:$0x10] %v1371_v63  ;;  %v1416_v31 = vld [vmem:[#allocation2 + $0x220] sm:$0x10]  ;;  %v1419_v23 = vld [vmem:[#allocation2 + $0x228] sm:$0x10] }
 0x31d   :  { %v1422_v39 = vld [vmem:[#allocation2 + $0x230] sm:$0x10]  ;;  %v1286_v22 = vsel %vm7215_vm2, 0, %v1285_v2  ;;  %v1313_v21 = vsel %vm7215_vm2, 0, %v1312_v18  ;;  %v1320_v5 = vsel %vm9867_vm14, 0, %v1319_v57  ;;  %v1378_v47 = vsel %vm9867_vm14, 0, %v9908_v33  ;;  %6423 = vmatmul.mubr.bf16.gmra.mrb[40].mxu1 %v5693_v40 }
 0x31e   :  { %v1398_v34 = vld [vmem:[#allocation2 + $0x1f0] sm:$0x10]  ;;  %1287 = vst [vmem:[#allocation2 + $0x160] sm:$0x1] %v1286_v22  ;;  %1314 = vst [vmem:[#allocation2 + $0x1a8] sm:$0x1] %v1313_v21 }
 0x31f   :  { %1321 = vst [vmem:[#allocation2 + $0x90] sm:$0x10] %v1320_v5  ;;  %1376 = vst [vmem:[#allocation2 + $0x1b0] sm:$0x10] %v1375_v43  ;;  %v1381_v37 = vsel %vm9867_vm14, 0, %v9910_v62  ;;  %v1384_v7 = vsel %vm9867_vm14, 0, %v9912_v15 }
 0x320   :  { %v1387_v46 = vsel %vm9867_vm14, 0, %v9914_v4  ;;  %v1425_v19 = vld [vmem:[#allocation2 + $0x238] sm:$0x10]  ;;  %v6768_v13 = vld [vmem:[%s11153_s4 + $0x20] sm:$0xff]   ;;  %1379 = vst [vmem:[#allocation2 + $0x1b8] sm:$0x10] %v1378_v47 }
 0x321   :  { %1382 = vst [vmem:[#allocation2 + $0x1c0] sm:$0x10] %v1381_v37  ;;  %1385 = vst [vmem:[#allocation2 + $0x1c8] sm:$0x10] %v1384_v7  ;;  %v1390_v28 = vsel %vm9867_vm14, 0, %v1389_v60  ;;  %v1393_v44 = vsel %vm9867_vm14, 0, %v1392_v49  ;;  %v5694_v49 = vcombine.low %v9923_v8, %v9958_v0  ;;  %6135 = vmatpush3.bf16.msra.mxu1 %v6768_v13 }
 0x322   :  { %1388 = vst [vmem:[#allocation2 + $0x1d0] sm:$0x10] %v1387_v46  ;;  %v1396_v55 = vsel %vm9867_vm14, 0, %v1395_v24  ;;  %v1399_v56 = vsel %vm9867_vm14, 0, %v1398_v34  ;;  %v6734_v6 = vld [vmem:[#allocation2 + $0x80] ss:$8 sps:$4 sm:$0xff]  }
 0x323   :  { %v6773_v14 = vld [vmem:[%s11153_s4 + $0x68] sm:$0xff]   ;;  %1391 = vst [vmem:[#allocation2 + $0x1d8] sm:$0x10] %v1390_v28  ;;  %1394 = vst [vmem:[#allocation2 + $0x1e0] sm:$0x10] %v1393_v44  ;;  %v1402_v9 = vsel %vm9867_vm14, 0, %v1401_v54  ;;  %4507 = vmatmul.mubr.bf16.gmra.mrb[92].mxu0 %v6734_v6  ;;  %6426 = vmatprep.mubr.bf16.mxu1 %v5694_v49 }
 0x324   :  { %1397 = vst [vmem:[#allocation2 + $0x1e8] sm:$0x10] %v1396_v55  ;;  %1400 = vst [vmem:[#allocation2 + $0x1f0] sm:$0x10] %v1399_v56  ;;  %v1405_v12 = vsel %vm9867_vm14, 0, %v1404_v20  ;;  %v1408_v3 = vsel %vm9867_vm14, 0, %v1407_v41  ;;  %6136 = vmatprep.subr.bf16.mxu1 %v6773_v14 }
 0x325   :  { %v1411_v33 = vsel %vm9867_vm14, 0, %v1410_v52  ;;  %1403 = vst [vmem:[#allocation2 + $0x1f8] sm:$0x10] %v1402_v9  ;;  %1406 = vst [vmem:[#allocation2 + $0x200] sm:$0x10] %v1405_v12  ;;  %v1414_v62 = vsel %vm9867_vm14, 0, %v1413_v27 }
 0x326   :  { %1409 = vst [vmem:[#allocation2 + $0x208] sm:$0x10] %v1408_v3  ;;  %1412 = vst [vmem:[#allocation2 + $0x210] sm:$0x10] %v1411_v33  ;;  %v1417_v15 = vsel %vm9867_vm14, 0, %v1416_v31  ;;  %v1420_v4 = vsel %vm9867_vm14, 0, %v1419_v23 }
 0x327   :  { %v1423_v26 = vsel %vm9867_vm14, 0, %v1422_v39  ;;  %v1206_v30 = vld [vmem:[#allocation2] sm:$0x1]  ;;  %1415 = vst [vmem:[#allocation2 + $0x218] sm:$0x10] %v1414_v62  ;;  %v1426_v17 = vsel %vm9867_vm14, 0, %v1425_v19 }
 0x328   :  { %1418 = vst [vmem:[#allocation2 + $0x220] sm:$0x10] %v1417_v15  ;;  %1421 = vst [vmem:[#allocation2 + $0x228] sm:$0x10] %v1420_v4  ;;  %v1207_v32 = vsel %vm7215_vm2, 0, %v1206_v30  ;;  %v2872_v24 = vrot.slane %v2871_v59, 4 }
 0x329   :  { %1424 = vst [vmem:[#allocation2 + $0x230] sm:$0x10] %v1423_v26  ;;  %v1346_v60 = vld [vmem:[#allocation2 + $0xd8] sm:$0x10]  ;;  %v2886_v61 = vrot.slane %v2885_v48, 4  ;;  %v6774_v42 = vld [vmem:[%s11153_s4 + $0x28] sm:$0xff]  }
 0x32a   :  { %1427 = vst [vmem:[#allocation2 + $0x238] sm:$0x10] %v1426_v17  ;;  %1208 = vst [vmem:[#allocation2] sm:$0x1] %v1207_v32  ;;  %v1347_v10 = vsel %vm9867_vm14, 0, %v1346_v60  ;;  %v2876_v50 = vrot.slane %v9865_v51, 5  ;;  %6137 = vmatpush3.bf16.msra.mxu1 %v6774_v42 }
 0x32b   :  { %v1233_v38 = vld [vmem:[#allocation2 + $0x48] sm:$0x1]  ;;  %1348 = vst [vmem:[#allocation2 + $0xd8] sm:$0x10] %v1347_v10  ;;  %v2890_v29 = vrot.slane %v9900_v36, 5  ;;  %v6775_v25 = vld [vmem:[%s11153_s4 + $0x70] sm:$0xff]  }
 0x32c   :  { %v1234_v35 = vsel %vm7215_vm2, 0, %v1233_v38  ;;  %v2877_v53 = vsel %vm9692_vm11, %v2872_v24, %v2876_v50  ;;  %v6780_v16 = vld [vmem:[%s11153_s4 + $0x30] sm:$0xff]   ;;  %6138 = vmatprep.subr.bf16.mxu1 %v6775_v25  ;;  %v6782_v36 = vld [vmem:[%s11153_s4 + $0x78] sm:$0xff]   ;;  %v6784_v54 = vld [vmem:[%s11153_s4 + $0x80] sm:$0xff]  }
 0x32d   :  { %1235 = vst [vmem:[#allocation2 + $0x48] sm:$0x1] %v1234_v35  ;;  %v2891_v8 = vsel %vm9692_vm11, %v2886_v61, %v2890_v29  ;;  %v6781_v45 = vld [vmem:[#allocation2 + $0x90] ss:$8 sps:$4 sm:$0xff]   ;;  %v6787_v41 = vld [vmem:[%s11153_s4 + $0x88] sm:$0xff]   ;;  %v6796_v2 = vld [vmem:[%s11153_s4 + $0xa0] sm:$0xff]  }
 0x32e   :  { %v5695_v51 = vcombine.low %v2877_v53, %v2891_v8  ;;  %6139 = vmatpush3.bf16.msra.mxu1 %v6780_v16  ;;  %v6783_v63 = vld [vmem:[%s11153_s4 + $0x38] sm:$0xff]   ;;  %v6786_v52 = vld [vmem:[#allocation2 + $0xa0] ss:$8 sps:$4 sm:$0xff]   ;;  %v6790_v58 = vld [vmem:[%s11153_s4 + $0x90] sm:$0xff]  }
 0x32f   :  { %6140 = vmatprep.subr.bf16.mxu1 %v6782_v36  ;;  %v6788_v0 = vld [vmem:[#allocation2 + $0x10] ss:$8 sps:$4 sm:$0xff]   ;;  %v2042_v27 = vld [vmem:[#allocation2 + $0x8] sm:$0x1f]  ;;  %v10079_v43 = vld [vmem:[#allocation2 + $0x20] sm:$0x1f] }
 0x330   :  { %6427 = vmatmul.mubr.bf16.gmra.mrb[44].mxu1 %v5695_v51  ;;  %v6793_v59 = vld [vmem:[%s11153_s4 + $0x98] sm:$0xff]   ;;  %v2043_v18 = vld [vmem:[#allocation2 + $0x10] sm:$0x1f]  ;;  %v6791_v1 = vld [vmem:[#allocation2 + $0x20] ss:$8 sps:$4 sm:$0xff]   ;;  %v5586_v5 = vcombine.low %v2042_v27, %v2042_v27  ;;  %v5592_v13 = vcombine.low %v10079_v43, %v10079_v43  ;;  %v5587_v55 = vcombine.high %v2042_v27, %v2042_v27  ;;  %v5593_v16 = vcombine.high %v10079_v43, %v10079_v43 }
 0x331   :  { %3583 = vmatprep.mubr.bf16.mxu1 %v6781_v45  ;;  %v6785_v20 = vld [vmem:[#allocation2] ss:$8 sps:$4 sm:$0xff]   ;;  %v6789_v48 = vld [vmem:[#allocation2 + $0xb0] ss:$8 sps:$4 sm:$0xff]   ;;  %v5588_v23 = vcombine.low %v2043_v18, %v2043_v18  ;;  %v5589_v14 = vcombine.high %v2043_v18, %v2043_v18 }
 0x332   :  { %6141 = vmatpush3.bf16.msra.mxu1 %v6783_v63  ;;  %v2044_v57 = vld [vmem:[#allocation2 + $0x18] sm:$0x1f]  ;;  %v10074_v31 = vld [vmem:[#allocation2] sm:$0x1f]  ;;  %v6799_v22 = vld [vmem:[%s11153_s4 + $0xa8] sm:$0xff]   ;;  %v2155_v28 = vshrl.u32 %v5586_v5, 16 }
 0x333   :  { %6430 = vmatprep.subr.bf16.mxu1 %v6784_v54  ;;  %v5590_v39 = vcombine.low %v2044_v57, %v2044_v57  ;;  %v6792_v21 = vld [vmem:[#allocation2 + $0xc0] ss:$8 sps:$4 sm:$0xff]   ;;  %v5584_v34 = vcombine.low %v10074_v31, %v10074_v31  ;;  %v2169_v47 = vshrl.u32 %v5588_v23, 16  ;;  %v2172_v37 = vshll.u32 %v5588_v23, 16  ;;  %v6802_v19 = vld [vmem:[%s11153_s4 + $0xb0] sm:$0xff]   ;;  %v6805_v26 = vld [vmem:[%s11153_s4 + $0xb8] sm:$0xff]  }
 0x334   :  { %v2158_v44 = vshll.u32 %v5586_v5, 16  ;;  %v10088_v9 = vld [vmem:[#allocation2 + $0x28] sm:$0x1f]  ;;  %v10090_v15 = vld [vmem:[#allocation2 + $0x30] sm:$0x1f]  ;;  %v5591_v30 = vcombine.high %v2044_v57, %v2044_v57  ;;  %v2197_v40 = vshrl.u32 %v5592_v13, 16  ;;  %v5585_v61 = vcombine.high %v10074_v31, %v10074_v31 }
 0x335   :  { %v2183_v7 = vshrl.u32 %v5590_v39, 16  ;;  %v2186_v46 = vshll.u32 %v5590_v39, 16  ;;  %v2141_v56 = vshrl.u32 %v5584_v34, 16  ;;  %v2144_v6 = vshll.u32 %v5584_v34, 16  ;;  %v6794_v4 = vld [vmem:[#allocation2 + $0x30] ss:$8 sps:$4 sm:$0xff]  }
 0x336   :  { %v2171_v12 = vrot.slane %v2169_v47, 4  ;;  %v2174_v3 = vrot.slane %v2172_v37, 5  ;;  %v2200_v17 = vshll.u32 %v5592_v13, 16  ;;  %v6795_v32 = vld [vmem:[#allocation2 + $0xd8] ss:$8 sps:$4 sm:$0xff]   ;;  %v2157_v60 = vrot.slane %v2155_v28, 4 }
 0x337   :  { %v2185_v33 = vrot.slane %v2183_v7, 4  ;;  %v2188_v62 = vrot.slane %v2186_v46, 5  ;;  %v2160_v49 = vrot.slane %v2158_v44, 5  ;;  %v5594_v24 = vcombine.low %v10088_v9, %v10088_v9  ;;  %v10104_v53 = vld [vmem:[%s11153_s4 + $0x200] sm:$0xff]   ;;  %v6797_v31 = vld [vmem:[#allocation2 + $0x48] ss:$8 sps:$4 sm:$0xff]  }
 0x338   :  { %3584 = vmatmul.mubr.bf16.vlgmr.msra.gmra.mrb[48].mxu1 %v6785_v20  ;;  %v2143_v10 = vrot.slane %v2141_v56, 4  ;;  %v2146_v38 = vrot.slane %v2144_v6, 5  ;;  %v5596_v35 = vcombine.low %v10090_v15, %v10090_v15  ;;  %v2164_v42 = vshll.u32 %v5587_v55, 16  ;;  %v10115_v37 = vld [vmem:[#allocation2 + $0x50] sm:$0x1f] }
 0x339   :  { %6431 = vmatpush3.bf16.msra.mxu1 %v6784_v54  ;;  %3591 = vmatprep.mubr.bf16.mxu1 %v6786_v52  ;;  %v2175_v50 = vor.u32 %v2174_v3, %v2171_v12  ;;  %v2178_v29 = vshll.u32 %v5589_v14, 16  ;;  %v2189_v25 = vor.u32 %v2188_v62, %v2185_v33  ;;  %v2192_v8 = vshll.u32 %v5591_v30, 16  ;;  %v10129_v3 = vld [vmem:[#allocation2 + $0x58] sm:$0x1f] }
 0x33a   :  { %6432 = vmatprep.subr.bf16.mxu1 %v6787_v41  ;;  %v2199_v51 = vrot.slane %v2197_v40, 4  ;;  %v2202_v36 = vrot.slane %v2200_v17, 5  ;;  %v2161_v45 = vor.u32 %v2160_v49, %v2157_v60  ;;  %v5595_v63 = vcombine.high %v10088_v9, %v10088_v9 }
 0x33b   :  { %v2211_v54 = vshrl.u32 %v5594_v24, 16  ;;  %v2214_v20 = vshll.u32 %v5594_v24, 16  ;;  %v2150_v52 = vshll.u32 %v5585_v61, 16  ;;  %v2176_v18 = vrot.slane %v2175_v50, 4 }
 0x33c   :  { %v2180_v57 = vrot.slane %v2178_v29, 5  ;;  %v2190_v27 = vrot.slane %v2189_v25, 4  ;;  %v2194_v23 = vrot.slane %v2192_v8, 5  ;;  %v2203_v39 = vor.u32 %v2202_v36, %v2199_v51  ;;  %v10155_v36 = vld [vmem:[#allocation2 + $0x68] sm:$0x1f] }
 0x33d   :  { %6433 = vmatpush3.bf16.msra.mxu1 %v6787_v41  ;;  %v2147_v41 = vor.u32 %v2146_v38, %v2143_v10  ;;  %v2162_v5 = vrot.slane %v2161_v45, 4  ;;  %v2213_v43 = vrot.slane %v2211_v54, 4  ;;  %v2216_v34 = vrot.slane %v2214_v20, 5  ;;  %v6800_v10 = vld [vmem:[#allocation2 + $0x58] ss:$8 sps:$4 sm:$0xff]  }
 0x33e   :  { %6434 = vmatprep.subr.bf16.mxu1 %v6790_v58  ;;  %v2152_v46 = vrot.slane %v2150_v52, 5  ;;  %v10119_v28 = vsel %vm9692_vm11, %v2176_v18, %v2180_v57  ;;  %v10123_v44 = vsel %vm9692_vm11, %v2190_v27, %v2194_v23  ;;  %v2220_v55 = vshll.u32 %v5595_v63, 16  ;;  %v6801_v38 = vld [vmem:[#allocation2 + $0xf8] ss:$8 sps:$4 sm:$0xff]  }
 0x33f   :  { %v2148_v7 = vrot.slane %v2147_v41, 4  ;;  %v2204_v6 = vrot.slane %v2203_v39, 4  ;;  %v5602_v12 = vcombine.low %v10115_v37, %v10115_v37  ;;  %v2217_v62 = vor.u32 %v2216_v34, %v2213_v43  ;;  %v10159_v41 = vld [vmem:[#allocation2 + $0x70] sm:$0x1f] }
 0x340   :  { %3592 = vmatmul.mubr.bf16.gmra.mrb[52].mxu1 %v6788_v0  ;;  %v2225_v0 = vshrl.u32 %v5596_v35, 16  ;;  %v5633_v40 = vcombine.low %v10119_v28, %v10123_v44  ;;  %v2222_v60 = vrot.slane %v2220_v55, 5  ;;  %v5604_v61 = vcombine.low %v10129_v3, %v10129_v3 }
 0x341   :  { %3599 = vmatprep.mubr.bf16.mxu1 %v6789_v48  ;;  %6435 = vmatpush3.bf16.msra.mxu1 %v6790_v58  ;;  %v2048_v58 = vld [vmem:[#allocation2 + $0x38] sm:$0x1f]  ;;  %v6798_v48 = vld [vmem:[#allocation2 + $0xe8] ss:$8 sps:$4 sm:$0xff]   ;;  %v10139_v30 = vsel %vm9692_vm11, %v2148_v7, %v2152_v46  ;;  %v2218_v8 = vrot.slane %v2217_v62, 4  ;;  %v2267_v54 = vshrl.u32 %v5602_v12, 16  ;;  %v5608_v57 = vcombine.low %v10155_v36, %v10155_v36 }
 0x342   :  { %6436 = vmatprep.subr.bf16.mxu1 %v6793_v59  ;;  %v5598_v47 = vcombine.low %v2048_v58, %v2048_v58  ;;  %v5599_v14 = vcombine.high %v2048_v58, %v2048_v58  ;;  %v2270_v20 = vshll.u32 %v5602_v12, 16  ;;  %v5603_v23 = vcombine.high %v10115_v37, %v10115_v37  ;;  %v6803_v46 = vld [vmem:[#allocation2 + $0x68] ss:$8 sps:$4 sm:$0xff]  }
 0x343   :  { %v10166_v27 = vsel %vm9692_vm11, %v2218_v8, %v2222_v60  ;;  %v5610_v39 = vcombine.low %v10159_v41, %v10159_v41  ;;  %v2309_v55 = vshrl.u32 %v5608_v57, 16 }
 0x344   :  { %v10149_v50 = vshll.u32 %v5599_v14, 16  ;;  %v2312_v14 = vshll.u32 %v5608_v57, 16  ;;  %v10202_v57 = vld [vmem:[#allocation2 + $0x10] sm:$0x1f] }
 0x345   :  { %6437 = vmatpush3.bf16.msra.mxu1 %v6793_v59  ;;  %v2228_v59 = vshll.u32 %v5596_v35, 16  ;;  %v2326_v12 = vshll.u32 %v5610_v39, 16 }
 0x346   :  { %6438 = vmatprep.subr.bf16.mxu1 %v6796_v2 }
 0x347   :  { %v2230_v13 = vrot.slane %v2228_v59, 5  ;;  %v2284_v59 = vshll.u32 %v5604_v61, 16 }
 0x348   :  { %3600 = vmatmul.mubr.bf16.gmra.mrb[56].mxu1 %v6791_v1  ;;  %v2206_v1 = vshll.u32 %v5593_v16, 16 }
 0x349   :  { %3607 = vmatprep.mubr.bf16.mxu1 %v6792_v21  ;;  %6439 = vmatpush3.bf16.msra.mxu1 %v6796_v2  ;;  %v2166_v2 = vrot.slane %v2164_v42, 5  ;;  %v10113_v21 = vld [vmem:[#allocation2 + $0x48] sm:$0x1f]  ;;  %v2286_v7 = vrot.slane %v2284_v59, 5 }
 0x34a   :  { %6440 = vmatprep.subr.bf16.mxu1 %v6799_v22  ;;  %v5600_v56 = vcombine.low %v10113_v21, %v10113_v21  ;;  %v2208_v17 = vrot.slane %v2206_v1, 5  ;;  %v5601_v63 = vcombine.high %v10113_v21, %v10113_v21  ;;  %v2272_v21 = vrot.slane %v2270_v20, 5 }
 0x34b   :  { %v10133_v33 = vsel %vm9692_vm11, %v2162_v5, %v2166_v2  ;;  %v5605_v5 = vcombine.high %v10129_v3, %v10129_v3 }
 0x34c   :  { %v2253_v49 = vshrl.u32 %v5600_v56, 16  ;;  %v2256_v24 = vshll.u32 %v5600_v56, 16  ;;  %v10147_v35 = vsel %vm9692_vm11, %v2204_v6, %v2208_v17  ;;  %v5632_v25 = vcombine.low %v10139_v30, %v10133_v33  ;;  %v6804_v56 = vld [vmem:[#allocation2 + $0x108] ss:$8 sps:$4 sm:$0xff]   ;;  %v10223_v33 = vld [vmem:[#allocation2 + $0x18] sm:$0x1f] }
 0x34d   :  { %6441 = vmatpush3.bf16.msra.mxu1 %v6799_v22  ;;  %v5597_v22 = vcombine.high %v10090_v15, %v10090_v15  ;;  %v2239_v15 = vshrl.u32 %v5598_v47, 16  ;;  %v2262_v1 = vshll.u32 %v5601_v63, 16  ;;  %v2290_v60 = vshll.u32 %v5605_v5, 16 }
 0x34e   :  { %6442 = vmatprep.subr.bf16.mxu1 %v6802_v19  ;;  %v2255_v52 = vrot.slane %v2253_v49, 4  ;;  %v2258_v58 = vrot.slane %v2256_v24, 5  ;;  %v10182_v24 = vld [vmem:[#allocation2 + $0x80] sm:$0x1f] }
 0x34f   :  { %v2234_v9 = vshll.u32 %v5597_v22, 16  ;;  %v2241_v16 = vrot.slane %v2239_v15, 4  ;;  %v2269_v22 = vrot.slane %v2267_v54, 4  ;;  %v2264_v62 = vrot.slane %v2262_v1, 5 }
 0x350   :  { %3608 = vmatmul.mubr.bf16.gmra.mrb[60].mxu1 %v6794_v4  ;;  %v2242_v4 = vshll.u32 %v5598_v47, 16  ;;  %v2259_v43 = vor.u32 %v2258_v58, %v2255_v52  ;;  %v5614_v20 = vcombine.low %v10182_v24, %v10182_v24  ;;  %v2292_v58 = vrot.slane %v2290_v60, 5 }
 0x351   :  { %3615 = vmatprep.mubr.bf16.mxu1 %v6795_v32  ;;  %6443 = vmatpush3.bf16.msra.mxu1 %v6802_v19  ;;  %v2227_v19 = vrot.slane %v2225_v0, 4  ;;  %v2236_v42 = vrot.slane %v2234_v9, 5  ;;  %v2281_v0 = vshrl.u32 %v5604_v61, 16  ;;  %v2323_v9 = vshrl.u32 %v5610_v39, 16 }
 0x352   :  { %6444 = vmatprep.subr.bf16.mxu1 %v6805_v26  ;;  %v2244_v51 = vrot.slane %v2242_v4, 5  ;;  %v2273_v15 = vor.u32 %v2272_v21, %v2269_v22  ;;  %v2276_v4 = vshll.u32 %v5603_v23, 16  ;;  %v2260_v17 = vrot.slane %v2259_v43, 4 }
 0x353   :  { %v2231_v32 = vor.u32 %v2230_v13, %v2227_v19  ;;  %v2283_v47 = vrot.slane %v2281_v0, 4  ;;  %v5634_v19 = vcombine.low %v10147_v35, %v10166_v27  ;;  %v2325_v8 = vrot.slane %v2323_v9, 4 }
 0x354   :  { %v2274_v63 = vrot.slane %v2273_v15, 4  ;;  %v2278_v54 = vrot.slane %v2276_v4, 5  ;;  %v2351_v5 = vshrl.u32 %v5614_v20, 16  ;;  %v2354_v43 = vshll.u32 %v5614_v20, 16 }
 0x355   :  { %6445 = vmatpush3.bf16.msra.mxu1 %v6805_v26  ;;  %v10135_v26 = vld [vmem:[#allocation2 + $0x60] sm:$0x1f]  ;;  %v2232_v45 = vrot.slane %v2231_v32, 4  ;;  %v2287_v32 = vor.u32 %v2286_v7, %v2283_v47  ;;  %v5794_v47 = vcombine.low %v10202_v57, %v10202_v57 }
 0x356   :  { %6462 = vmatprep.subr.bf16.mxu1 %v10104_v53  ;;  %v5606_v29 = vcombine.low %v10135_v26, %v10135_v26  ;;  %v5607_v34 = vcombine.high %v10135_v26, %v10135_v26  ;;  %v2055_v26 = vld [vmem:[#allocation2 + $0x78] sm:$0x1f]  ;;  %v10206_v22 = vsel %vm9692_vm11, %v2274_v63, %v2278_v54  ;;  %v2356_v15 = vrot.slane %v2354_v43, 5  ;;  %v10257_v63 = vld [vmem:[#allocation2 + $0x28] sm:$0x1f] }
 0x357   :  { %v10180_v6 = vsel %vm9692_vm11, %v2232_v45, %v2236_v42  ;;  %v2311_v42 = vrot.slane %v2309_v55, 4  ;;  %v2288_v52 = vrot.slane %v2287_v32, 4  ;;  %v5613_v39 = vcombine.high %v2055_v26, %v2055_v26  ;;  %v10259_v54 = vld [vmem:[#allocation2 + $0x30] sm:$0x1f] }
 0x358   :  { %3616 = vmatmul.mubr.bf16.gmra.mrb[64].mxu1 %v6797_v31  ;;  %v2295_v2 = vshrl.u32 %v5606_v29, 16  ;;  %v2298_v18 = vshll.u32 %v5606_v29, 16  ;;  %v2245_v31 = vor.u32 %v2244_v51, %v2241_v16  ;;  %v2304_v49 = vshll.u32 %v5607_v34, 16 }
 0x359   :  { %3623 = vmatprep.mubr.bf16.mxu1 %v6798_v48  ;;  %v2250_v48 = vrot.slane %v10149_v50, 5  ;;  %v10188_v50 = vld [vmem:[#allocation2 + $0x8] sm:$0x1f]  ;;  %v2314_v29 = vrot.slane %v2312_v14, 5  ;;  %v2328_v16 = vrot.slane %v2326_v12, 5  ;;  %v5612_v51 = vcombine.low %v2055_v26, %v2055_v26 }
 0x35a   :  { %v2297_v37 = vrot.slane %v2295_v2, 4  ;;  %v2300_v13 = vrot.slane %v2298_v18, 5  ;;  %v2246_v3 = vrot.slane %v2245_v31, 4  ;;  %v5792_v0 = vcombine.low %v10188_v50, %v10188_v50  ;;  %v10227_v12 = vld [vmem:[#allocation2 + $0x20] sm:$0x1f] }
 0x35b   :  { %v2306_v2 = vrot.slane %v2304_v49, 5  ;;  %v2315_v31 = vor.u32 %v2314_v29, %v2311_v42  ;;  %v2329_v23 = vor.u32 %v2328_v16, %v2325_v8  ;;  %v2337_v1 = vshrl.u32 %v5612_v51, 16  ;;  %v6820_v49 = vld [vmem:[%s11153_s4 + $0x208] sm:$0xff]  }
 0x35c   :  { %v2301_v61 = vor.u32 %v2300_v13, %v2297_v37  ;;  %v10192_v45 = vsel %vm9692_vm11, %v2246_v3, %v2250_v48  ;;  %v2340_v21 = vshll.u32 %v5612_v51, 16  ;;  %v10213_v34 = vsel %vm9692_vm11, %v2288_v52, %v2292_v58 }
 0x35d   :  { %v3874_v7 = vshrl.u32 %v5792_v0, 16  ;;  %v2316_v30 = vrot.slane %v2315_v31, 4  ;;  %v2339_v14 = vrot.slane %v2337_v1, 4  ;;  %v10225_v9 = vshll.u32 %v5613_v39, 16  ;;  %v10279_v1 = vld [vmem:[#allocation2 + $0x38] sm:$0x1f] }
 0x35e   :  { %v2302_v59 = vrot.slane %v2301_v61, 4  ;;  %v2342_v3 = vrot.slane %v2340_v21, 5  ;;  %v5793_v4 = vcombine.high %v10188_v50, %v10188_v50  ;;  %v3888_v32 = vshrl.u32 %v5794_v47, 16  ;;  %v6830_v21 = vld [vmem:[%s11153_s4 + $0x218] sm:$0xff]  }
 0x35f   :  { %v3876_v26 = vrot.slane %v3874_v7, 4  ;;  %v3891_v60 = vshll.u32 %v5794_v47, 16  ;;  %v5795_v51 = vcombine.high %v10202_v57, %v10202_v57  ;;  %v2348_v20 = vrot.slane %v10225_v9, 5 }
 0x360   :  { %3624 = vmatmul.mubr.bf16.gmra.mrb[68].mxu1 %v6800_v10  ;;  %v5609_v10 = vcombine.high %v10155_v36, %v10155_v36  ;;  %v6806_v36 = vld [vmem:[#allocation2 + $0x78] ss:$8 sps:$4 sm:$0xff]   ;;  %v10219_v37 = vsel %vm9692_vm11, %v2302_v59, %v2306_v2  ;;  %v2343_v8 = vor.u32 %v2342_v3, %v2339_v14  ;;  %v3890_v44 = vrot.slane %v3888_v32, 4 }
 0x361   :  { %3631 = vmatprep.mubr.bf16.mxu1 %v6801_v38  ;;  %v5611_v38 = vcombine.high %v10159_v41, %v10159_v41  ;;  %v10198_v41 = vsel %vm9692_vm11, %v2260_v17, %v2264_v62  ;;  %v2353_v62 = vrot.slane %v2351_v5, 4  ;;  %v5637_v42 = vcombine.low %v10213_v34, %v10219_v37 }
 0x362   :  { %v2318_v18 = vshll.u32 %v5609_v10, 16  ;;  %v5636_v61 = vcombine.low %v10198_v41, %v10206_v22  ;;  %v5796_v10 = vcombine.low %v10223_v33, %v10223_v33  ;;  %v5800_v35 = vcombine.low %v10257_v63, %v10257_v63  ;;  %v10281_v22 = vld [vmem:[#allocation2 + $0x40] sm:$0x1f] }
 0x363   :  { %v2332_v48 = vshll.u32 %v5611_v38, 16  ;;  %v5798_v38 = vcombine.low %v10227_v12, %v10227_v12  ;;  %v2357_v16 = vor.u32 %v2356_v15, %v2353_v62  ;;  %v5802_v27 = vcombine.low %v10259_v54, %v10259_v54  ;;  %v6831_v15 = vld [vmem:[%s11153_s4 + $0x220] sm:$0xff]  }
 0x364   :  { %v2320_v13 = vrot.slane %v2318_v18, 5  ;;  %v3902_v41 = vshrl.u32 %v5796_v10, 16  ;;  %v3905_v52 = vshll.u32 %v5796_v10, 16  ;;  %v5799_v39 = vcombine.high %v10227_v12, %v10227_v12 }
 0x365   :  { %v2334_v55 = vrot.slane %v2332_v48, 5  ;;  %v3916_v58 = vshrl.u32 %v5798_v38, 16  ;;  %v2358_v2 = vrot.slane %v2357_v16, 4  ;;  %v3897_v48 = vshll.u32 %v5795_v51, 16 }
 0x366   :  { %v10246_v50 = vsel %vm9692_vm11, %v2316_v30, %v2320_v13  ;;  %v3904_v5 = vrot.slane %v3902_v41, 4  ;;  %v3907_v43 = vrot.slane %v3905_v52, 5  ;;  %v3933_v13 = vshll.u32 %v5800_v35, 16 }
 0x367   :  { %v3918_v47 = vrot.slane %v3916_v58, 4  ;;  %v5806_v14 = vcombine.low %v10281_v22, %v10281_v22  ;;  %v3899_v3 = vrot.slane %v3897_v48, 5  ;;  %v5801_v32 = vcombine.high %v10257_v63, %v10257_v63 }
 0x368   :  { %3632 = vmatmul.mubr.bf16.gmra.mrb[72].mxu1 %v6803_v46  ;;  %v3877_v46 = vshll.u32 %v5792_v0, 16  ;;  %v3919_v0 = vshll.u32 %v5798_v38, 16  ;;  %v5803_v41 = vcombine.high %v10259_v54, %v10259_v54 }
 0x369   :  { %3639 = vmatprep.mubr.bf16.mxu1 %v6804_v56  ;;  %v5615_v56 = vcombine.high %v10182_v24, %v10182_v24  ;;  %v5635_v24 = vcombine.low %v10180_v6, %v10192_v45  ;;  %v3883_v45 = vshll.u32 %v5793_v4, 16  ;;  %v3908_v4 = vor.u32 %v3907_v43, %v3904_v5  ;;  %v10351_v5 = vld [vmem:[#allocation2 + $0x68] sm:$0x1f] }
 0x36a   :  { %v3879_v17 = vrot.slane %v3877_v46, 5  ;;  %v3921_v7 = vrot.slane %v3919_v0, 5  ;;  %v3930_v46 = vshrl.u32 %v5800_v35, 16  ;;  %v3972_v16 = vshrl.u32 %v5806_v14, 16 }
 0x36b   :  { %v2360_v6 = vshll.u32 %v5615_v56, 16  ;;  %v3885_v18 = vrot.slane %v3883_v45, 5  ;;  %v3947_v56 = vshll.u32 %v5802_v27, 16  ;;  %v3975_v51 = vshll.u32 %v5806_v14, 16 }
 0x36c   :  { %v3880_v28 = vor.u32 %v3879_v17, %v3876_v26  ;;  %v3922_v26 = vor.u32 %v3921_v7, %v3918_v47  ;;  %v3925_v17 = vshll.u32 %v5799_v39, 16  ;;  %v3939_v52 = vshll.u32 %v5801_v32, 16 }
 0x36d   :  { %v2362_v59 = vrot.slane %v2360_v6, 5  ;;  %v3949_v38 = vrot.slane %v3947_v56, 5  ;;  %v5805_v35 = vcombine.high %v10279_v1, %v10279_v1 }
 0x36e   :  { %v3881_v57 = vrot.slane %v3880_v28, 4  ;;  %v3923_v58 = vrot.slane %v3922_v26, 4  ;;  %v3941_v39 = vrot.slane %v3939_v52, 5 }
 0x36f   :  { %v10292_v30 = vsel %vm9692_vm11, %v2358_v2, %v2362_v59  ;;  %v3974_v2 = vrot.slane %v3972_v16, 4  ;;  %v3967_v7 = vshll.u32 %v5805_v35, 16 }
 0x370   :  { %3640 = vmatmul.mubr.bf16.gmra.mrb[76].mxu1 %v6806_v36  ;;  %v6821_v36 = vld [vmem:[%s11153_s4 + $0x210] sm:$0xff]   ;;  %v10300_v9 = vsel %vm9692_vm11, %v3881_v57, %v3885_v18  ;;  %v3977_v18 = vrot.slane %v3975_v51, 5 }
 0x371   :  { %6446 = vmatprep.mubr.bf16.mxu1 %v5632_v25  ;;  %v2330_v25 = vrot.slane %v2329_v23, 4  ;;  %v5797_v23 = vcombine.high %v10223_v33, %v10223_v33  ;;  %v3969_v32 = vrot.slane %v3967_v7, 5 }
 0x373   :  { %v10250_v29 = vsel %vm9692_vm11, %v2330_v25, %v2334_v55  ;;  %v3944_v55 = vshrl.u32 %v5802_v27, 16  ;;  %v5804_v25 = vcombine.low %v10279_v1, %v10279_v1  ;;  %v3911_v62 = vshll.u32 %v5797_v23, 16  ;;  %v6841_v23 = vld [vmem:[%s11153_s4 + $0x230] sm:$0xff]  }
 0x374   :  { %v5807_v1 = vcombine.high %v10281_v22, %v10281_v22  ;;  %v6850_v22 = vld [vmem:[%s11153_s4 + $0x238] sm:$0xff]  }
 0x375   :  { %v3946_v10 = vrot.slane %v3944_v55, 4  ;;  %v3958_v6 = vshrl.u32 %v5804_v25, 16 }
 0x377   :  { %v3950_v59 = vor.u32 %v3949_v38, %v3946_v10  ;;  %v3960_v27 = vrot.slane %v3958_v6, 4 }
 0x378   :  { %6447 = vmatmul.mubr.bf16.vlgmr.msra.gmra.mrb[32].mxu1 %v5633_v40  ;;  %v3893_v40 = vrot.slane %v3891_v60, 5  ;;  %v10307_v60 = vld [vmem:[#allocation2 + $0x50] sm:$0x1f] }
 0x379   :  { %6463 = vmatpush3.bf16.msra.mxu1 %v10104_v53  ;;  %6450 = vmatprep.mubr.bf16.mxu1 %v5634_v19  ;;  %v5638_v53 = vcombine.low %v10246_v50, %v10250_v29  ;;  %v2344_v19 = vrot.slane %v2343_v8, 4  ;;  %v3961_v8 = vshll.u32 %v5804_v25, 16  ;;  %v5808_v63 = vcombine.low %v10307_v60, %v10307_v60  ;;  %v10355_v25 = vld [vmem:[#allocation2 + $0x78] sm:$0x1f] }
 0x37a   :  { %6464 = vmatprep.subr.bf16.mxu1 %v6820_v49  ;;  %v3894_v31 = vor.u32 %v3893_v40, %v3890_v44  ;;  %v6840_v44 = vld [vmem:[%s11153_s4 + $0x228] sm:$0xff]   ;;  %v3909_v40 = vrot.slane %v3908_v4, 4  ;;  %v3953_v50 = vshll.u32 %v5803_v41, 16  ;;  %v3951_v43 = vrot.slane %v3950_v59, 4 }
 0x37b   :  { %v10288_v33 = vsel %vm9692_vm11, %v2344_v19, %v2348_v20  ;;  %v3913_v20 = vrot.slane %v3911_v62, 5  ;;  %v3963_v19 = vrot.slane %v3961_v8, 5  ;;  %v3986_v54 = vshrl.u32 %v5808_v63, 16 }
 0x37c   :  { %v3895_v12 = vrot.slane %v3894_v31, 4  ;;  %v3989_v48 = vshll.u32 %v5808_v63, 16  ;;  %v5639_v34 = vcombine.low %v10288_v33, %v10292_v30  ;;  %v5809_v4 = vcombine.high %v10307_v60, %v10307_v60 }
 0x37d   :  { %6465 = vmatpush3.bf16.msra.mxu1 %v6820_v49  ;;  %v10309_v49 = vld [vmem:[#allocation2 + $0x58] sm:$0x1f]  ;;  %v3964_v47 = vor.u32 %v3963_v19, %v3960_v27  ;;  %v3988_v55 = vrot.slane %v3986_v54, 4 }
 0x37e   :  { %6466 = vmatprep.subr.bf16.mxu1 %v6821_v36  ;;  %v10313_v45 = vsel %vm9692_vm11, %v3895_v12, %v3899_v3  ;;  %v5810_v28 = vcombine.low %v10309_v49, %v10309_v49  ;;  %v3991_v56 = vrot.slane %v3989_v48, 5  ;;  %v5814_v3 = vcombine.low %v10351_v5, %v10351_v5 }
 0x37f   :  { %v5840_v37 = vcombine.low %v10300_v9, %v10313_v45  ;;  %v3955_v9 = vrot.slane %v3953_v50, 5  ;;  %v5811_v26 = vcombine.high %v10309_v49, %v10309_v49  ;;  %v3965_v10 = vrot.slane %v3964_v47, 4 }
 0x380   :  { %6451 = vmatmul.mubr.bf16.gmra.mrb[36].mxu1 %v5635_v24  ;;  %v3932_v24 = vrot.slane %v3930_v46, 4  ;;  %v4000_v57 = vshrl.u32 %v5810_v28, 16  ;;  %v4003_v31 = vshll.u32 %v5810_v28, 16  ;;  %v3978_v46 = vor.u32 %v3977_v18, %v3974_v2 }
 0x381   :  { %6467 = vmatpush3.bf16.msra.mxu1 %v6821_v36  ;;  %6454 = vmatprep.mubr.bf16.mxu1 %v5636_v61  ;;  %v3935_v61 = vrot.slane %v3933_v13, 5  ;;  %v3927_v36 = vrot.slane %v3925_v17, 5  ;;  %v10353_v13 = vld [vmem:[#allocation2 + $0x70] sm:$0x1f]  ;;  %v3956_v17 = vsel %vm9692_vm11, %v3951_v43, %v3955_v9  ;;  %v3992_v6 = vor.u32 %v3991_v56, %v3988_v55 }
 0x382   :  { %6468 = vmatprep.subr.bf16.mxu1 %v6830_v21  ;;  %v4002_v33 = vrot.slane %v4000_v57, 4  ;;  %v4005_v30 = vrot.slane %v4003_v31, 5  ;;  %v3979_v38 = vrot.slane %v3978_v46, 4  ;;  %v4028_v16 = vshrl.u32 %v5814_v3, 16 }
 0x383   :  { %v3936_v0 = vor.u32 %v3935_v61, %v3932_v24  ;;  %v10345_v29 = vsel %vm9692_vm11, %v3923_v58, %v3927_v36  ;;  %v5816_v24 = vcombine.low %v10353_v13, %v10353_v13  ;;  %v5818_v61 = vcombine.low %v10355_v25, %v10355_v25  ;;  %v10380_v58 = vld [vmem:[#allocation2 + $0x88] sm:$0x1f] }
 0x384   :  { %v4006_v60 = vor.u32 %v4005_v30, %v4002_v33  ;;  %v4031_v51 = vshll.u32 %v5814_v3, 16  ;;  %v3995_v63 = vshll.u32 %v5809_v4, 16  ;;  %v4009_v28 = vshll.u32 %v5811_v26, 16 }
 0x385   :  { %6469 = vmatpush3.bf16.msra.mxu1 %v6830_v21  ;;  %v10349_v21 = vld [vmem:[#allocation2 + $0x60] sm:$0x1f]  ;;  %v4045_v36 = vshll.u32 %v5816_v24, 16  ;;  %v4056_v41 = vshrl.u32 %v5818_v61, 16  ;;  %v4059_v52 = vshll.u32 %v5818_v61, 16  ;;  %v3993_v35 = vrot.slane %v3992_v6, 4 }
 0x386   :  { %6470 = vmatprep.subr.bf16.mxu1 %v6831_v15  ;;  %v5812_v12 = vcombine.low %v10349_v21, %v10349_v21  ;;  %v4007_v27 = vrot.slane %v4006_v60, 4  ;;  %v4030_v18 = vrot.slane %v4028_v16, 4  ;;  %v4033_v54 = vrot.slane %v4031_v51, 5 }
 0x387   :  { %v3997_v48 = vrot.slane %v3995_v63, 5  ;;  %v4011_v57 = vrot.slane %v4009_v28, 5  ;;  %v4061_v50 = vrot.slane %v4059_v52, 5  ;;  %v5817_v7 = vcombine.high %v10353_v13, %v10353_v13 }
 0x388   :  { %6455 = vmatmul.mubr.bf16.gmra.mrb[40].mxu1 %v5637_v42  ;;  %v10341_v42 = vsel %vm9692_vm11, %v3909_v40, %v3913_v20  ;;  %v4014_v8 = vshrl.u32 %v5812_v12, 16  ;;  %v4017_v49 = vshll.u32 %v5812_v12, 16  ;;  %v4042_v40 = vshrl.u32 %v5816_v24, 16 }
 0x389   :  { %6471 = vmatpush3.bf16.msra.mxu1 %v6831_v15  ;;  %6458 = vmatprep.mubr.bf16.mxu1 %v5638_v53  ;;  %v3937_v53 = vrot.slane %v3936_v0, 4  ;;  %v5841_v14 = vcombine.low %v10341_v42, %v10345_v29  ;;  %v3981_v15 = vshll.u32 %v5807_v1, 16  ;;  %v3970_v0 = vsel %vm9692_vm11, %v3965_v10, %v3969_v32 }
 0x38a   :  { %6472 = vmatprep.subr.bf16.mxu1 %v6840_v44  ;;  %v4016_v19 = vrot.slane %v4014_v8, 4  ;;  %v4019_v2 = vrot.slane %v4017_v49, 5  ;;  %v4058_v42 = vrot.slane %v4056_v41, 4  ;;  %v3998_v29 = vsel %vm9692_vm11, %v3993_v35, %v3997_v48 }
 0x38b   :  { %v3942_v62 = vsel %vm9692_vm11, %v3937_v53, %v3941_v39  ;;  %v3983_v20 = vrot.slane %v3981_v15, 5  ;;  %v4012_v53 = vsel %vm9692_vm11, %v4007_v27, %v4011_v57  ;;  %v5813_v39 = vcombine.high %v10349_v21, %v10349_v21 }
 0x38c   :  { %v5842_v45 = vcombine.low %v3942_v62, %v3956_v17  ;;  %v5815_v1 = vcombine.high %v10351_v5, %v10351_v5  ;;  %v4020_v43 = vor.u32 %v4019_v2, %v4016_v19  ;;  %v4034_v47 = vor.u32 %v4033_v54, %v4030_v18 }
 0x38d   :  { %6473 = vmatpush3.bf16.msra.mxu1 %v6840_v44  ;;  %v10378_v44 = vld [vmem:[#allocation2 + $0x80] sm:$0x1f]  ;;  %v3984_v59 = vsel %vm9692_vm11, %v3979_v38, %v3983_v20  ;;  %v5819_v46 = vcombine.high %v10355_v25, %v10355_v25  ;;  %v5844_v12 = vcombine.low %v3998_v29, %v4012_v53  ;;  %v4023_v21 = vshll.u32 %v5813_v39, 16 }
 0x38e   :  { %6474 = vmatprep.subr.bf16.mxu1 %v6841_v23  ;;  %v5820_v31 = vcombine.low %v10378_v44, %v10378_v44  ;;  %v5843_v9 = vcombine.low %v3970_v0, %v3984_v59  ;;  %v4037_v3 = vshll.u32 %v5815_v1, 16  ;;  %v4021_v62 = vrot.slane %v4020_v43, 4 }
 0x38f   :  { %v4035_v5 = vrot.slane %v4034_v47, 4  ;;  %v4051_v15 = vshll.u32 %v5817_v7, 16  ;;  %v4065_v4 = vshll.u32 %v5819_v46, 16  ;;  %v4025_v61 = vrot.slane %v4023_v21, 5 }
 0x390   :  { %6459 = vmatmul.mubr.bf16.gmra.mrb[44].mxu1 %v5639_v34  ;;  %v4044_v34 = vrot.slane %v4042_v40, 4  ;;  %v4070_v55 = vshrl.u32 %v5820_v31, 16  ;;  %v4073_v56 = vshll.u32 %v5820_v31, 16  ;;  %v4039_v10 = vrot.slane %v4037_v3, 5  ;;  %v11551_v31 = vld [vmem:[#allocation7_spill] sm:$0xff] }
 0x391   :  { %6475 = vmatpush3.bf16.msra.mxu1 %v6841_v23  ;;  %6478 = vmatprep.mubr.bf16.mxu1 %v5840_v37  ;;  %v5822_v23 = vcombine.low %v10380_v58, %v10380_v58  ;;  %v4047_v37 = vrot.slane %v4045_v36, 5  ;;  %v5821_v38 = vcombine.high %v10378_v44, %v10378_v44  ;;  %v5823_v6 = vcombine.high %v10380_v58, %v10380_v58 }
 0x392   :  { %6476 = vmatprep.subr.bf16.mxu1 %v6850_v22  ;;  %v4072_v26 = vrot.slane %v4070_v55, 4  ;;  %v4075_v17 = vrot.slane %v4073_v56, 5  ;;  %v4053_v60 = vrot.slane %v4051_v15, 5  ;;  %v4067_v8 = vrot.slane %v4065_v4, 5 }
 0x393   :  { %v4084_v33 = vshrl.u32 %v5822_v23, 16  ;;  %v4087_v30 = vshll.u32 %v5822_v23, 16  ;;  %v4026_v49 = vsel %vm9692_vm11, %v4021_v62, %v4025_v61  ;;  %v4040_v16 = vsel %vm9692_vm11, %v4035_v5, %v4039_v10 }
 0x394   :  { %v4076_v51 = vor.u32 %v4075_v17, %v4072_v26  ;;  %v4079_v28 = vshll.u32 %v5821_v38, 16  ;;  %v4093_v44 = vshll.u32 %v5823_v6, 16  ;;  %v5845_v40 = vcombine.low %v4026_v49, %v4040_v16 }
 0x395   :  { %6477 = vmatpush3.bf16.msra.mxu1 %v6850_v22  ;;  %v4048_v22 = vor.u32 %v4047_v37, %v4044_v34  ;;  %v4086_v13 = vrot.slane %v4084_v33, 4  ;;  %v4089_v32 = vrot.slane %v4087_v30, 5 }
 0x396   :  { %v4077_v41 = vrot.slane %v4076_v51, 4  ;;  %v4081_v58 = vrot.slane %v4079_v28, 5  ;;  %v4095_v0 = vrot.slane %v4093_v44, 5 }
 0x397   :  { %v4049_v25 = vrot.slane %v4048_v22, 4 }
 0x398   :  { %6479 = vmatmul.mubr.bf16.vlgmr.msra.gmra.mrb[32].mxu1 %v5841_v14  ;;  %v4062_v14 = vor.u32 %v4061_v50, %v4058_v42  ;;  %v4082_v35 = vsel %vm9692_vm11, %v4077_v41, %v4081_v58 }
 0x399   :  { %6482 = vmatprep.mubr.bf16.mxu1 %v5842_v45  ;;  %v4090_v45 = vor.u32 %v4089_v32, %v4086_v13  ;;  %v4054_v20 = vsel %vm9692_vm11, %v4049_v25, %v4053_v60 }
 0x39a   :  { %v4063_v24 = vrot.slane %v4062_v14, 4 }
 0x39b   :  { %v4091_v52 = vrot.slane %v4090_v45, 4 }
 0x39c   :  { %v4068_v63 = vsel %vm9692_vm11, %v4063_v24, %v4067_v8 }
 0x39d   :  { %v5846_v36 = vcombine.low %v4054_v20, %v4068_v63  ;;  %v4096_v27 = vsel %vm9692_vm11, %v4091_v52, %v4095_v0 }
 0x39e   :  { %v5847_v48 = vcombine.low %v4082_v35, %v4096_v27 }
 0x3a0   :  { %6483 = vmatmul.mubr.bf16.gmra.mrb[36].mxu1 %v5843_v9  ;;  %v6062_v59 = vpop.f32.mrb[0].mxu1 }
 0x3a1   :  { %6486 = vmatprep.mubr.bf16.mxu1 %v5844_v12  ;;  %v6063_v19 = vpop.f32.mrb[1].mxu1 }
 0x3a2   :  { %v10418_v2 = vadd.f32 %v6063_v19, %v6062_v59  ;;  %v6065_v18 = vpop.f32.mrb[2].mxu1 }
 0x3a3   :  { %v6066_v54 = vpop.f32.mrb[3].mxu1 }
 0x3a4   :  { %v10420_v57 = vadd.f32 %v6066_v54, %v6065_v18 }
 0x3a8   :  { %6487 = vmatmul.mubr.bf16.gmra.mrb[40].mxu1 %v5845_v40  ;;  %v6068_v23 = vpop.f32.mrb[4].mxu1 }
 0x3a9   :  { %6490 = vmatprep.mubr.bf16.mxu1 %v5846_v36  ;;  %v6069_v34 = vpop.f32.mrb[5].mxu1 }
 0x3aa   :  { %v10423_v37 = vadd.f32 %v6069_v34, %v6068_v23  ;;  %v6071_v42 = vpop.f32.mrb[6].mxu1 }
 0x3ab   :  { %v6072_v50 = vpop.f32.mrb[7].mxu1 }
 0x3ac   :  { %v10425_v29 = vadd.f32 %v6072_v50, %v6071_v42 }
 0x3b0   :  { %6491 = vmatmul.mubr.bf16.gmra.mrb[44].mxu1 %v5847_v48  ;;  %v6074_v11 = vpop.f32.mrb[8].mxu1 }
 0x3b1   :  { %6550 = vmatprep.mubr.bf16.mxu1 %v11551_v31  ;;  %v6075_v53 = vpop.f32.mrb[9].mxu1 }
 0x3b2   :  { %v10427_v39 = vadd.f32 %v6075_v53, %v6074_v11  ;;  %v6077_v1 = vpop.f32.mrb[10].mxu1 }
 0x3b3   :  { %v6078_v43 = vpop.f32.mrb[11].mxu1 }
 0x3b4   :  { %v10429_v47 = vadd.f32 %v6078_v43, %v6077_v1 }
 0x3b7   :  { %v6222_v7 = vpop.f32.mrb[64].mxu0 }
 0x3b8   :  { %v6223_v46 = vpop.f32.mrb[65].mxu0  ;;  %v6080_v55 = vpop.f32.mrb[12].mxu1 }
 0x3b9   :  { %v10431_v56 = vadd.f32 %v6223_v46, %v6222_v7  ;;  %v6225_v33 = vpop.f32.mrb[66].mxu0  ;;  %v6081_v30 = vpop.f32.mrb[13].mxu1 }
 0x3ba   :  { %v6226_v22 = vpop.f32.mrb[67].mxu0  ;;  %v10433_v14 = vadd.f32 %v6081_v30, %v6080_v55  ;;  %v6083_v9 = vpop.f32.mrb[14].mxu1 }
 0x3bb   :  { %v10435_v12 = vadd.f32 %v6226_v22, %v6225_v33  ;;  %v6084_v21 = vpop.f32.mrb[15].mxu1 }
 0x3bc   :  { %v10437_v3 = vadd.f32 %v6084_v21, %v6083_v9 }
 0x3bf   :  { %v6228_v62 = vpop.f32.mrb[68].mxu0 }
 0x3c0   :  { %v6229_v5 = vpop.f32.mrb[69].mxu0  ;;  %v6086_v15 = vpop.f32.mrb[16].mxu1 }
 0x3c1   :  { %v10439_v4 = vadd.f32 %v6229_v5, %v6228_v62  ;;  %v6231_v26 = vpop.f32.mrb[70].mxu0  ;;  %v6087_v17 = vpop.f32.mrb[17].mxu1 }
 0x3c2   :  { %v6232_v13 = vpop.f32.mrb[71].mxu0  ;;  %v10441_v32 = vadd.f32 %v6087_v17, %v6086_v15  ;;  %v6089_v25 = vpop.f32.mrb[18].mxu1 }
 0x3c3   :  { %v10443_v24 = vadd.f32 %v6232_v13, %v6231_v26  ;;  %v6090_v61 = vpop.f32.mrb[19].mxu1 }
 0x3c4   :  { %v10445_v10 = vadd.f32 %v6090_v61, %v6089_v25 }
 0x3c7   :  { %v6234_v38 = vpop.f32.mrb[72].mxu0 }
 0x3c8   :  { %v6235_v6 = vpop.f32.mrb[73].mxu0  ;;  %v6092_v60 = vpop.f32.mrb[20].mxu1 }
 0x3c9   :  { %v10447_v8 = vadd.f32 %v6235_v6, %v6234_v38  ;;  %v6237_v49 = vpop.f32.mrb[74].mxu0  ;;  %v6093_v16 = vpop.f32.mrb[21].mxu1 }
 0x3ca   :  { %v6238_v51 = vpop.f32.mrb[75].mxu0  ;;  %v10449_v45 = vadd.f32 %v6093_v16, %v6092_v60  ;;  %v6095_v20 = vpop.f32.mrb[22].mxu1 }
 0x3cb   :  { %v10451_v63 = vadd.f32 %v6238_v51, %v6237_v49  ;;  %v6096_v28 = vpop.f32.mrb[23].mxu1 }
 0x3cc   :  { %v10453_v44 = vadd.f32 %v6096_v28, %v6095_v20 }
 0x3cf   :  { %v6240_v40 = vpop.f32.mrb[76].mxu0 }
 0x3d0   :  { %v6241_v36 = vpop.f32.mrb[77].mxu0  ;;  %v6098_v41 = vpop.f32.mrb[24].mxu1 }
 0x3d1   :  { %v10455_v52 = vadd.f32 %v6241_v36, %v6240_v40  ;;  %v6243_v58 = vpop.f32.mrb[78].mxu0  ;;  %v6099_v0 = vpop.f32.mrb[25].mxu1 }
 0x3d2   :  { %v6244_v59 = vpop.f32.mrb[79].mxu0  ;;  %v10457_v35 = vadd.f32 %v6099_v0, %v6098_v41  ;;  %v6101_v27 = vpop.f32.mrb[26].mxu1 }
 0x3d3   :  { %v10459_v19 = vadd.f32 %v6244_v59, %v6243_v58  ;;  %v6102_v18 = vpop.f32.mrb[27].mxu1 }
 0x3d4   :  { %v10461_v54 = vadd.f32 %v6102_v18, %v6101_v27 }
 0x3d7   :  { %v6246_v48 = vpop.f32.mrb[80].mxu0 }
 0x3d8   :  { %v6247_v31 = vpop.f32.mrb[81].mxu0  ;;  %v6104_v23 = vpop.f32.mrb[28].mxu1 }
 0x3d9   :  { %v10463_v34 = vadd.f32 %v6247_v31, %v6246_v48  ;;  %v6249_v42 = vpop.f32.mrb[82].mxu0  ;;  %v6105_v50 = vpop.f32.mrb[29].mxu1 }
 0x3da   :  { %v6250_v11 = vpop.f32.mrb[83].mxu0  ;;  %v10465_v53 = vadd.f32 %v6105_v50, %v6104_v23  ;;  %v6107_v1 = vpop.f32.mrb[30].mxu1 }
 0x3db   :  { %v10467_v43 = vadd.f32 %v6250_v11, %v6249_v42  ;;  %v6108_v7 = vpop.f32.mrb[31].mxu1 }
 0x3dc   :  { %v10469_v46 = vadd.f32 %v6108_v7, %v6107_v1 }
 0x3df   :  { %v6252_v55 = vpop.f32.mrb[84].mxu0 }
 0x3e0   :  { %v6253_v33 = vpop.f32.mrb[85].mxu0 }
 0x3e1   :  { %v10471_v30 = vadd.f32 %v6253_v33, %v6252_v55  ;;  %v6255_v22 = vpop.f32.mrb[86].mxu0 }
 0x3e2   :  { %v6256_v9 = vpop.f32.mrb[87].mxu0 }
 0x3e3   :  { %v10473_v21 = vadd.f32 %v6256_v9, %v6255_v22 }
 0x3e7   :  { %v6258_v62 = vpop.f32.mrb[88].mxu0 }
 0x3e8   :  { %v6259_v5 = vpop.f32.mrb[89].mxu0 }
 0x3e9   :  { %v10475_v15 = vadd.f32 %v6259_v5, %v6258_v62  ;;  %v6261_v26 = vpop.f32.mrb[90].mxu0 }
 0x3ea   :  { %v6262_v17 = vpop.f32.mrb[91].mxu0 }
 0x3eb   :  { %v10477_v13 = vadd.f32 %v6262_v17, %v6261_v26 }
 0x3f6   :  { %v6264_v25 = vpop.f32.mrb[92].mxu0 }
 0x3f7   :  { %v6265_v61 = vpop.f32.mrb[93].mxu0 }
 0x3f8   :  { %v10479_v38 = vadd.f32 %v6265_v61, %v6264_v25  ;;  %v6267_v6 = vpop.f32.mrb[94].mxu0 }
 0x3f9   :  { %v6268_v60 = vpop.f32.mrb[95].mxu0 }
 0x3fa   :  { %v10481_v49 = vadd.f32 %v6268_v60, %v6267_v6 }
 0x40b   :  { %v6142_v16 = vpop.f32.mrb[48].mxu1 }
 0x40c   :  { %v6143_v51 = vpop.f32.mrb[49].mxu1 }
 0x40d   :  { %v6144_v20 = vadd.f32 %v6143_v51, %v6142_v16  ;;  %v6145_v28 = vpop.f32.mrb[50].mxu1 }
 0x40e   :  { %v6146_v40 = vpop.f32.mrb[51].mxu1 }
 0x40f   :  { %v6577_v36 = vadd.f32 %v6144_v20, %v10418_v2  ;;  %v6147_v41 = vadd.f32 %v6146_v40, %v6145_v28 }
 0x411   :  { %v6583_v58 = vadd.f32 %v6147_v41, %v10420_v57  ;;  %v10486_v0 = vadd.f32 %v6577_v36, %v10431_v56 }
 0x413   :  { %v6148_v59 = vpop.f32.mrb[52].mxu1  ;;  %v10489_v27 = vadd.f32 %v6583_v58, %v10435_v12 }
 0x414   :  { %v6149_v18 = vpop.f32.mrb[53].mxu1 }
 0x415   :  { %v6150_v48 = vadd.f32 %v6149_v18, %v6148_v59  ;;  %v6151_v31 = vpop.f32.mrb[54].mxu1 }
 0x416   :  { %v6152_v23 = vpop.f32.mrb[55].mxu1 }
 0x417   :  { %v6574_v42 = vadd.f32 %v6150_v48, %v10423_v37  ;;  %v6153_v50 = vadd.f32 %v6152_v23, %v6151_v31 }
 0x419   :  { %v6580_v11 = vadd.f32 %v6153_v50, %v10425_v29  ;;  %v10494_v2 = vadd.f32 %v6574_v42, %v10439_v4 }
 0x41b   :  { %v6154_v57 = vpop.f32.mrb[56].mxu1  ;;  %v10497_v56 = vadd.f32 %v6580_v11, %v10443_v24 }
 0x41c   :  { %v6155_v1 = vpop.f32.mrb[57].mxu1 }
 0x41d   :  { %v6156_v7 = vadd.f32 %v6155_v1, %v6154_v57  ;;  %v6157_v12 = vpop.f32.mrb[58].mxu1 }
 0x41e   :  { %v6158_v55 = vpop.f32.mrb[59].mxu1 }
 0x41f   :  { %v6589_v33 = vadd.f32 %v6156_v7, %v10427_v39  ;;  %v6159_v22 = vadd.f32 %v6158_v55, %v6157_v12 }
 0x421   :  { %v6595_v9 = vadd.f32 %v6159_v22, %v10429_v47  ;;  %v10502_v37 = vadd.f32 %v6589_v33, %v10447_v8 }
 0x423   :  { %v6160_v29 = vpop.f32.mrb[60].mxu1  ;;  %v10505_v4 = vadd.f32 %v6595_v9, %v10451_v63 }
 0x424   :  { %v6161_v62 = vpop.f32.mrb[61].mxu1 }
 0x425   :  { %v6162_v5 = vadd.f32 %v6161_v62, %v6160_v29  ;;  %v6163_v24 = vpop.f32.mrb[62].mxu1 }
 0x426   :  { %v6164_v26 = vpop.f32.mrb[63].mxu1 }
 0x427   :  { %v6586_v17 = vadd.f32 %v6162_v5, %v10433_v14  ;;  %v6165_v25 = vadd.f32 %v6164_v26, %v6163_v24  ;;  %v10573_v5 = vld [vmem:[%s11157_s10 + $0x8] sm:$0xff]  }
 0x429   :  { %v6592_v61 = vadd.f32 %v6165_v25, %v10437_v3  ;;  %v10510_v39 = vadd.f32 %v6586_v17, %v10455_v52  ;;  %v10589_v17 = vld [vmem:[%s11157_s10 + $0x10] sm:$0xff]  }
 0x42b   :  { %v6166_v47 = vpop.f32.mrb[64].mxu1  ;;  %v10513_v8 = vadd.f32 %v6592_v61, %v10459_v19 }
 0x42c   :  { %v6167_v6 = vpop.f32.mrb[65].mxu1 }
 0x42d   :  { %v6168_v60 = vadd.f32 %v6167_v6, %v6166_v47  ;;  %v6169_v63 = vpop.f32.mrb[66].mxu1 }
 0x42e   :  { %v6170_v16 = vpop.f32.mrb[67].mxu1 }
 0x42f   :  { %v6601_v51 = vadd.f32 %v6168_v60, %v10441_v32  ;;  %v6171_v20 = vadd.f32 %v6170_v16, %v6169_v63 }
 0x431   :  { %v6607_v28 = vadd.f32 %v6171_v20, %v10445_v10  ;;  %v10518_v14 = vadd.f32 %v6601_v51, %v10463_v34  ;;  %v10610_v51 = vld [vmem:[%s11157_s10 + $0x18] sm:$0xff]  }
 0x433   :  { %v6172_v3 = vpop.f32.mrb[68].mxu1  ;;  %v10521_v52 = vadd.f32 %v6607_v28, %v10467_v43 }
 0x434   :  { %v6173_v40 = vpop.f32.mrb[69].mxu1 }
 0x435   :  { %v6174_v36 = vadd.f32 %v6173_v40, %v6172_v3  ;;  %v6175_v19 = vpop.f32.mrb[70].mxu1  ;;  %v6885_v3 = vld [vmem:[%s11156_s7 + $0x30] sm:$0xff]  }
 0x436   :  { %v6176_v41 = vpop.f32.mrb[71].mxu1 }
 0x437   :  { %v6598_v58 = vadd.f32 %v6174_v36, %v10449_v45  ;;  %v6177_v59 = vadd.f32 %v6176_v41, %v6175_v19  ;;  %v6886_v19 = vld [vmem:[%s11156_s7 + $0x38] sm:$0xff]  }
 0x439   :  { %v6604_v18 = vadd.f32 %v6177_v59, %v10453_v44  ;;  %v10526_v32 = vadd.f32 %v6598_v58, %v10471_v30 }
 0x43b   :  { %v6178_v10 = vpop.f32.mrb[72].mxu1  ;;  %v10529_v34 = vadd.f32 %v6604_v18, %v10473_v21 }
 0x43c   :  { %v6179_v48 = vpop.f32.mrb[73].mxu1 }
 0x43d   :  { %v6180_v31 = vadd.f32 %v6179_v48, %v6178_v10  ;;  %v6181_v43 = vpop.f32.mrb[74].mxu1  ;;  %v10642_v48 = vld [vmem:[%s11157_s10 + $0x28] sm:$0xff]  }
 0x43e   :  { %v6182_v23 = vpop.f32.mrb[75].mxu1 }
 0x43f   :  { %v6613_v42 = vadd.f32 %v6180_v31, %v10457_v35  ;;  %v6183_v50 = vadd.f32 %v6182_v23, %v6181_v43 }
 0x441   :  { %v6619_v11 = vadd.f32 %v6183_v50, %v10461_v54  ;;  %v10534_v45 = vadd.f32 %v6613_v42, %v10475_v15  ;;  %v6879_v15 = vld [vmem:[%s11156_s7] sm:$0xff]   ;;  %v10651_v42 = vld [vmem:[%s11157_s10 + $0x30] sm:$0xff]  }
 0x442   :  { %6494 = vmatprep.subr.bf16.mxu0 %v6879_v15 }
 0x443   :  { %v6184_v44 = vpop.f32.mrb[76].mxu1  ;;  %v10537_v30 = vadd.f32 %v6619_v11, %v10477_v13  ;;  %v6880_v13 = vld [vmem:[%s11156_s7 + $0x8] sm:$0xff]   ;;  %6495 = vmatpush3.bf16.msra.mxu0 %v6879_v15 }
 0x444   :  { %v6185_v57 = vpop.f32.mrb[77].mxu1  ;;  %6496 = vmatprep.subr.bf16.mxu0 %v6880_v13 }
 0x445   :  { %v6186_v1 = vadd.f32 %v6185_v57, %v6184_v44  ;;  %v6187_v21 = vpop.f32.mrb[78].mxu1 }
 0x446   :  { %v6188_v7 = vpop.f32.mrb[79].mxu1 }
 0x447   :  { %v6610_v12 = vadd.f32 %v6186_v1, %v10465_v53  ;;  %v6189_v55 = vadd.f32 %v6188_v7, %v6187_v21  ;;  %v6881_v53 = vld [vmem:[%s11156_s7 + $0x10] sm:$0xff]   ;;  %6497 = vmatpush3.bf16.msra.mxu0 %v6880_v13  ;;  %v10661_v21 = vld [vmem:[%s11157_s10 + $0x38] sm:$0xff]   ;;  %v11552_v13 = vld [vmem:[#allocation8_spill] sm:$0xff] }
 0x448   :  { %6498 = vmatprep.subr.bf16.mxu0 %v6881_v53 }
 0x449   :  { %v6616_v33 = vadd.f32 %v6189_v55, %v10469_v46  ;;  %v10542_v35 = vadd.f32 %v6610_v12, %v10479_v38  ;;  %v6882_v46 = vld [vmem:[%s11156_s7 + $0x18] sm:$0xff]  }
 0x44b   :  { %v10545_v54 = vadd.f32 %v6616_v33, %v10481_v49  ;;  %v10562_v49 = vld [vmem:[%s11157_s10] sm:$0xff]   ;;  %6499 = vmatpush3.bf16.msra.mxu0 %v6881_v53  ;;  %v11553_v53 = vld [vmem:[#allocation9_spill] sm:$0xff] }
 0x44c   :  { %6558 = vmatprep.subr.bf16.mxu1 %v10562_v49  ;;  %6500 = vmatprep.subr.bf16.mxu0 %v6882_v46 }
 0x44d   :  { %6566 = vmatpush3.bf16.msra.mxu1 %v10562_v49 }
 0x44e   :  { %6559 = vmatprep.subr.bf16.mxu1 %v10573_v5 }
 0x44f   :  { %6501 = vmatpush3.bf16.msra.mxu0 %v6882_v46 }
 0x451   :  { %6567 = vmatpush3.bf16.msra.mxu1 %v10573_v5 }
 0x452   :  { %6560 = vmatprep.subr.bf16.mxu1 %v10589_v17 }
 0x455   :  { %6568 = vmatpush3.bf16.msra.mxu1 %v10589_v17 }
 0x456   :  { %6561 = vmatprep.subr.bf16.mxu1 %v10610_v51 }
 0x459   :  { %6569 = vmatpush3.bf16.msra.mxu1 %v10610_v51 }
 0x46b   :  { %v6480_v38 = vpop.f32.mrb[32].mxu1 }
 0x46c   :  { %v10565_v22 = vadd.f32 %v10494_v2, %v6480_v38  ;;  %v4549_v9 = vpop.f32.mrb[33].mxu1  ;;  %v6883_v2 = vld [vmem:[%s11156_s7 + $0x20] sm:$0xff]  }
 0x46d   :  { %v10568_v29 = vadd.f32 %v10486_v0, %v4549_v9  ;;  %v6481_v62 = vpop.f32.mrb[34].mxu1  ;;  %6502 = vmatprep.subr.bf16.mxu0 %v6883_v2 }
 0x46e   :  { %v10577_v24 = vadd.f32 %v10497_v56, %v6481_v62  ;;  %v4552_v26 = vpop.f32.mrb[35].mxu1  ;;  %6503 = vmatpush3.bf16.msra.mxu0 %v6883_v2  ;;  %v11554_v62 = vld [vmem:[#allocation10_spill] sm:$0xff] }
 0x46f   :  { %v10584_v0 = vadd.f32 %v10489_v27, %v4552_v26  ;;  %v6884_v27 = vld [vmem:[%s11156_s7 + $0x28] sm:$0xff]  }
 0x470   :  { %6504 = vmatprep.subr.bf16.mxu0 %v6884_v27 }
 0x471   :  { %v4630_v56 = vadd.f32 %v10584_v0, %v10568_v29 }
 0x472   :  { %6505 = vmatpush3.bf16.msra.mxu0 %v6884_v27 }
 0x473   :  { %v4631_v25 = vadd.f32 %v10565_v22, %v4630_v56  ;;  %v6484_v61 = vpop.f32.mrb[36].mxu1  ;;  %6506 = vmatprep.subr.bf16.mxu0 %v6885_v3 }
 0x474   :  { %v10601_v47 = vadd.f32 %v10510_v39, %v6484_v61  ;;  %v4565_v6 = vpop.f32.mrb[37].mxu1 }
 0x475   :  { %v10604_v60 = vadd.f32 %v10502_v37, %v4565_v6  ;;  %v4632_v63 = vadd.f32 %v10577_v24, %v4631_v25  ;;  %v6485_v16 = vpop.f32.mrb[38].mxu1 }
 0x476   :  { %v10613_v20 = vadd.f32 %v10513_v8, %v6485_v16  ;;  %v4568_v28 = vpop.f32.mrb[39].mxu1  ;;  %v10628_v8 = vld [vmem:[%s11157_s10 + $0x20] sm:$0xff]   ;;  %6507 = vmatpush3.bf16.msra.mxu0 %v6885_v3 }
 0x477   :  { %v4633_v39 = vadd.f32 %v10604_v60, %v4632_v63  ;;  %v10618_v37 = vadd.f32 %v10505_v4, %v4568_v28  ;;  %6562 = vmatprep.subr.bf16.mxu1 %v10628_v8  ;;  %6508 = vmatprep.subr.bf16.mxu0 %v6886_v19 }
 0x478   :  { %6570 = vmatpush3.bf16.msra.mxu1 %v10628_v8 }
 0x479   :  { %v4634_v40 = vadd.f32 %v10618_v37, %v4633_v39  ;;  %6563 = vmatprep.subr.bf16.mxu1 %v10642_v48 }
 0x47a   :  { %6509 = vmatpush3.bf16.msra.mxu0 %v6886_v19 }
 0x47b   :  { %v4635_v4 = vadd.f32 %v10601_v47, %v4634_v40  ;;  %v6488_v36 = vpop.f32.mrb[40].mxu1  ;;  %6526 = vmatprep.subr.bf16.mxu0 %v10562_v49 }
 0x47c   :  { %v6600_v41 = vadd.f32 %v10526_v32, %v6488_v36  ;;  %v4581_v58 = vpop.f32.mrb[41].mxu1  ;;  %6571 = vmatpush3.bf16.msra.mxu1 %v10642_v48 }
 0x47d   :  { %v6603_v59 = vadd.f32 %v10518_v14, %v4581_v58  ;;  %v4636_v18 = vadd.f32 %v10613_v20, %v4635_v4  ;;  %v6489_v10 = vpop.f32.mrb[42].mxu1  ;;  %6564 = vmatprep.subr.bf16.mxu1 %v10651_v42 }
 0x47e   :  { %v6606_v31 = vadd.f32 %v10529_v34, %v6489_v10  ;;  %v4584_v43 = vpop.f32.mrb[43].mxu1 }
 0x47f   :  { %v4637_v23 = vadd.f32 %v6603_v59, %v4636_v18  ;;  %v6609_v32 = vadd.f32 %v10521_v52, %v4584_v43 }
 0x480   :  { %6572 = vmatpush3.bf16.msra.mxu1 %v10651_v42 }
 0x481   :  { %v4638_v14 = vadd.f32 %v6609_v32, %v4637_v23  ;;  %6565 = vmatprep.subr.bf16.mxu1 %v10661_v21 }
 0x483   :  { %v4639_v34 = vadd.f32 %v6600_v41, %v4638_v14  ;;  %v6492_v50 = vpop.f32.mrb[44].mxu1 }
 0x484   :  { %v6612_v52 = vadd.f32 %v10542_v35, %v6492_v50  ;;  %v4597_v11 = vpop.f32.mrb[45].mxu1  ;;  %6573 = vmatpush3.bf16.msra.mxu1 %v10661_v21 }
 0x485   :  { %v6615_v44 = vadd.f32 %v10534_v45, %v4597_v11  ;;  %v4640_v57 = vadd.f32 %v6606_v31, %v4639_v34  ;;  %v6493_v1 = vpop.f32.mrb[46].mxu1 }
 0x486   :  { %v6618_v7 = vadd.f32 %v10545_v54, %v6493_v1  ;;  %v4600_v12 = vpop.f32.mrb[47].mxu1 }
 0x487   :  { %v4641_v55 = vadd.f32 %v6615_v44, %v4640_v57  ;;  %v6621_v33 = vadd.f32 %v10537_v30, %v4600_v12  ;;  %6551 = vmatmul.mubr.bf16.vlgmr.msra.gmra.mrb[80].mxu1 %v11552_v13 }
 0x488   :  { %6554 = vmatprep.mubr.bf16.mxu1 %v11553_v53 }
 0x489   :  { %v4642_v35 = vadd.f32 %v6621_v33, %v4641_v55 }
 0x48b   :  { %v4643_v45 = vadd.f32 %v6612_v52, %v4642_v35 }
 0x48d   :  { %v4644_v15 = vadd.f32 %v6618_v7, %v4643_v45 }
 0x48f   :  { %v4645_v46 = vrot.slane %v4644_v15, 4  ;;  %6555 = vmatmul.mubr.bf16.gmra.mrb[84].mxu1 %v11554_v62 }
 0x491   :  { %v4646_v38 = vadd.f32 %v4645_v46, %v4644_v15 }
 0x493   :  { %v4647_v54 = vrot.slane %v4646_v38, 2 }
 0x495   :  { %v4648_v9 = vadd.f32 %v4647_v54, %v4646_v38 }
 0x497   :  { %v4649_v26 = vrot.slane %v4648_v9, 1 }
 0x499   :  { %v4650_v2 = vadd.f32 %v4649_v26, %v4648_v9 }
 0x49b   :  { %v4651_v30 = vmul.f32 0.0078125, %v4650_v2 }
 0x49d   :  { %v4652_v56 = vsub.f32 %v10568_v29, %v4651_v30  ;;  %v4653_v25 = vsub.f32 %v10584_v0, %v4651_v30  ;;  %v4654_v61 = vsub.f32 %v10565_v22, %v4651_v30  ;;  %v4655_v27 = vsub.f32 %v10577_v24, %v4651_v30 }
 0x49e   :  { %v4656_v6 = vsub.f32 %v10604_v60, %v4651_v30  ;;  %v4657_v63 = vsub.f32 %v10618_v37, %v4651_v30  ;;  %v4658_v16 = vsub.f32 %v10601_v47, %v4651_v30  ;;  %v10679_v28 = vsub.f32 %v10613_v20, %v4651_v30 }
 0x49f   :  { %v10681_v39 = vsub.f32 %v6603_v59, %v4651_v30  ;;  %v10683_v3 = vsub.f32 %v6609_v32, %v4651_v30  ;;  %v10685_v29 = vsub.f32 %v6600_v41, %v4651_v30  ;;  %v10687_v0 = vsub.f32 %v6606_v31, %v4651_v30 }
 0x4a0   :  { %v10689_v22 = vsub.f32 %v6615_v44, %v4651_v30  ;;  %v4665_v24 = vsub.f32 %v6621_v33, %v4651_v30  ;;  %v10691_v40 = vsub.f32 %v6612_v52, %v4651_v30  ;;  %v10693_v60 = vsub.f32 %v6618_v7, %v4651_v30 }
 0x4a1   :  { %v4668_v37 = vmul.f32 %v4652_v56, %v4652_v56  ;;  %v4669_v47 = vmul.f32 %v4653_v25, %v4653_v25  ;;  %v4670_v4 = vmul.f32 %v4654_v61, %v4654_v61  ;;  %v4671_v36 = vmul.f32 %v4655_v27, %v4655_v27 }
 0x4a2   :  { %v4672_v58 = vmul.f32 %v4656_v6, %v4656_v6  ;;  %v4673_v18 = vmul.f32 %v4657_v63, %v4657_v63  ;;  %v4674_v10 = vmul.f32 %v4658_v16, %v4658_v16  ;;  %v4675_v43 = vmul.f32 %v10679_v28, %v10679_v28 }
 0x4a3   :  { %v4684_v20 = vadd.f32 %v4669_v47, %v4668_v37  ;;  %v4676_v32 = vmul.f32 %v10681_v39, %v10681_v39  ;;  %v4677_v34 = vmul.f32 %v10683_v3, %v10683_v3  ;;  %v4678_v52 = vmul.f32 %v10685_v29, %v10685_v29  ;;  %v10716_v37 = vld [vmem:[%s11158_s5] ss:$0 sm:$0xff] }
 0x4a4   :  { %v4679_v44 = vmul.f32 %v10687_v0, %v10687_v0  ;;  %v4680_v1 = vmul.f32 %v10689_v22, %v10689_v22  ;;  %v4681_v12 = vmul.f32 %v4665_v24, %v4665_v24  ;;  %v4682_v33 = vmul.f32 %v10691_v40, %v10691_v40 }
 0x4a5   :  { %v4685_v19 = vadd.f32 %v4684_v20, %v4670_v4  ;;  %v4683_v45 = vmul.f32 %v10693_v60, %v10693_v60 }
 0x4a7   :  { %v4686_v59 = vadd.f32 %v4685_v19, %v4671_v36  ;;  %v10725_v19 = vld [vmem:[%s11159_s6] ss:$0 sm:$0xff] }
 0x4a9   :  { %v4687_v41 = vadd.f32 %v4686_v59, %v4672_v58 }
 0x4ab   :  { %v4688_v31 = vadd.f32 %v4687_v41, %v4673_v18 }
 0x4ad   :  { %v4689_v23 = vadd.f32 %v4688_v31, %v4674_v10 }
 0x4af   :  { %v4690_v14 = vadd.f32 %v4689_v23, %v4675_v43 }
 0x4b1   :  { %v4691_v50 = vadd.f32 %v4690_v14, %v4676_v32 }
 0x4b3   :  { %v4692_v11 = vadd.f32 %v4691_v50, %v4677_v34 }
 0x4b5   :  { %v4693_v57 = vadd.f32 %v4692_v11, %v4678_v52 }
 0x4b7   :  { %v4694_v7 = vadd.f32 %v4693_v57, %v4679_v44 }
 0x4b9   :  { %v4695_v55 = vadd.f32 %v4694_v7, %v4680_v1 }
 0x4bb   :  { %v4696_v35 = vadd.f32 %v4695_v55, %v4681_v12 }
 0x4bd   :  { %v4697_v15 = vadd.f32 %v4696_v35, %v4682_v33 }
 0x4bf   :  { %v4698_v13 = vadd.f32 %v4697_v15, %v4683_v45 }
 0x4c1   :  { %v4699_v53 = vrot.slane %v4698_v13, 4 }
 0x4c3   :  { %v4700_v46 = vadd.f32 %v4699_v53, %v4698_v13 }
 0x4c5   :  { %v4701_v38 = vrot.slane %v4700_v46, 2 }
 0x4c7   :  { %v4702_v54 = vadd.f32 %v4701_v38, %v4700_v46 }
 0x4c9   :  { %v4703_v9 = vrot.slane %v4702_v54, 1 }
 0x4cb   :  { %v4704_v62 = vadd.f32 %v4703_v9, %v4702_v54 }
 0x4cd   :  { %v4705_v26 = vmul.f32 0.0078125, %v4704_v62 }
 0x4cf   :  { %v4706_v2 = vadd.f32 1e-05, %v4705_v26 }
 0x4d1   :  { %6897 = vrsqrt.f32 %v4706_v2 }
 0x4db   :  { %v10711_v30 = vpop.eup %6897 }
 0x4dc   :  { %v4721_v47 = vmul.f32 %v10711_v30, %v4665_v24  ;;  %v4708_v4 = vmul.f32 %v10711_v30, %v4652_v56  ;;  %v4709_v20 = vmul.f32 %v10711_v30, %v4653_v25  ;;  %v4710_v36 = vmul.f32 %v10711_v30, %v4654_v61 }
 0x4dd   :  { %v4711_v58 = vmul.f32 %v10711_v30, %v4655_v27  ;;  %v4712_v59 = vmul.f32 %v10711_v30, %v4656_v6  ;;  %v4713_v18 = vmul.f32 %v10711_v30, %v4657_v63  ;;  %v4714_v41 = vmul.f32 %v10711_v30, %v4658_v16 }
 0x4de   :  { %v4743_v24 = vmul.f32 %v10716_v37, %v4721_v47  ;;  %v4730_v56 = vmul.f32 %v10716_v37, %v4708_v4  ;;  %v4731_v25 = vmul.f32 %v10716_v37, %v4709_v20  ;;  %v4732_v61 = vmul.f32 %v10716_v37, %v4710_v36 }
 0x4df   :  { %v4733_v10 = vmul.f32 %v10716_v37, %v4711_v58  ;;  %v4734_v31 = vmul.f32 %v10716_v37, %v4712_v59  ;;  %v4735_v27 = vmul.f32 %v10716_v37, %v4713_v18  ;;  %v4715_v6 = vmul.f32 %v10711_v30, %v10679_v28 }
 0x4e0   :  { %v10741_v63 = vadd.f32 %v10725_v19, %v4743_v24  ;;  %v4752_v16 = vadd.f32 %v10725_v19, %v4730_v56  ;;  %v4753_v43 = vadd.f32 %v10725_v19, %v4731_v25  ;;  %v4754_v23 = vadd.f32 %v10725_v19, %v4732_v61 }
 0x4e1   :  { %v4755_v32 = vadd.f32 %v10725_v19, %v4733_v10  ;;  %v4756_v14 = vadd.f32 %v10725_v19, %v4734_v31  ;;  %v4757_v34 = vadd.f32 %v10725_v19, %v4735_v27  ;;  %v4736_v50 = vmul.f32 %v10716_v37, %v4714_v41 }
 0x4e2   :  { %vm4768_vm2 = vcmp.ge.f32.partialorder %v4752_v16, 0.0  ;;  %vm4769_vm5 = vcmp.ge.f32.partialorder %v4753_v43, 0.0  ;;  %v4784_v28 = vmul.f32 0.01, %v4752_v16  ;;  %v4785_v52 = vmul.f32 0.01, %v4753_v43 }
 0x4e3   :  { %vm4770_vm8 = vcmp.ge.f32.partialorder %v4754_v23, 0.0  ;;  %vm4771_vm1 = vcmp.ge.f32.partialorder %v4755_v32, 0.0  ;;  %v4786_v11 = vmul.f32 0.01, %v4754_v23  ;;  %v4787_v44 = vmul.f32 0.01, %v4755_v32 }
 0x4e4   :  { %v4800_v57 = vsel %vm4768_vm2, %v4752_v16, %v4784_v28  ;;  %v4801_v1 = vsel %vm4769_vm5, %v4753_v43, %v4785_v52  ;;  %vm4772_vm12 = vcmp.ge.f32.partialorder %v4756_v14, 0.0  ;;  %vm4773_vm15 = vcmp.ge.f32.partialorder %v4757_v34, 0.0 }
 0x4e5   :  { %v4816_v7 = vpack.c.bf16 %v4801_v1, %v4800_v57  ;;  %v4802_v12 = vsel %vm4770_vm8, %v4754_v23, %v4786_v11  ;;  %v4803_v55 = vsel %vm4771_vm1, %v4755_v32, %v4787_v44  ;;  %v4788_v33 = vmul.f32 0.01, %v4756_v14 }
 0x4e6   :  { %v4817_v35 = vpack.c.bf16 %v4803_v55, %v4802_v12  ;;  %v4789_v45 = vmul.f32 0.01, %v4757_v34  ;;  %v4737_v15 = vmul.f32 %v10716_v37, %v4715_v6  ;;  %v4758_v13 = vadd.f32 %v10725_v19, %v4736_v50 }
 0x4e7   :  { %6510 = vmatprep.mubr.bf16.mxu0 %v4816_v7  ;;  %v4804_v53 = vsel %vm4772_vm12, %v4756_v14, %v4788_v33  ;;  %v4716_v46 = vmul.f32 %v10711_v30, %v10681_v39  ;;  %v4717_v38 = vmul.f32 %v10711_v30, %v10683_v3  ;;  %v4718_v54 = vmul.f32 %v10711_v30, %v10685_v29  ;;  %v11558_v7 = vld [vmem:[#allocation6_spill] sm:$0xff] }
 0x4e8   :  { %6511 = vmatmul.mubr.bf16.vlgmr.msra.gmra.mrb[96].mxu0 %v4817_v35  ;;  %v4805_v9 = vsel %vm4773_vm15, %v4757_v34, %v4789_v45  ;;  %v4759_v62 = vadd.f32 %v10725_v19, %v4737_v15  ;;  %vm4774_vm3 = vcmp.ge.f32.partialorder %v4758_v13, 0.0  ;;  %v4790_v26 = vmul.f32 0.01, %v4758_v13 }
 0x4e9   :  { %6527 = vmatpush3.bf16.msra.mxu0 %v10562_v49  ;;  %v4818_v2 = vpack.c.bf16 %v4805_v9, %v4804_v53  ;;  %v4738_v47 = vmul.f32 %v10716_v37, %v4716_v46  ;;  %v4739_v4 = vmul.f32 %v10716_v37, %v4717_v38  ;;  %v4719_v39 = vmul.f32 %v10711_v30, %v10687_v0 }
 0x4ea   :  { %6528 = vmatprep.subr.bf16.mxu0 %v10573_v5  ;;  %vm4775_vm13 = vcmp.ge.f32.partialorder %v4759_v62, 0.0  ;;  %v4791_v3 = vmul.f32 0.01, %v4759_v62  ;;  %v4806_v29 = vsel %vm4774_vm3, %v4758_v13, %v4790_v26  ;;  %v4740_v20 = vmul.f32 %v10716_v37, %v4718_v54 }
 0x4eb   :  { %6514 = vmatprep.mubr.bf16.mxu0 %v4818_v2  ;;  %v4760_v36 = vadd.f32 %v10725_v19, %v4738_v47  ;;  %v4761_v49 = vadd.f32 %v10725_v19, %v4739_v4  ;;  %v4741_v58 = vmul.f32 %v10716_v37, %v4719_v39  ;;  %v4720_v59 = vmul.f32 %v10711_v30, %v10689_v22 }
 0x4ec   :  { %v4807_v18 = vsel %vm4775_vm13, %v4759_v62, %v4791_v3  ;;  %v4762_v0 = vadd.f32 %v10725_v19, %v4740_v20  ;;  %v4797_v41 = vmul.f32 0.01, %v10741_v63  ;;  %vm4781_vm10 = vcmp.ge.f32.partialorder %v10741_v63, 0.0 }
 0x4ed   :  { %6529 = vmatpush3.bf16.msra.mxu0 %v10573_v5  ;;  %v4819_v24 = vpack.c.bf16 %v4807_v18, %v4806_v29  ;;  %vm4776_vm7 = vcmp.ge.f32.partialorder %v4760_v36, 0.0  ;;  %vm4777_vm4 = vcmp.ge.f32.partialorder %v4761_v49, 0.0  ;;  %v4792_v56 = vmul.f32 0.01, %v4760_v36 }
 0x4ee   :  { %6530 = vmatprep.subr.bf16.mxu0 %v10589_v17  ;;  %v4793_v25 = vmul.f32 0.01, %v4761_v49  ;;  %v4763_v61 = vadd.f32 %v10725_v19, %v4741_v58  ;;  %vm4778_vm6 = vcmp.ge.f32.partialorder %v4762_v0, 0.0  ;;  %v4794_v10 = vmul.f32 0.01, %v4762_v0 }
 0x4ef   :  { %v4808_v31 = vsel %vm4776_vm7, %v4760_v36, %v4792_v56  ;;  %v4742_v22 = vmul.f32 %v10716_v37, %v4720_v59  ;;  %v4722_v27 = vmul.f32 %v10711_v30, %v10691_v40  ;;  %v4723_v32 = vmul.f32 %v10711_v30, %v10693_v60 }
 0x4f0   :  { %6515 = vmatmul.mubr.bf16.gmra.mrb[100].mxu0 %v4819_v24  ;;  %v4809_v5 = vsel %vm4777_vm4, %v4761_v49, %v4793_v25  ;;  %vm4779_vm11 = vcmp.ge.f32.partialorder %v4763_v61, 0.0  ;;  %v4795_v6 = vmul.f32 0.01, %v4763_v61  ;;  %v4810_v16 = vsel %vm4778_vm6, %v4762_v0, %v4794_v10 }
 0x4f1   :  { %6531 = vmatpush3.bf16.msra.mxu0 %v10589_v17  ;;  %v4820_v43 = vpack.c.bf16 %v4809_v5, %v4808_v31  ;;  %v4764_v23 = vadd.f32 %v10725_v19, %v4742_v22  ;;  %v4744_v14 = vmul.f32 %v10716_v37, %v4722_v27  ;;  %v4813_v40 = vsel %vm4781_vm10, %v10741_v63, %v4797_v41 }
 0x4f2   :  { %6532 = vmatprep.subr.bf16.mxu0 %v10610_v51  ;;  %v4811_v34 = vsel %vm4779_vm11, %v4763_v61, %v4795_v6  ;;  %v4745_v52 = vmul.f32 %v10716_v37, %v4723_v32 }
 0x4f3   :  { %6518 = vmatprep.mubr.bf16.mxu0 %v4820_v43  ;;  %v4821_v50 = vpack.c.bf16 %v4811_v34, %v4810_v16  ;;  %vm4780_vm9 = vcmp.ge.f32.partialorder %v4764_v23, 0.0  ;;  %v4796_v28 = vmul.f32 0.01, %v4764_v23  ;;  %v4766_v17 = vadd.f32 %v10725_v19, %v4744_v14 }
 0x4f4   :  { %v4767_v60 = vadd.f32 %v10725_v19, %v4745_v52  ;;  %v11556_v19 = vld [vmem:[#allocation4_spill] sm:$0xff] }
 0x4f5   :  { %6533 = vmatpush3.bf16.msra.mxu0 %v10610_v51  ;;  %v4812_v11 = vsel %vm4780_vm9, %v4764_v23, %v4796_v28  ;;  %vm4782_vm0 = vcmp.ge.f32.partialorder %v4766_v17, 0.0  ;;  %v4798_v44 = vmul.f32 0.01, %v4766_v17  ;;  %v11555_v51 = vld [vmem:[#allocation3_spill] sm:$0xff] }
 0x4f6   :  { %6534 = vmatprep.subr.bf16.mxu0 %v10628_v8  ;;  %v4822_v30 = vpack.c.bf16 %v4813_v40, %v4812_v11  ;;  %vm4783_vm14 = vcmp.ge.f32.partialorder %v4767_v60, 0.0  ;;  %v4799_v63 = vmul.f32 0.01, %v4767_v60 }
 0x4f7   :  { %v4814_v57 = vsel %vm4782_vm0, %v4766_v17, %v4798_v44 }
 0x4f8   :  { %6519 = vmatmul.mubr.bf16.gmra.mrb[104].mxu0 %v4821_v50  ;;  %v4815_v37 = vsel %vm4783_vm14, %v4767_v60, %v4799_v63 }
 0x4f9   :  { %6535 = vmatpush3.bf16.msra.mxu0 %v10628_v8  ;;  %6522 = vmatprep.mubr.bf16.mxu0 %v4822_v30  ;;  %v4823_v1 = vpack.c.bf16 %v4815_v37, %v4814_v57  ;;  %v11557_v8 = vld [vmem:[#allocation5_spill] sm:$0xff] }
 0x4fa   :  { %6536 = vmatprep.subr.bf16.mxu0 %v10642_v48 }
 0x4fd   :  { %6537 = vmatpush3.bf16.msra.mxu0 %v10642_v48 }
 0x4fe   :  { %6538 = vmatprep.subr.bf16.mxu0 %v10651_v42 }
 0x500   :  { %6523 = vmatmul.mubr.bf16.gmra.mrb[108].mxu0 %v4823_v1 }
 0x501   :  { %6539 = vmatpush3.bf16.msra.mxu0 %v10651_v42  ;;  %6542 = vmatprep.mubr.bf16.mxu0 %v11555_v51 }
 0x502   :  { %6540 = vmatprep.subr.bf16.mxu0 %v10661_v21 }
 0x505   :  { %6541 = vmatpush3.bf16.msra.mxu0 %v10661_v21 }
 0x508   :  { %6543 = vmatmul.mubr.bf16.vlgmr.msra.gmra.mrb[112].mxu0 %v11556_v19 }
 0x509   :  { %6546 = vmatprep.mubr.bf16.mxu0 %v11557_v8 }
 0x510   :  { %6547 = vmatmul.mubr.bf16.gmra.mrb[116].mxu0 %v11558_v7 }
 0x55a   :  { %v10803_v12 = vpop.f32.mrb[80].mxu1 }
 0x55b   :  { %v10805_v48 = vpop.f32.mrb[81].mxu1 }
 0x55c   :  { %v10807_v55 = vpop.f32.mrb[82].mxu1 }
 0x55d   :  { %v10809_v33 = vpop.f32.mrb[83].mxu1 }
 0x562   :  { %v10811_v35 = vpop.f32.mrb[84].mxu1 }
 0x563   :  { %v10813_v15 = vpop.f32.mrb[85].mxu1 }
 0x564   :  { %v10815_v13 = vpop.f32.mrb[86].mxu1 }
 0x565   :  { %v10817_v46 = vpop.f32.mrb[87].mxu1 }
 0x5bb   :  { %v6512_v42 = vpop.f32.mrb[96].mxu0 }
 0x5bc   :  { %v4922_v45 = vpop.f32.mrb[97].mxu0 }
 0x5bd   :  { %v6513_v21 = vpop.f32.mrb[98].mxu0 }
 0x5be   :  { %v4925_v53 = vpop.f32.mrb[99].mxu0 }
 0x5bf   :  { %v4987_v38 = vadd.f32 %v4925_v53, %v4922_v45 }
 0x5c1   :  { %v4988_v54 = vadd.f32 %v6512_v42, %v4987_v38 }
 0x5c3   :  { %v6516_v9 = vpop.f32.mrb[100].mxu0  ;;  %v4989_v62 = vadd.f32 %v6513_v21, %v4988_v54 }
 0x5c4   :  { %v4938_v26 = vpop.f32.mrb[101].mxu0 }
 0x5c5   :  { %v4990_v2 = vadd.f32 %v4989_v62, %v4938_v26  ;;  %v6517_v47 = vpop.f32.mrb[102].mxu0 }
 0x5c6   :  { %v4941_v4 = vpop.f32.mrb[103].mxu0 }
 0x5c7   :  { %v4991_v39 = vadd.f32 %v4990_v2, %v4941_v4 }
 0x5c9   :  { %v4992_v3 = vadd.f32 %v6516_v9, %v4991_v39 }
 0x5cb   :  { %v6520_v29 = vpop.f32.mrb[104].mxu0  ;;  %v4993_v20 = vadd.f32 %v6517_v47, %v4992_v3 }
 0x5cc   :  { %v4954_v36 = vpop.f32.mrb[105].mxu0 }
 0x5cd   :  { %v4994_v49 = vadd.f32 %v4993_v20, %v4954_v36  ;;  %v6521_v58 = vpop.f32.mrb[106].mxu0 }
 0x5ce   :  { %v4957_v59 = vpop.f32.mrb[107].mxu0 }
 0x5cf   :  { %v4995_v18 = vadd.f32 %v4994_v49, %v4957_v59 }
 0x5d1   :  { %v4996_v0 = vadd.f32 %v6520_v29, %v4995_v18 }
 0x5d3   :  { %v6524_v41 = vpop.f32.mrb[108].mxu0  ;;  %v4997_v24 = vadd.f32 %v6521_v58, %v4996_v0 }
 0x5d4   :  { %v4970_v56 = vpop.f32.mrb[109].mxu0 }
 0x5d5   :  { %v4998_v25 = vadd.f32 %v4997_v24, %v4970_v56  ;;  %v6525_v61 = vpop.f32.mrb[110].mxu0 }
 0x5d6   :  { %v4973_v10 = vpop.f32.mrb[111].mxu0 }
 0x5d7   :  { %v4999_v31 = vadd.f32 %v4998_v25, %v4973_v10 }
 0x5d9   :  { %v5000_v22 = vadd.f32 %v6524_v41, %v4999_v31 }
 0x5db   :  { %v5001_v27 = vadd.f32 %v6525_v61, %v5000_v22  ;;  %v10819_v5 = vpop.f32.mrb[112].mxu0 }
 0x5dc   :  { %v10821_v6 = vpop.f32.mrb[113].mxu0 }
 0x5dd   :  { %v5002_v16 = vrot.slane %v5001_v27, 4  ;;  %v10823_v43 = vpop.f32.mrb[114].mxu0 }
 0x5de   :  { %v10825_v23 = vpop.f32.mrb[115].mxu0 }
 0x5df   :  { %v5003_v32 = vadd.f32 %v5002_v16, %v5001_v27  ;;  %v5288_v14 = vadd.f32 %v10825_v23, %v10821_v6 }
 0x5e1   :  { %v5004_v34 = vrot.slane %v5003_v32, 2  ;;  %v5289_v40 = vadd.f32 %v10819_v5, %v5288_v14 }
 0x5e3   :  { %v5005_v50 = vadd.f32 %v5004_v34, %v5003_v32  ;;  %v10830_v28 = vpop.f32.mrb[116].mxu0  ;;  %v5290_v52 = vadd.f32 %v10823_v43, %v5289_v40 }
 0x5e4   :  { %v10833_v17 = vpop.f32.mrb[117].mxu0 }
 0x5e5   :  { %v5006_v11 = vrot.slane %v5005_v50, 1  ;;  %v5291_v60 = vadd.f32 %v5290_v52, %v10833_v17  ;;  %v10836_v30 = vpop.f32.mrb[118].mxu0 }
 0x5e6   :  { %v10838_v44 = vpop.f32.mrb[119].mxu0 }
 0x5e7   :  { %v5007_v63 = vadd.f32 %v5006_v11, %v5005_v50  ;;  %v5292_v57 = vadd.f32 %v5291_v60, %v10838_v44 }
 0x5e9   :  { %v5008_v37 = vmul.f32 0.0078125, %v5007_v63  ;;  %v5293_v1 = vadd.f32 %v10830_v28, %v5292_v57 }
 0x5eb   :  { %v10842_v51 = vsub.f32 %v4922_v45, %v5008_v37  ;;  %v10844_v19 = vsub.f32 %v4925_v53, %v5008_v37  ;;  %v10846_v8 = vsub.f32 %v6512_v42, %v5008_v37  ;;  %v10848_v7 = vsub.f32 %v6513_v21, %v5008_v37 }
 0x5ec   :  { %v10850_v38 = vsub.f32 %v4938_v26, %v5008_v37  ;;  %v10852_v54 = vsub.f32 %v4941_v4, %v5008_v37  ;;  %v10854_v62 = vsub.f32 %v6516_v9, %v5008_v37  ;;  %v10856_v2 = vsub.f32 %v6517_v47, %v5008_v37 }
 0x5ed   :  { %v10858_v39 = vsub.f32 %v4954_v36, %v5008_v37  ;;  %v10860_v3 = vsub.f32 %v4957_v59, %v5008_v37  ;;  %v10862_v45 = vsub.f32 %v6520_v29, %v5008_v37  ;;  %v10864_v53 = vsub.f32 %v6521_v58, %v5008_v37 }
 0x5ee   :  { %v10866_v42 = vsub.f32 %v4970_v56, %v5008_v37  ;;  %v10868_v21 = vsub.f32 %v4973_v10, %v5008_v37  ;;  %v10870_v26 = vsub.f32 %v6524_v41, %v5008_v37  ;;  %v10872_v4 = vsub.f32 %v6525_v61, %v5008_v37 }
 0x5ef   :  { %v5025_v9 = vmul.f32 %v10842_v51, %v10842_v51  ;;  %v5026_v47 = vmul.f32 %v10844_v19, %v10844_v19  ;;  %v5027_v29 = vmul.f32 %v10846_v8, %v10846_v8  ;;  %v5294_v36 = vadd.f32 %v10836_v30, %v5293_v1 }
 0x5f0   :  { %v5028_v49 = vmul.f32 %v10848_v7, %v10848_v7  ;;  %v5029_v18 = vmul.f32 %v10850_v38, %v10850_v38  ;;  %v5030_v24 = vmul.f32 %v10852_v54, %v10852_v54  ;;  %v5031_v61 = vmul.f32 %v10854_v62, %v10854_v62 }
 0x5f1   :  { %v5041_v20 = vadd.f32 %v5026_v47, %v5025_v9  ;;  %v5295_v59 = vadd.f32 %v5294_v36, %v10805_v48  ;;  %v5032_v22 = vmul.f32 %v10856_v2, %v10856_v2  ;;  %v5033_v32 = vmul.f32 %v10858_v39, %v10858_v39 }
 0x5f2   :  { %v5034_v40 = vmul.f32 %v10860_v3, %v10860_v3  ;;  %v5035_v11 = vmul.f32 %v10862_v45, %v10862_v45  ;;  %v5036_v57 = vmul.f32 %v10864_v53, %v10864_v53  ;;  %v5037_v9 = vmul.f32 %v10866_v42, %v10866_v42 }
 0x5f3   :  { %v5042_v58 = vadd.f32 %v5041_v20, %v5027_v29  ;;  %v5296_v41 = vadd.f32 %v5295_v59, %v10809_v33  ;;  %v5038_v20 = vmul.f32 %v10868_v21, %v10868_v21 }
 0x5f5   :  { %v5043_v0 = vadd.f32 %v5042_v58, %v5028_v49  ;;  %v5297_v25 = vadd.f32 %v10803_v12, %v5296_v41  ;;  %v5039_v58 = vmul.f32 %v10870_v26, %v10870_v26 }
 0x5f7   :  { %v5044_v56 = vadd.f32 %v5043_v0, %v5029_v18  ;;  %v5298_v31 = vadd.f32 %v10807_v55, %v5297_v25  ;;  %v5040_v0 = vmul.f32 %v10872_v4, %v10872_v4 }
 0x5f9   :  { %v5045_v10 = vadd.f32 %v5044_v56, %v5030_v24  ;;  %v5299_v16 = vadd.f32 %v5298_v31, %v10813_v15 }
 0x5fb   :  { %v5046_v27 = vadd.f32 %v5045_v10, %v5031_v61  ;;  %v5300_v34 = vadd.f32 %v5299_v16, %v10817_v46 }
 0x5fd   :  { %v5047_v14 = vadd.f32 %v5046_v27, %v5032_v22  ;;  %v5301_v52 = vadd.f32 %v10811_v35, %v5300_v34 }
 0x5ff   :  { %v5048_v50 = vadd.f32 %v5047_v14, %v5033_v32  ;;  %v5302_v63 = vadd.f32 %v10815_v13, %v5301_v52 }
 0x601   :  { %v5049_v60 = vadd.f32 %v5048_v50, %v5034_v40  ;;  %v5303_v1 = vrot.slane %v5302_v63, 4 }
 0x603   :  { %v5050_v37 = vadd.f32 %v5049_v60, %v5035_v11  ;;  %v5304_v29 = vadd.f32 %v5303_v1, %v5302_v63 }
 0x605   :  { %v5051_v47 = vadd.f32 %v5050_v37, %v5036_v57  ;;  %v5305_v49 = vrot.slane %v5304_v29, 2 }
 0x607   :  { %v5052_v36 = vadd.f32 %v5051_v47, %v5037_v9  ;;  %v5306_v18 = vadd.f32 %v5305_v49, %v5304_v29 }
 0x609   :  { %v5053_v59 = vadd.f32 %v5052_v36, %v5038_v20  ;;  %v5307_v24 = vrot.slane %v5306_v18, 1 }
 0x60b   :  { %v5054_v41 = vadd.f32 %v5053_v59, %v5039_v58  ;;  %v5308_v25 = vadd.f32 %v5307_v24, %v5306_v18 }
 0x60d   :  { %v5055_v56 = vadd.f32 %v5054_v41, %v5040_v0  ;;  %v5309_v10 = vmul.f32 0.0078125, %v5308_v25 }
 0x60f   :  { %v5056_v61 = vrot.slane %v5055_v56, 4  ;;  %v10916_v22 = vsub.f32 %v10821_v6, %v5309_v10  ;;  %v10919_v27 = vsub.f32 %v10825_v23, %v5309_v10  ;;  %v10922_v16 = vsub.f32 %v10819_v5, %v5309_v10 }
 0x610   :  { %v10925_v32 = vsub.f32 %v10823_v43, %v5309_v10  ;;  %v10928_v14 = vsub.f32 %v10833_v17, %v5309_v10  ;;  %v10931_v34 = vsub.f32 %v10838_v44, %v5309_v10  ;;  %v10934_v40 = vsub.f32 %v10830_v28, %v5309_v10 }
 0x611   :  { %v5057_v31 = vadd.f32 %v5056_v61, %v5055_v56  ;;  %v10937_v50 = vsub.f32 %v10836_v30, %v5309_v10  ;;  %v10940_v23 = vsub.f32 %v10805_v48, %v5309_v10  ;;  %v10943_v5 = vsub.f32 %v10809_v33, %v5309_v10 }
 0x612   :  { %v10946_v43 = vsub.f32 %v10803_v12, %v5309_v10  ;;  %v10949_v17 = vsub.f32 %v10807_v55, %v5309_v10  ;;  %v10952_v44 = vsub.f32 %v10813_v15, %v5309_v10  ;;  %v10955_v28 = vsub.f32 %v10817_v46, %v5309_v10 }
 0x613   :  { %v5058_v6 = vrot.slane %v5057_v31, 2  ;;  %v10958_v52 = vsub.f32 %v10811_v35, %v5309_v10  ;;  %v10961_v48 = vsub.f32 %v10815_v13, %v5309_v10  ;;  %v5326_v12 = vmul.f32 %v10916_v22, %v10916_v22 }
 0x614   :  { %v5327_v55 = vmul.f32 %v10919_v27, %v10919_v27  ;;  %v5328_v15 = vmul.f32 %v10922_v16, %v10922_v16  ;;  %v5329_v35 = vmul.f32 %v10925_v32, %v10925_v32  ;;  %v5330_v13 = vmul.f32 %v10928_v14, %v10928_v14 }
 0x615   :  { %v5059_v30 = vadd.f32 %v5058_v6, %v5057_v31  ;;  %v5331_v1 = vmul.f32 %v10931_v34, %v10931_v34  ;;  %v5332_v47 = vmul.f32 %v10934_v40, %v10934_v40  ;;  %v5333_v20 = vmul.f32 %v10937_v50, %v10937_v50 }
 0x616   :  { %v5342_v46 = vadd.f32 %v5327_v55, %v5326_v12  ;;  %v5334_v49 = vmul.f32 %v10940_v23, %v10940_v23  ;;  %v5341_v55 = vmul.f32 %v10961_v48, %v10961_v48 }
 0x617   :  { %v5060_v33 = vrot.slane %v5059_v30, 1 }
 0x618   :  { %v5343_v63 = vadd.f32 %v5342_v46, %v5328_v15 }
 0x619   :  { %v5061_v11 = vadd.f32 %v5060_v33, %v5059_v30 }
 0x61a   :  { %v5344_v37 = vadd.f32 %v5343_v63, %v5329_v35 }
 0x61b   :  { %v5062_v60 = vmul.f32 0.0078125, %v5061_v11 }
 0x61c   :  { %v5345_v9 = vadd.f32 %v5344_v37, %v5330_v13 }
 0x61d   :  { %v5063_v57 = vadd.f32 1e-05, %v5062_v60 }
 0x61e   :  { %v5346_v29 = vadd.f32 %v5345_v9, %v5331_v1  ;;  %v5930_v1 = vld [vmem:[%s11160_s8] ss:$0 sm:$0xff] }
 0x61f   :  { %6899 = vrsqrt.f32 %v5063_v57 }
 0x620   :  { %v5347_v36 = vadd.f32 %v5346_v29, %v5332_v47 }
 0x622   :  { %v5348_v58 = vadd.f32 %v5347_v36, %v5333_v20  ;;  %v5931_v36 = vld [vmem:[%s11161_s9] ss:$0 sm:$0xff] }
 0x624   :  { %v5349_v59 = vadd.f32 %v5348_v58, %v5334_v49 }
 0x629   :  { %v6900_v18 = vpop.eup %6899 }
 0x62a   :  { %v5065_v0 = vmul.f32 %v6900_v18, %v10842_v51  ;;  %v5066_v41 = vmul.f32 %v6900_v18, %v10844_v19  ;;  %v5067_v24 = vmul.f32 %v6900_v18, %v10846_v8  ;;  %v5068_v56 = vmul.f32 %v6900_v18, %v10848_v7 }
 0x62b   :  { %v5069_v25 = vmul.f32 %v6900_v18, %v10850_v38  ;;  %v5070_v61 = vmul.f32 %v6900_v18, %v10852_v54  ;;  %v5071_v10 = vmul.f32 %v6900_v18, %v10854_v62  ;;  %v5072_v31 = vmul.f32 %v6900_v18, %v10856_v2 }
 0x62c   :  { %v5073_v6 = vmul.f32 %v6900_v18, %v10858_v39  ;;  %v5074_v30 = vmul.f32 %v6900_v18, %v10860_v3  ;;  %v5075_v51 = vmul.f32 %v6900_v18, %v10862_v45  ;;  %v5076_v19 = vmul.f32 %v6900_v18, %v10864_v53 }
 0x62d   :  { %v5077_v8 = vmul.f32 %v6900_v18, %v10866_v42  ;;  %v5078_v7 = vmul.f32 %v6900_v18, %v10868_v21  ;;  %v5079_v38 = vmul.f32 %v6900_v18, %v10870_v26  ;;  %v5080_v54 = vmul.f32 %v6900_v18, %v10872_v4 }
 0x62e   :  { %v5335_v62 = vmul.f32 %v10943_v5, %v10943_v5  ;;  %v5336_v2 = vmul.f32 %v10946_v43, %v10946_v43  ;;  %v5337_v3 = vmul.f32 %v10949_v17, %v10949_v17  ;;  %v5338_v53 = vmul.f32 %v10952_v44, %v10952_v44 }
 0x62f   :  { %v5339_v21 = vmul.f32 %v10955_v28, %v10955_v28  ;;  %v5340_v4 = vmul.f32 %v10958_v52, %v10958_v52  ;;  %v5087_v9 = vmul.f32 %v5930_v1, %v5065_v0  ;;  %v5088_v47 = vmul.f32 %v5930_v1, %v5066_v41 }
 0x630   :  { %v5350_v39 = vadd.f32 %v5349_v59, %v5335_v62  ;;  %v5089_v29 = vmul.f32 %v5930_v1, %v5067_v24  ;;  %v5090_v20 = vmul.f32 %v5930_v1, %v5068_v56  ;;  %v5091_v49 = vmul.f32 %v5930_v1, %v5069_v25 }
 0x631   :  { %v5092_v58 = vmul.f32 %v5930_v1, %v5070_v61  ;;  %v5093_v59 = vmul.f32 %v5930_v1, %v5071_v10  ;;  %v5094_v18 = vmul.f32 %v5930_v1, %v5072_v31  ;;  %v5095_v62 = vmul.f32 %v5930_v1, %v5073_v6 }
 0x632   :  { %v5351_v45 = vadd.f32 %v5350_v39, %v5336_v2  ;;  %v5096_v2 = vmul.f32 %v5930_v1, %v5074_v30  ;;  %v5097_v39 = vmul.f32 %v5930_v1, %v5075_v51  ;;  %v11017_v0 = vadd.f32 %v5931_v36, %v5087_v9 }
 0x633   :  { %v11019_v41 = vadd.f32 %v5931_v36, %v5088_v47  ;;  %v11021_v24 = vadd.f32 %v5931_v36, %v5089_v29  ;;  %v11023_v56 = vadd.f32 %v5931_v36, %v5090_v20  ;;  %v11025_v25 = vadd.f32 %v5931_v36, %v5091_v49 }
 0x634   :  { %v5352_v42 = vadd.f32 %v5351_v45, %v5337_v3  ;;  %v5098_v3 = vmul.f32 %v5930_v1, %v5076_v19  ;;  %v5099_v45 = vmul.f32 %v5930_v1, %v5077_v8  ;;  %v11027_v61 = vadd.f32 %v5931_v36, %v5092_v58 }
 0x635   :  { %v11029_v10 = vadd.f32 %v5931_v36, %v5093_v59  ;;  %v11031_v31 = vadd.f32 %v5931_v36, %v5094_v18  ;;  %v11033_v6 = vadd.f32 %v5931_v36, %v5095_v62  ;;  %v11035_v30 = vadd.f32 %v5931_v36, %v5096_v2 }
 0x636   :  { %v5353_v26 = vadd.f32 %v5352_v42, %v5338_v53  ;;  %v5100_v53 = vmul.f32 %v5930_v1, %v5078_v7  ;;  %v5101_v42 = vmul.f32 %v5930_v1, %v5079_v38  ;;  %v11037_v51 = vadd.f32 %v5931_v36, %v5097_v39 }
 0x637   :  { %v11039_v19 = vadd.f32 %v5931_v36, %v5098_v3  ;;  %v11041_v7 = vadd.f32 %v5931_v36, %v5099_v45 }
 0x638   :  { %v5354_v12 = vadd.f32 %v5353_v26, %v5339_v21  ;;  %v5102_v21 = vmul.f32 %v5930_v1, %v5080_v54  ;;  %v11043_v38 = vadd.f32 %v5931_v36, %v5100_v53  ;;  %v11045_v54 = vadd.f32 %v5931_v36, %v5101_v42 }
 0x63a   :  { %v5355_v33 = vadd.f32 %v5354_v12, %v5340_v4  ;;  %v11047_v26 = vadd.f32 %v5931_v36, %v5102_v21 }
 0x63c   :  { %v5356_v11 = vadd.f32 %v5355_v33, %v5341_v55 }
 0x63e   :  { %v5357_v15 = vrot.slane %v5356_v11, 4 }
 0x640   :  { %v5358_v46 = vadd.f32 %v5357_v15, %v5356_v11  ;;  %v5940_v11 = vld [vmem:[%s11162_s11] ss:$0 sm:$0xff] }
 0x642   :  { %v5359_v60 = vrot.slane %v5358_v46, 2 }
 0x644   :  { %v5360_v35 = vadd.f32 %v5359_v60, %v5358_v46 }
 0x646   :  { %v5361_v63 = vrot.slane %v5360_v35, 1 }
 0x648   :  { %v5362_v57 = vadd.f32 %v5361_v63, %v5360_v35 }
 0x64a   :  { %v5363_v13 = vmul.f32 0.0078125, %v5362_v57 }
 0x64c   :  { %v5364_v37 = vadd.f32 1e-05, %v5363_v13 }
 0x64e   :  { %6901 = vrsqrt.f32 %v5364_v37 }
 0x658   :  { %v6902_v8 = vpop.eup %6901 }
 0x659   :  { %v5366_v4 = vmul.f32 %v6902_v8, %v10916_v22  ;;  %v5367_v12 = vmul.f32 %v6902_v8, %v10919_v27  ;;  %v5368_v55 = vmul.f32 %v6902_v8, %v10922_v16  ;;  %v5369_v33 = vmul.f32 %v6902_v8, %v10925_v32 }
 0x65a   :  { %v5370_v15 = vmul.f32 %v6902_v8, %v10928_v14  ;;  %v5371_v46 = vmul.f32 %v6902_v8, %v10931_v34  ;;  %v5372_v60 = vmul.f32 %v6902_v8, %v10934_v40  ;;  %v5373_v35 = vmul.f32 %v6902_v8, %v10937_v50 }
 0x65b   :  { %v5374_v22 = vmul.f32 %v6902_v8, %v10940_v23  ;;  %v5375_v27 = vmul.f32 %v6902_v8, %v10943_v5  ;;  %v5376_v16 = vmul.f32 %v6902_v8, %v10946_v43  ;;  %v5377_v32 = vmul.f32 %v6902_v8, %v10949_v17  ;;  %v5941_v23 = vld [vmem:[%s11163_s12] ss:$0 sm:$0xff] }
 0x65c   :  { %v5378_v63 = vmul.f32 %v6902_v8, %v10952_v44  ;;  %v5379_v57 = vmul.f32 %v6902_v8, %v10955_v28  ;;  %v5380_v14 = vmul.f32 %v6902_v8, %v10958_v52  ;;  %v5381_v34 = vmul.f32 %v6902_v8, %v10961_v48 }
 0x65d   :  { %v5388_v13 = vmul.f32 %v5940_v11, %v5366_v4  ;;  %v5389_v40 = vmul.f32 %v5940_v11, %v5367_v12  ;;  %v5390_v37 = vmul.f32 %v5940_v11, %v5368_v55  ;;  %v5391_v50 = vmul.f32 %v5940_v11, %v5369_v33 }
 0x65e   :  { %v5392_v5 = vmul.f32 %v5940_v11, %v5370_v15  ;;  %v5393_v43 = vmul.f32 %v5940_v11, %v5371_v46  ;;  %v5394_v1 = vmul.f32 %v5940_v11, %v5372_v60  ;;  %v5395_v17 = vmul.f32 %v5940_v11, %v5373_v35 }
 0x65f   :  { %v5396_v9 = vmul.f32 %v5940_v11, %v5374_v22  ;;  %v5397_v44 = vmul.f32 %v5940_v11, %v5375_v27  ;;  %v5398_v47 = vmul.f32 %v5940_v11, %v5376_v16  ;;  %v5399_v28 = vmul.f32 %v5940_v11, %v5377_v32 }
 0x660   :  { %v5400_v29 = vmul.f32 %v5940_v11, %v5378_v63  ;;  %v5401_v52 = vmul.f32 %v5940_v11, %v5379_v57  ;;  %v5402_v20 = vmul.f32 %v5940_v11, %v5380_v14  ;;  %v5403_v48 = vmul.f32 %v5940_v11, %v5381_v34 }
 0x661   :  { %v5410_v36 = vadd.f32 %v5941_v23, %v5388_v13  ;;  %v5411_v49 = vadd.f32 %v5941_v23, %v5389_v40  ;;  %v5412_v58 = vadd.f32 %v5941_v23, %v5390_v37  ;;  %v5413_v59 = vadd.f32 %v5941_v23, %v5391_v50 }
 0x662   :  { %v5414_v18 = vadd.f32 %v5941_v23, %v5392_v5  ;;  %v5415_v62 = vadd.f32 %v5941_v23, %v5393_v43  ;;  %v5416_v2 = vadd.f32 %v5941_v23, %v5394_v1  ;;  %v5417_v39 = vadd.f32 %v5941_v23, %v5395_v17 }
 0x663   :  { %v5418_v3 = vadd.f32 %v5941_v23, %v5396_v9  ;;  %v5419_v45 = vadd.f32 %v5941_v23, %v5397_v44  ;;  %v5420_v53 = vadd.f32 %v5941_v23, %v5398_v47  ;;  %v5421_v42 = vadd.f32 %v5941_v23, %v5399_v28 }
 0x664   :  { %v5422_v21 = vadd.f32 %v5941_v23, %v5400_v29  ;;  %v5423_v8 = vadd.f32 %v5941_v23, %v5401_v52  ;;  %v5424_v4 = vadd.f32 %v5941_v23, %v5402_v20  ;;  %v5425_v12 = vadd.f32 %v5941_v23, %v5403_v48 }
 0x665   :  { %v5426_v55 = vadd.f32 %v5410_v36, %v11017_v0  ;;  %v5427_v33 = vadd.f32 %v5411_v49, %v11019_v41  ;;  %v5428_v11 = vadd.f32 %v5412_v58, %v11021_v24  ;;  %v5429_v15 = vadd.f32 %v5413_v59, %v11023_v56 }
 0x666   :  { %v5430_v46 = vadd.f32 %v5414_v18, %v11025_v25  ;;  %v5431_v60 = vadd.f32 %v5415_v62, %v11027_v61  ;;  %v5432_v35 = vadd.f32 %v5416_v2, %v11029_v10  ;;  %v5433_v22 = vadd.f32 %v5417_v39, %v11031_v31 }
 0x667   :  { %v5434_v27 = vadd.f32 %v5418_v3, %v11033_v6  ;;  %v5435_v16 = vadd.f32 %v5419_v45, %v11035_v30  ;;  %v5436_v0 = vadd.f32 %v5420_v53, %v11037_v51  ;;  %v5437_v41 = vadd.f32 %v5421_v42, %v11039_v19 }
 0x668   :  { %v5438_v24 = vadd.f32 %v5422_v21, %v11041_v7  ;;  %v5439_v56 = vadd.f32 %v5423_v8, %v11043_v38  ;;  %v5440_v25 = vadd.f32 %v5424_v4, %v11045_v54  ;;  %v5441_v61 = vadd.f32 %v5425_v12, %v11047_v26 }
 0x669   :  { %vm5442_vm2 = vcmp.ge.f32.partialorder %v5426_v55, 0.0  ;;  %vm5443_vm5 = vcmp.ge.f32.partialorder %v5427_v33, 0.0  ;;  %vm5444_vm8 = vcmp.ge.f32.partialorder %v5428_v11, 0.0  ;;  %vm5445_vm1 = vcmp.ge.f32.partialorder %v5429_v15, 0.0 }
 0x66a   :  { %vm5446_vm12 = vcmp.ge.f32.partialorder %v5430_v46, 0.0  ;;  %vm5447_vm15 = vcmp.ge.f32.partialorder %v5431_v60, 0.0  ;;  %vm5448_vm3 = vcmp.ge.f32.partialorder %v5432_v35, 0.0  ;;  %vm5449_vm13 = vcmp.ge.f32.partialorder %v5433_v22, 0.0 }
 0x66b   :  { %vm5450_vm7 = vcmp.ge.f32.partialorder %v5434_v27, 0.0  ;;  %vm5451_vm4 = vcmp.ge.f32.partialorder %v5435_v16, 0.0  ;;  %vm5452_vm6 = vcmp.ge.f32.partialorder %v5436_v0, 0.0  ;;  %vm5453_vm10 = vcmp.ge.f32.partialorder %v5437_v41, 0.0 }
 0x66c   :  { %vm5454_vm11 = vcmp.ge.f32.partialorder %v5438_v24, 0.0  ;;  %vm5455_vm9 = vcmp.ge.f32.partialorder %v5439_v56, 0.0  ;;  %vm5456_vm0 = vcmp.ge.f32.partialorder %v5440_v25, 0.0  ;;  %vm5457_vm14 = vcmp.ge.f32.partialorder %v5441_v61, 0.0 }
 0x66d   :  { %v5458_v10 = vmul.f32 0.01, %v5426_v55  ;;  %v5459_v31 = vmul.f32 0.01, %v5427_v33  ;;  %v5460_v6 = vmul.f32 0.01, %v5428_v11 }
 0x66e   :  { %v5461_v30 = vmul.f32 0.01, %v5429_v15  ;;  %v5462_v51 = vmul.f32 0.01, %v5430_v46  ;;  %v5463_v19 = vmul.f32 0.01, %v5431_v60 }
 0x66f   :  { %v5464_v7 = vmul.f32 0.01, %v5432_v35  ;;  %v5465_v38 = vmul.f32 0.01, %v5433_v22  ;;  %v5466_v54 = vmul.f32 0.01, %v5434_v27  ;;  %v5474_v26 = vsel %vm5442_vm2, %v5426_v55, %v5458_v10 }
 0x670   :  { %v5467_v32 = vmul.f32 0.01, %v5435_v16  ;;  %v5468_v63 = vmul.f32 0.01, %v5436_v0  ;;  %v5469_v57 = vmul.f32 0.01, %v5437_v41  ;;  %v5475_v14 = vsel %vm5443_vm5, %v5427_v33, %v5459_v31  ;;  %5490 = vst [vmem:[%s11164_s13] sm:$0xff] %v5474_v26 }
 0x671   :  { %v5470_v34 = vmul.f32 0.01, %v5438_v24  ;;  %v5471_v13 = vmul.f32 0.01, %v5439_v56  ;;  %v5472_v40 = vmul.f32 0.01, %v5440_v25  ;;  %v5476_v37 = vsel %vm5444_vm8, %v5428_v11, %v5460_v6 }
 0x672   :  { %5491 = vst [vmem:[%s11164_s13 + $0x8] sm:$0xff] %v5475_v14  ;;  %v5473_v50 = vmul.f32 0.01, %v5441_v61  ;;  %v5477_v23 = vsel %vm5445_vm1, %v5429_v15, %v5461_v30  ;;  %v5478_v5 = vsel %vm5446_vm12, %v5430_v46, %v5462_v51  ;;  %v5479_v43 = vsel %vm5447_vm15, %v5431_v60, %v5463_v19  ;;  %5492 = vst [vmem:[%s11164_s13 + $0x10] sm:$0xff] %v5476_v37 }
 0x673   :  { %v5480_v1 = vsel %vm5448_vm3, %v5432_v35, %v5464_v7  ;;  %v5481_v17 = vsel %vm5449_vm13, %v5433_v22, %v5465_v38  ;;  %v5482_v9 = vsel %vm5450_vm7, %v5434_v27, %v5466_v54  ;;  %v5483_v44 = vsel %vm5451_vm4, %v5435_v16, %v5467_v32  ;;  %5493 = vst [vmem:[%s11164_s13 + $0x18] sm:$0xff] %v5477_v23 }
 0x674   :  { %5494 = vst [vmem:[%s11164_s13 + $0x20] sm:$0xff] %v5478_v5  ;;  %5495 = vst [vmem:[%s11164_s13 + $0x28] sm:$0xff] %v5479_v43  ;;  %v5484_v47 = vsel %vm5452_vm6, %v5436_v0, %v5468_v63  ;;  %v5485_v28 = vsel %vm5453_vm10, %v5437_v41, %v5469_v57  ;;  %v5486_v29 = vsel %vm5454_vm11, %v5438_v24, %v5470_v34 }
 0x675   :  { %v5487_v52 = vsel %vm5455_vm9, %v5439_v56, %v5471_v13  ;;  %5496 = vst [vmem:[%s11164_s13 + $0x30] sm:$0xff] %v5480_v1  ;;  %5497 = vst [vmem:[%s11164_s13 + $0x38] sm:$0xff] %v5481_v17  ;;  %v5488_v20 = vsel %vm5456_vm0, %v5440_v25, %v5472_v40  ;;  %v5489_v48 = vsel %vm5457_vm14, %v5441_v61, %v5473_v50 }
 0x676   :  { %5498 = vst [vmem:[%s11164_s13 + $0x40] sm:$0xff] %v5482_v9  ;;  %5499 = vst [vmem:[%s11164_s13 + $0x48] sm:$0xff] %v5483_v44 }
 0x677   :  { %5500 = vst [vmem:[%s11164_s13 + $0x50] sm:$0xff] %v5484_v47  ;;  %5501 = vst [vmem:[%s11164_s13 + $0x58] sm:$0xff] %v5485_v28 }
 0x678   :  { %5502 = vst [vmem:[%s11164_s13 + $0x60] sm:$0xff] %v5486_v29  ;;  %5503 = vst [vmem:[%s11164_s13 + $0x68] sm:$0xff] %v5487_v52 }
 0x679   :  { %5504 = vst [vmem:[%s11164_s13 + $0x70] sm:$0xff] %v5488_v20  ;;  %5505 = vst [vmem:[%s11164_s13 + $0x78] sm:$0xff] %v5489_v48 }

</bundles_post_ra>
